<compile_context>
chip_gen: v5e
topology: v5e:2x2
jax: 0.10.0
libtpu: 0.0.40
codegen_flags: <defaults>
</compile_context>

<pallas_src>
import functools

import numpy as np

import jax
import jax.numpy as jnp
from jax.experimental import pallas as pl
from jax.experimental.pallas import tpu as pltpu


# ---------------------------------------------------------------------------
# Fused Pallas kernel (one batch tile per grid step)
# ---------------------------------------------------------------------------
def mtcnn_fused_kernel(x_ref,      # (TB, LXP)        f32   lane-dense padded input
                       lab_ref,    # (TB, 1)          i32   labels
                       wconv_ref,  # (LXP, 2*Lp*C)    bf16  scattered conv weight
                       scale_ref,  # (1, 2*Lp*C)      f32   folded BN scale (per column)
                       shift_ref,  # (1, 2*Lp*C)      f32   folded BN shift (+ conv bias)
                       m1_ref,     # (2*Lp*C, RP)     bf16  SE fc1 with squeeze-mean folded in
                       w1b_ref,    # (label_dims, RP) f32   SE fc1 label rows (resident table)
                       w2se_ref,   # (RP, Lp*C)       bf16  SE fc2, columns replicated Lp times
                       w1h_ref,    # (Lp*C, H1t)      bf16  heads Linear1 (permuted rows)
                       b1_ref,     # (1, H1t)         f32
                       w2h_ref,    # (H1t, H2t)       bf16  heads Linear2 (block-diagonal)
                       b2_ref,     # (1, H2t)         f32
                       w3h_ref,    # (H2t, OD)        bf16  heads Linear3 (block-diag, OD=128)
                       b3_ref,     # (1, OD)          f32
                       o_ref):     # (TB, OD)         f32
    f32, bf16 = jnp.float32, jnp.bfloat16
    nc2 = wconv_ref.shape[1]          # 2 * Lp * C
    nc = nc2 // 2                     # Lp * C
    label_dims = w1b_ref.shape[0]

    # --- Conv1d(1->C, K, stride=1) as ONE MXU matmul over the padded length ---
    x = x_ref[...]                                                     # (TB, LXP) f32
    h = jnp.dot(x.astype(bf16), wconv_ref[...],
                preferred_element_type=f32)                            # (TB, 2*Lp*C)

    # --- eval-mode BatchNorm (conv bias folded) + ReLU, full 128-lane width ---
    h = jnp.maximum(h * scale_ref[...] + shift_ref[...], 0.0)

    # --- Conditional SE: squeeze-mean over the FULL conv length is folded into m1 ---
    hb = h.astype(bf16)
    z = jnp.dot(hb, m1_ref[...], preferred_element_type=f32)           # (TB, RP)
    lab = lab_ref[...]                                                 # (TB, 1) i32
    w1b = w1b_ref[...]                                                 # (label_dims, RP)
    for c in range(label_dims):        # one-hot @ W1b via static selects (no gather)
        z = z + (lab == c).astype(f32) * w1b[c:c + 1, :]
    z = jnp.maximum(z, 0.0)
    # fc2 columns are replicated Lp times -> gate comes out pre-flattened/aligned.
    y = jax.nn.sigmoid(jnp.dot(z.astype(bf16), w2se_ref[...],
                               preferred_element_type=f32))            # (TB, Lp*C)

    # --- MaxPool1d(2) = max of even/odd column halves, then SE gate ---
    # (y = sigmoid(.) > 0, so max(y*a, y*b) == y*max(a, b); columns are already in the
    #  permuted (j*C + c) flatten order the head weights were stored in.)
    m = jnp.maximum(h[:, :nc], h[:, nc:]) * y                          # (TB, Lp*C) f32

    # --- Both MLP heads fused: one K=Lp*C Linear1 matmul, block-diagonal Linear2/3 ---
    h1 = jnp.maximum(jnp.dot(m.astype(bf16), w1h_ref[...],
                             preferred_element_type=f32) + b1_ref[...], 0.0)
    h2 = jnp.maximum(jnp.dot(h1.astype(bf16), w2h_ref[...],
                             preferred_element_type=f32) + b2_ref[...], 0.0)
    o_ref[...] = jnp.dot(h2.astype(bf16), w3h_ref[...],
                         preferred_element_type=f32) + b3_ref[...]


# ---------------------------------------------------------------------------
# Parameter initialization (deterministic, synthetic, PyTorch-shaped)
# ---------------------------------------------------------------------------
def init_params(key, input_dim, output_dims, label_dims,
                conv=(64, 7, 1, 1), hidden_dim=128, reduction=16):
    C, K, stride, pad = conv
    keys = jax.random.split(key, 8 + 6 * len(output_dims))
    p = {}
    p["conv_w"] = 0.2 * jax.random.normal(keys[0], (C, 1, K), jnp.float32)
    p["conv_b"] = 0.1 * jax.random.normal(keys[1], (C,), jnp.float32)
    p["bn_gamma"] = 1.0 + 0.1 * jax.random.normal(keys[2], (C,), jnp.float32)
    p["bn_beta"] = 0.1 * jax.random.normal(keys[3], (C,), jnp.float32)
    p["bn_mean"] = 0.1 * jax.random.normal(keys[4], (C,), jnp.float32)
    p["bn_var"] = 1.0 + 0.1 * jnp.abs(jax.random.normal(keys[5], (C,), jnp.float32))
    r = C // reduction
    p["se_w1"] = 0.3 * jax.random.normal(keys[6], (r, C + label_dims), jnp.float32)
    p["se_w2"] = 0.3 * jax.random.normal(keys[7], (C, r), jnp.float32)

    Lout = (input_dim + 2 * pad - K) // stride + 1
    Lp = Lout // 2
    F = C * Lp
    heads = []
    for i, od in enumerate(output_dims):
        ks = keys[8 + 6 * i: 8 + 6 * (i + 1)]
        w1 = 0.05 * jax.random.normal(ks[0], (F, hidden_dim), jnp.float32)
        b1 = 0.05 * jax.random.normal(ks[1], (hidden_dim,), jnp.float32)
        w2 = 0.1 * jax.random.normal(ks[2], (hidden_dim, 64), jnp.float32)
        b2 = 0.05 * jax.random.normal(ks[3], (64,), jnp.float32)
        w3 = 0.1 * jax.random.normal(ks[4], (64, od), jnp.float32)
        b3 = 0.05 * jax.random.normal(ks[5], (od,), jnp.float32)
        heads.append((w1, b1, w2, b2, w3, b3))
    p["heads"] = heads
    return p


# ---------------------------------------------------------------------------
# One-time kernel-side parameter preparation (scatter/fold/permute/concat/cast)
# ---------------------------------------------------------------------------
def prepare_fused_params(params, input_dim, conv=(64, 7, 1, 1), out_pad=128):
    C, K, stride, pad = conv
    assert stride == 1, "TODO(synk): strided conv not supported by the fused kernel"
    Lout = (input_dim + 2 * pad - K) // stride + 1
    assert Lout % 2 == 0, "TODO(synk): odd conv output length not supported"
    Lp = Lout // 2
    NC = Lp * C
    Lpad_x = input_dim + 2 * pad
    LXP = max(128, ((Lpad_x + 127) // 128) * 128)
    eps = 1e-5

    conv_w = np.asarray(params["conv_w"], np.float32)          # (C, 1, K)
    conv_b = np.asarray(params["conv_b"], np.float32)
    scale = np.asarray(params["bn_gamma"], np.float32) / np.sqrt(
        np.asarray(params["bn_var"], np.float32) + eps)
    shift = (np.asarray(params["bn_beta"], np.float32)
             - np.asarray(params["bn_mean"], np.float32) * scale
             + conv_b * scale)                                 # conv bias folded into BN shift

    # Conv1d(1->C, K) as a single (LXP, 2*Lp*C) matmul weight.  Column layout:
    # [even positions | odd positions], each ordered (j*C + c) so maxpool = lane-half max
    # and the pooled result is already in the permuted flatten order of the head weights.
    wconv = np.zeros((LXP, 2 * NC), np.float32)
    for l in range(Lout):
        p_, j = l % 2, l // 2
        col0 = p_ * NC + j * C
        for k in range(K):
            wconv[l + k, col0:col0 + C] += conv_w[:, 0, k]

    scale2 = np.tile(scale, 2 * Lp)[None, :]                   # column % C == channel
    shift2 = np.tile(shift, 2 * Lp)[None, :]

    # Conditional SE: bottleneck r padded to a multiple of 8; squeeze-mean folded into fc1;
    # fc2 columns replicated Lp times so the gate matches the pooled column order.
    se_w1 = np.asarray(params["se_w1"], np.float32)            # (r, C + label_dims)
    se_w2 = np.asarray(params["se_w2"], np.float32)            # (C, r)
    r = se_w2.shape[1]
    label_dims = se_w1.shape[1] - C
    RP = ((r + 7) // 8) * 8
    w1a = np.zeros((C, RP), np.float32); w1a[:, :r] = se_w1[:, :C].T
    m1 = np.tile(w1a / float(Lout), (Lout, 1))                 # (2*Lp*C, RP)
    w1b = np.zeros((label_dims, RP), np.float32); w1b[:, :r] = se_w1[:, C:].T
    w2p = np.zeros((RP, C), np.float32); w2p[:r, :] = se_w2.T
    w2se_exp = np.tile(w2p, (1, Lp))                           # (RP, Lp*C)

    # Heads: Linear1 concatenated + row-permuted, Linear2/3 block-diagonal, output padded
    # to a lane-dense 128-wide slab (sliced per-head in the wrapper).
    heads = params["heads"]
    n = len(heads)
    H1 = heads[0][0].shape[1]
    H2 = heads[0][2].shape[1]
    ods = [hd[4].shape[1] for hd in heads]
    H1t, H2t = n * H1, n * H2
    OD = max(out_pad, ((sum(ods) + 127) // 128) * 128)
    w1cat = np.concatenate([np.asarray(hd[0], np.float32) for hd in heads], axis=1)
    assert w1cat.shape[0] == NC
    b1cat = np.concatenate([np.asarray(hd[1], np.float32) for hd in heads])[None, :]
    b2cat = np.concatenate([np.asarray(hd[3], np.float32) for hd in heads])[None, :]
    w2cat = np.zeros((H1t, H2t), np.float32)
    w3cat = np.zeros((H2t, OD), np.float32)
    b3cat = np.zeros((1, OD), np.float32)
    off = 0
    for i, hd in enumerate(heads):
        w2cat[i * H1:(i + 1) * H1, i * H2:(i + 1) * H2] = np.asarray(hd[2], np.float32)
        w3cat[i * H2:(i + 1) * H2, off:off + ods[i]] = np.asarray(hd[4], np.float32)
        b3cat[0, off:off + ods[i]] = np.asarray(hd[5], np.float32)
        off += ods[i]
    # permute Linear1 rows: torch flatten (c*Lp + j) -> kernel column order (j*C + c)
    w1perm = w1cat.reshape(C, Lp, H1t).transpose(1, 0, 2).reshape(NC, H1t)

    return {
        "wconv": jnp.asarray(wconv, jnp.bfloat16),
        "scale": jnp.asarray(scale2, jnp.float32),
        "shift": jnp.asarray(shift2, jnp.float32),
        "m1": jnp.asarray(m1, jnp.bfloat16),
        "w1b": jnp.asarray(w1b, jnp.float32),
        "w2se": jnp.asarray(w2se_exp, jnp.bfloat16),
        "w1h": jnp.asarray(w1perm, jnp.bfloat16),
        "b1": jnp.asarray(b1cat, jnp.float32),
        "w2h": jnp.asarray(w2cat, jnp.bfloat16),
        "b2": jnp.asarray(b2cat, jnp.float32),
        "w3h": jnp.asarray(w3cat, jnp.bfloat16),
        "b3": jnp.asarray(b3cat, jnp.float32),
    }


def _round_up(v, m):
    return ((v + m - 1) // m) * m


# ---------------------------------------------------------------------------
# Forward pass: tiny input prep + ONE batch-tiled pallas_call + output slicing
# ---------------------------------------------------------------------------
def mtcnn_condse_forward(fused, x, labels, *, output_dims, conv=(64, 7, 1, 1),
                         tile_b=256):
    _, _, _, pad = conv
    B, input_dim = x.shape
    LXP = fused["wconv"].shape[0]
    OD = fused["w3h"].shape[1]

    tb = min(_round_up(tile_b, 8), _round_up(B, 8))
    B_pad = _round_up(B, tb)
    n_tiles = B_pad // tb

    # lane-dense padded input: conv left-pad, then zero-fill lanes to LXP; batch padded to tile.
    xp = jnp.pad(x.astype(jnp.float32),
                 ((0, B_pad - B), (pad, LXP - input_dim - pad)))
    lab2 = jnp.pad(labels.astype(jnp.int32), (0, B_pad - B)).reshape(B_pad, 1)

    weights = (fused["wconv"], fused["scale"], fused["shift"], fused["m1"],
               fused["w1b"], fused["w2se"], fused["w1h"], fused["b1"],
               fused["w2h"], fused["b2"], fused["w3h"], fused["b3"])

    w_specs = [pl.BlockSpec(w.shape, lambda i: (0, 0)) for w in weights]
    in_specs = ([pl.BlockSpec((tb, LXP), lambda i: (i, 0)),
                 pl.BlockSpec((tb, 1), lambda i: (i, 0))] + w_specs)
    out_spec = pl.BlockSpec((tb, OD), lambda i: (i, 0))

    nc = fused["w1h"].shape[0]
    h1t, h2t = fused["w1h"].shape[1], fused["w2h"].shape[1]
    rp = fused["m1"].shape[1]
    flops = 2 * B_pad * (LXP * 2 * nc + 2 * nc * rp + rp * nc
                         + nc * h1t + h1t * h2t + h2t * OD)
    bytes_accessed = (xp.size * 4 + lab2.size * 4 + B_pad * OD * 4
                      + sum(int(w.size) * w.dtype.itemsize for w in weights))
    cost = pl.CostEstimate(flops=int(flops), transcendentals=int(B_pad * nc),
                           bytes_accessed=int(bytes_accessed))

    out = pl.pallas_call(
        mtcnn_fused_kernel,
        out_shape=jax.ShapeDtypeStruct((B_pad, OD), jnp.float32),
        grid=(n_tiles,),
        in_specs=in_specs,
        out_specs=out_spec,
        compiler_params=pltpu.CompilerParams(dimension_semantics=("parallel",)),
        cost_estimate=cost,
    )(xp, lab2, *weights)

    outs, off = [], 0
    for od in output_dims:
        outs.append(out[:B, off:off + od])
        off += od
    return outs


# ---------------------------------------------------------------------------
# Pure-JAX reference (mirrors the PyTorch forward; matmuls use the same
# bf16-operand / f32-accumulate convention as the kernel's MXU dots)
# ---------------------------------------------------------------------------
def _bdot(a, b):
    return jnp.dot(a.astype(jnp.bfloat16), b.astype(jnp.bfloat16),
                   preferred_element_type=jnp.float32)


def reference_forward(params, x, labels, input_dim, label_dims, conv=(64, 7, 1, 1)):
    C, K, stride, pad = conv
    B = x.shape[0]
    Lout = (input_dim + 2 * pad - K) // stride + 1
    x_pad = jnp.pad(x.astype(jnp.float32), ((0, 0), (pad, pad)))
    cols = jnp.stack([x_pad[:, k:k + Lout] for k in range(K)], axis=-1)   # (B, Lout, K)
    w = params["conv_w"][:, 0, :]                                          # (C, K)
    h = jnp.einsum("blk,ck->bcl", cols.astype(jnp.bfloat16), w.astype(jnp.bfloat16),
                   preferred_element_type=jnp.float32) + params["conv_b"][None, :, None]
    eps = 1e-5
    scale = params["bn_gamma"] / jnp.sqrt(params["bn_var"] + eps)
    shift = params["bn_beta"] - params["bn_mean"] * scale
    h = jnp.maximum(h * scale[None, :, None] + shift[None, :, None], 0.0)  # (B, C, Lout)

    pooled = jnp.mean(h, axis=2)                                           # (B, C)
    onehot = jax.nn.one_hot(labels, label_dims, dtype=jnp.float32)
    z = jnp.concatenate([pooled, onehot], axis=1)
    z = jnp.maximum(_bdot(z, params["se_w1"].T), 0.0)
    y = jax.nn.sigmoid(_bdot(z, params["se_w2"].T))                        # (B, C)
    h = h * y[:, :, None]

    Lp = Lout // 2
    hp = h[:, :, :Lp * 2].reshape(B, C, Lp, 2).max(axis=-1)
    flat = hp.reshape(B, -1)
    outs = []
    for (w1h, b1h, w2h, b2h, w3h, b3h) in params["heads"]:
        t = jnp.maximum(_bdot(flat, w1h) + b1h, 0.0)
        t = jnp.maximum(_bdot(t, w2h) + b2h, 0.0)
        outs.append(_bdot(t, w3h) + b3h)
    return outs


# ---------------------------------------------------------------------------
if __name__ == "__main__":
    input_dim = 36            # conv out: 36 + 2 - 7 + 1 = 32, maxpool -> 16, F = 64*16 = 1024
    output_dims = (10, 5)
    label_dims = 4
    B = 32                    # small demo batch; tile_b=16 exercises the 2-step batch grid

    key = jax.random.PRNGKey(0)
    kx, kl, kp = jax.random.split(key, 3)
    x = jax.random.normal(kx, (B, input_dim), jnp.float32)
    labels = jax.random.randint(kl, (B,), 0, label_dims)
    params = init_params(kp, input_dim, output_dims, label_dims)

    fused = prepare_fused_params(params, input_dim)
    fwd = jax.jit(functools.partial(mtcnn_condse_forward,
                                    output_dims=output_dims, tile_b=16))

    outs = fwd(fused, x, labels)
    outs = [jax.block_until_ready(o) for o in outs]

    refs = reference_forward(params, x, labels, input_dim, label_dims)
    for o, r, od in zip(outs, refs, output_dims):
        assert o.shape == (B, od), (o.shape, (B, od))
        err = float(jnp.max(jnp.abs(o - r)))
        # tolerance covers bf16 MXU operand rounding, incl. the fused SE squeeze path
        assert jnp.allclose(o, r, atol=2e-2, rtol=1e-2), err

    print("KERNEL_OK")
</pallas_src>

<mosaic_0001>
module attributes {stable_mosaic.version = 11 : i64} {
  func.func @mtcnn_fused_kernel(%arg0: i32, %arg1: memref<16x128xf32, #tpu.memory_space<vmem>>, %arg2: memref<16x1xi32, #tpu.memory_space<vmem>>, %arg3: memref<128x2048xbf16, #tpu.memory_space<vmem>>, %arg4: memref<1x2048xf32, #tpu.memory_space<vmem>>, %arg5: memref<1x2048xf32, #tpu.memory_space<vmem>>, %arg6: memref<2048x8xbf16, #tpu.memory_space<vmem>>, %arg7: memref<4x8xf32, #tpu.memory_space<vmem>>, %arg8: memref<8x1024xbf16, #tpu.memory_space<vmem>>, %arg9: memref<1024x256xbf16, #tpu.memory_space<vmem>>, %arg10: memref<1x256xf32, #tpu.memory_space<vmem>>, %arg11: memref<256x128xbf16, #tpu.memory_space<vmem>>, %arg12: memref<1x128xf32, #tpu.memory_space<vmem>>, %arg13: memref<128x128xbf16, #tpu.memory_space<vmem>>, %arg14: memref<1x128xf32, #tpu.memory_space<vmem>>, %arg15: memref<16x128xf32, #tpu.memory_space<vmem>>) attributes {dimension_semantics = [#tpu.dimension_semantics<parallel>], iteration_bounds = array<i64: 2>, scalar_prefetch = 0 : i64, scratch_operands = 0 : i64, tpu.core_type = #tpu.core_type<tc>, window_params = [{transform_indices = @transform_0, window_bounds = array<i64: 16, 128>}, {transform_indices = @transform_1, window_bounds = array<i64: 16, 1>}, {pipeline_mode = #tpu.pipeline_mode<synchronous>, transform_indices = @transform_2, window_bounds = array<i64: 128, 2048>}, {pipeline_mode = #tpu.pipeline_mode<synchronous>, transform_indices = @transform_3, window_bounds = array<i64: 1, 2048>}, {pipeline_mode = #tpu.pipeline_mode<synchronous>, transform_indices = @transform_4, window_bounds = array<i64: 1, 2048>}, {pipeline_mode = #tpu.pipeline_mode<synchronous>, transform_indices = @transform_5, window_bounds = array<i64: 2048, 8>}, {pipeline_mode = #tpu.pipeline_mode<synchronous>, transform_indices = @transform_6, window_bounds = array<i64: 4, 8>}, {pipeline_mode = #tpu.pipeline_mode<synchronous>, transform_indices = @transform_7, window_bounds = array<i64: 8, 1024>}, {pipeline_mode = #tpu.pipeline_mode<synchronous>, transform_indices = @transform_8, window_bounds = array<i64: 1024, 256>}, {pipeline_mode = #tpu.pipeline_mode<synchronous>, transform_indices = @transform_9, window_bounds = array<i64: 1, 256>}, {pipeline_mode = #tpu.pipeline_mode<synchronous>, transform_indices = @transform_10, window_bounds = array<i64: 256, 128>}, {pipeline_mode = #tpu.pipeline_mode<synchronous>, transform_indices = @transform_11, window_bounds = array<i64: 1, 128>}, {pipeline_mode = #tpu.pipeline_mode<synchronous>, transform_indices = @transform_12, window_bounds = array<i64: 128, 128>}, {pipeline_mode = #tpu.pipeline_mode<synchronous>, transform_indices = @transform_13, window_bounds = array<i64: 1, 128>}, {transform_indices = @transform_14, window_bounds = array<i64: 16, 128>}]} {
    %c0 = arith.constant 0 : index
    %c0_0 = arith.constant 0 : index
    %0 = vector.load %arg1[%c0, %c0_0] : memref<16x128xf32, #tpu.memory_space<vmem>>, vector<16x128xf32>
    %1 = arith.truncf %0 : vector<16x128xf32> to vector<16x128xbf16>
    %c0_1 = arith.constant 0 : index
    %c0_2 = arith.constant 0 : index
    %2 = vector.load %arg3[%c0_1, %c0_2] : memref<128x2048xbf16, #tpu.memory_space<vmem>>, vector<128x2048xbf16>
    %cst = arith.constant dense<0.000000e+00> : vector<16x2048xf32>
    %3 = tpu.matmul %1, %2, %cst {dimension_numbers = #tpu.dot_dimension_numbers<[1], [0], [0], [1], [0, 0, 1, 1], [], []>} : vector<16x128xbf16>, vector<128x2048xbf16>, vector<16x2048xf32> -> vector<16x2048xf32>
    %c0_3 = arith.constant 0 : index
    %c0_4 = arith.constant 0 : index
    %4 = vector.load %arg4[%c0_3, %c0_4] : memref<1x2048xf32, #tpu.memory_space<vmem>>, vector<1x2048xf32>
    %5 = vector.broadcast %4 : vector<1x2048xf32> to vector<16x2048xf32>
    %6 = arith.mulf %3, %5 : vector<16x2048xf32>
    %c0_5 = arith.constant 0 : index
    %c0_6 = arith.constant 0 : index
    %7 = vector.load %arg5[%c0_5, %c0_6] : memref<1x2048xf32, #tpu.memory_space<vmem>>, vector<1x2048xf32>
    %8 = vector.broadcast %7 : vector<1x2048xf32> to vector<16x2048xf32>
    %9 = arith.addf %6, %8 : vector<16x2048xf32>
    %cst_7 = arith.constant 0.000000e+00 : f32
    %10 = vector.broadcast %cst_7 : f32 to vector<16x2048xf32>
    %11 = arith.maximumf %9, %10 : vector<16x2048xf32>
    %12 = arith.truncf %11 : vector<16x2048xf32> to vector<16x2048xbf16>
    %c0_8 = arith.constant 0 : index
    %c0_9 = arith.constant 0 : index
    %13 = vector.load %arg6[%c0_8, %c0_9] : memref<2048x8xbf16, #tpu.memory_space<vmem>>, vector<2048x8xbf16>
    %cst_10 = arith.constant dense<0.000000e+00> : vector<16x8xf32>
    %14 = tpu.matmul %12, %13, %cst_10 {dimension_numbers = #tpu.dot_dimension_numbers<[1], [0], [0], [1], [0, 0, 1, 1], [], []>} : vector<16x2048xbf16>, vector<2048x8xbf16>, vector<16x8xf32> -> vector<16x8xf32>
    %c0_11 = arith.constant 0 : index
    %c0_12 = arith.constant 0 : index
    %15 = vector.load %arg2[%c0_11, %c0_12] : memref<16x1xi32, #tpu.memory_space<vmem>>, vector<16x1xi32>
    %c0_13 = arith.constant 0 : index
    %c0_14 = arith.constant 0 : index
    %16 = vector.load %arg7[%c0_13, %c0_14] : memref<4x8xf32, #tpu.memory_space<vmem>>, vector<4x8xf32>
    %c0_i32 = arith.constant 0 : i32
    %17 = vector.broadcast %c0_i32 : i32 to vector<16x1xi32>
    %18 = arith.cmpi eq, %15, %17 : vector<16x1xi32>
    %19 = arith.extui %18 : vector<16x1xi1> to vector<16x1xi32>
    %20 = arith.sitofp %19 : vector<16x1xi32> to vector<16x1xf32>
    %21 = vector.extract_strided_slice %16 {offsets = [0, 0], sizes = [1, 8], strides = [1, 1]} : vector<4x8xf32> to vector<1x8xf32>
    %22 = vector.broadcast %20 : vector<16x1xf32> to vector<16x8xf32>
    %23 = vector.broadcast %21 : vector<1x8xf32> to vector<16x8xf32>
    %24 = arith.mulf %22, %23 : vector<16x8xf32>
    %25 = arith.addf %14, %24 : vector<16x8xf32>
    %c1_i32 = arith.constant 1 : i32
    %26 = vector.broadcast %c1_i32 : i32 to vector<16x1xi32>
    %27 = arith.cmpi eq, %15, %26 : vector<16x1xi32>
    %28 = arith.extui %27 : vector<16x1xi1> to vector<16x1xi32>
    %29 = arith.sitofp %28 : vector<16x1xi32> to vector<16x1xf32>
    %30 = vector.extract_strided_slice %16 {offsets = [1, 0], sizes = [1, 8], strides = [1, 1]} : vector<4x8xf32> to vector<1x8xf32>
    %31 = vector.broadcast %29 : vector<16x1xf32> to vector<16x8xf32>
    %32 = vector.broadcast %30 : vector<1x8xf32> to vector<16x8xf32>
    %33 = arith.mulf %31, %32 : vector<16x8xf32>
    %34 = arith.addf %25, %33 : vector<16x8xf32>
    %c2_i32 = arith.constant 2 : i32
    %35 = vector.broadcast %c2_i32 : i32 to vector<16x1xi32>
    %36 = arith.cmpi eq, %15, %35 : vector<16x1xi32>
    %37 = arith.extui %36 : vector<16x1xi1> to vector<16x1xi32>
    %38 = arith.sitofp %37 : vector<16x1xi32> to vector<16x1xf32>
    %39 = vector.extract_strided_slice %16 {offsets = [2, 0], sizes = [1, 8], strides = [1, 1]} : vector<4x8xf32> to vector<1x8xf32>
    %40 = vector.broadcast %38 : vector<16x1xf32> to vector<16x8xf32>
    %41 = vector.broadcast %39 : vector<1x8xf32> to vector<16x8xf32>
    %42 = arith.mulf %40, %41 : vector<16x8xf32>
    %43 = arith.addf %34, %42 : vector<16x8xf32>
    %c3_i32 = arith.constant 3 : i32
    %44 = vector.broadcast %c3_i32 : i32 to vector<16x1xi32>
    %45 = arith.cmpi eq, %15, %44 : vector<16x1xi32>
    %46 = arith.extui %45 : vector<16x1xi1> to vector<16x1xi32>
    %47 = arith.sitofp %46 : vector<16x1xi32> to vector<16x1xf32>
    %48 = vector.extract_strided_slice %16 {offsets = [3, 0], sizes = [1, 8], strides = [1, 1]} : vector<4x8xf32> to vector<1x8xf32>
    %49 = vector.broadcast %47 : vector<16x1xf32> to vector<16x8xf32>
    %50 = vector.broadcast %48 : vector<1x8xf32> to vector<16x8xf32>
    %51 = arith.mulf %49, %50 : vector<16x8xf32>
    %52 = arith.addf %43, %51 : vector<16x8xf32>
    %cst_15 = arith.constant 0.000000e+00 : f32
    %53 = vector.broadcast %cst_15 : f32 to vector<16x8xf32>
    %54 = arith.maximumf %52, %53 : vector<16x8xf32>
    %55 = arith.truncf %54 : vector<16x8xf32> to vector<16x8xbf16>
    %c0_16 = arith.constant 0 : index
    %c0_17 = arith.constant 0 : index
    %56 = vector.load %arg8[%c0_16, %c0_17] : memref<8x1024xbf16, #tpu.memory_space<vmem>>, vector<8x1024xbf16>
    %cst_18 = arith.constant dense<0.000000e+00> : vector<16x1024xf32>
    %57 = tpu.matmul %55, %56, %cst_18 {dimension_numbers = #tpu.dot_dimension_numbers<[1], [0], [0], [1], [0, 0, 1, 1], [], []>} : vector<16x8xbf16>, vector<8x1024xbf16>, vector<16x1024xf32> -> vector<16x1024xf32>
    %58 = arith.negf %57 : vector<16x1024xf32>
    %59 = math.exp %58 : vector<16x1024xf32>
    %cst_19 = arith.constant 1.000000e+00 : f32
    %60 = vector.broadcast %cst_19 : f32 to vector<16x1024xf32>
    %61 = arith.addf %60, %59 : vector<16x1024xf32>
    %62 = arith.divf %60, %61 : vector<16x1024xf32>
    %63 = vector.extract_strided_slice %11 {offsets = [0, 0], sizes = [16, 1024], strides = [1, 1]} : vector<16x2048xf32> to vector<16x1024xf32>
    %64 = vector.extract_strided_slice %11 {offsets = [0, 1024], sizes = [16, 1024], strides = [1, 1]} : vector<16x2048xf32> to vector<16x1024xf32>
    %65 = arith.maximumf %63, %64 : vector<16x1024xf32>
    %66 = arith.mulf %65, %62 : vector<16x1024xf32>
    %67 = arith.truncf %66 : vector<16x1024xf32> to vector<16x1024xbf16>
    %c0_20 = arith.constant 0 : index
    %c0_21 = arith.constant 0 : index
    %68 = vector.load %arg9[%c0_20, %c0_21] : memref<1024x256xbf16, #tpu.memory_space<vmem>>, vector<1024x256xbf16>
    %cst_22 = arith.constant dense<0.000000e+00> : vector<16x256xf32>
    %69 = tpu.matmul %67, %68, %cst_22 {dimension_numbers = #tpu.dot_dimension_numbers<[1], [0], [0], [1], [0, 0, 1, 1], [], []>} : vector<16x1024xbf16>, vector<1024x256xbf16>, vector<16x256xf32> -> vector<16x256xf32>
    %c0_23 = arith.constant 0 : index
    %c0_24 = arith.constant 0 : index
    %70 = vector.load %arg10[%c0_23, %c0_24] : memref<1x256xf32, #tpu.memory_space<vmem>>, vector<1x256xf32>
    %71 = vector.broadcast %70 : vector<1x256xf32> to vector<16x256xf32>
    %72 = arith.addf %69, %71 : vector<16x256xf32>
    %cst_25 = arith.constant 0.000000e+00 : f32
    %73 = vector.broadcast %cst_25 : f32 to vector<16x256xf32>
    %74 = arith.maximumf %72, %73 : vector<16x256xf32>
    %75 = arith.truncf %74 : vector<16x256xf32> to vector<16x256xbf16>
    %c0_26 = arith.constant 0 : index
    %c0_27 = arith.constant 0 : index
    %76 = vector.load %arg11[%c0_26, %c0_27] : memref<256x128xbf16, #tpu.memory_space<vmem>>, vector<256x128xbf16>
    %cst_28 = arith.constant dense<0.000000e+00> : vector<16x128xf32>
    %77 = tpu.matmul %75, %76, %cst_28 {dimension_numbers = #tpu.dot_dimension_numbers<[1], [0], [0], [1], [0, 0, 1, 1], [], []>} : vector<16x256xbf16>, vector<256x128xbf16>, vector<16x128xf32> -> vector<16x128xf32>
    %c0_29 = arith.constant 0 : index
    %c0_30 = arith.constant 0 : index
    %78 = vector.load %arg12[%c0_29, %c0_30] : memref<1x128xf32, #tpu.memory_space<vmem>>, vector<1x128xf32>
    %79 = vector.broadcast %78 : vector<1x128xf32> to vector<16x128xf32>
    %80 = arith.addf %77, %79 : vector<16x128xf32>
    %cst_31 = arith.constant 0.000000e+00 : f32
    %81 = vector.broadcast %cst_31 : f32 to vector<16x128xf32>
    %82 = arith.maximumf %80, %81 : vector<16x128xf32>
    %83 = arith.truncf %82 : vector<16x128xf32> to vector<16x128xbf16>
    %c0_32 = arith.constant 0 : index
    %c0_33 = arith.constant 0 : index
    %84 = vector.load %arg13[%c0_32, %c0_33] : memref<128x128xbf16, #tpu.memory_space<vmem>>, vector<128x128xbf16>
    %cst_34 = arith.constant dense<0.000000e+00> : vector<16x128xf32>
    %85 = tpu.matmul %83, %84, %cst_34 {dimension_numbers = #tpu.dot_dimension_numbers<[1], [0], [0], [1], [0, 0, 1, 1], [], []>} : vector<16x128xbf16>, vector<128x128xbf16>, vector<16x128xf32> -> vector<16x128xf32>
    %c0_35 = arith.constant 0 : index
    %c0_36 = arith.constant 0 : index
    %86 = vector.load %arg14[%c0_35, %c0_36] : memref<1x128xf32, #tpu.memory_space<vmem>>, vector<1x128xf32>
    %87 = vector.broadcast %86 : vector<1x128xf32> to vector<16x128xf32>
    %88 = arith.addf %85, %87 : vector<16x128xf32>
    %c0_37 = arith.constant 0 : index
    %c0_38 = arith.constant 0 : index
    %89 = vector.load %arg15[%c0_37, %c0_38] : memref<16x128xf32, #tpu.memory_space<vmem>>, vector<16x128xf32>
    tpu.vector_store %arg15[%c0_37, %c0_38], %88 {strides = array<i32>} : memref<16x128xf32, #tpu.memory_space<vmem>>, vector<16x128xf32>,
    return
  }
  func.func @transform_0(%arg0: i32) -> (i32, i32) {
    %c0_i32 = arith.constant 0 : i32
    %c0_i32_0 = arith.constant 0 : i32
    return %arg0, %c0_i32 : i32, i32
  }
  func.func @transform_1(%arg0: i32) -> (i32, i32) {
    %c0_i32 = arith.constant 0 : i32
    %c0_i32_0 = arith.constant 0 : i32
    return %arg0, %c0_i32 : i32, i32
  }
  func.func @transform_2(%arg0: i32) -> (i32, i32) {
    %c0_i32 = arith.constant 0 : i32
    %c0_i32_0 = arith.constant 0 : i32
    %c0_i32_1 = arith.constant 0 : i32
    return %c0_i32, %c0_i32_0 : i32, i32
  }
  func.func @transform_3(%arg0: i32) -> (i32, i32) {
    %c0_i32 = arith.constant 0 : i32
    %c0_i32_0 = arith.constant 0 : i32
    %c0_i32_1 = arith.constant 0 : i32
    return %c0_i32, %c0_i32_0 : i32, i32
  }
  func.func @transform_4(%arg0: i32) -> (i32, i32) {
    %c0_i32 = arith.constant 0 : i32
    %c0_i32_0 = arith.constant 0 : i32
    %c0_i32_1 = arith.constant 0 : i32
    return %c0_i32, %c0_i32_0 : i32, i32
  }
  func.func @transform_5(%arg0: i32) -> (i32, i32) {
    %c0_i32 = arith.constant 0 : i32
    %c0_i32_0 = arith.constant 0 : i32
    %c0_i32_1 = arith.constant 0 : i32
    return %c0_i32, %c0_i32_0 : i32, i32
  }
  func.func @transform_6(%arg0: i32) -> (i32, i32) {
    %c0_i32 = arith.constant 0 : i32
    %c0_i32_0 = arith.constant 0 : i32
    %c0_i32_1 = arith.constant 0 : i32
    return %c0_i32, %c0_i32_0 : i32, i32
  }
  func.func @transform_7(%arg0: i32) -> (i32, i32) {
    %c0_i32 = arith.constant 0 : i32
    %c0_i32_0 = arith.constant 0 : i32
    %c0_i32_1 = arith.constant 0 : i32
    return %c0_i32, %c0_i32_0 : i32, i32
  }
  func.func @transform_8(%arg0: i32) -> (i32, i32) {
    %c0_i32 = arith.constant 0 : i32
    %c0_i32_0 = arith.constant 0 : i32
    %c0_i32_1 = arith.constant 0 : i32
    return %c0_i32, %c0_i32_0 : i32, i32
  }
  func.func @transform_9(%arg0: i32) -> (i32, i32) {
    %c0_i32 = arith.constant 0 : i32
    %c0_i32_0 = arith.constant 0 : i32
    %c0_i32_1 = arith.constant 0 : i32
    return %c0_i32, %c0_i32_0 : i32, i32
  }
  func.func @transform_10(%arg0: i32) -> (i32, i32) {
    %c0_i32 = arith.constant 0 : i32
    %c0_i32_0 = arith.constant 0 : i32
    %c0_i32_1 = arith.constant 0 : i32
    return %c0_i32, %c0_i32_0 : i32, i32
  }
  func.func @transform_11(%arg0: i32) -> (i32, i32) {
    %c0_i32 = arith.constant 0 : i32
    %c0_i32_0 = arith.constant 0 : i32
    %c0_i32_1 = arith.constant 0 : i32
    return %c0_i32, %c0_i32_0 : i32, i32
  }
  func.func @transform_12(%arg0: i32) -> (i32, i32) {
    %c0_i32 = arith.constant 0 : i32
    %c0_i32_0 = arith.constant 0 : i32
    %c0_i32_1 = arith.constant 0 : i32
    return %c0_i32, %c0_i32_0 : i32, i32
  }
  func.func @transform_13(%arg0: i32) -> (i32, i32) {
    %c0_i32 = arith.constant 0 : i32
    %c0_i32_0 = arith.constant 0 : i32
    %c0_i32_1 = arith.constant 0 : i32
    return %c0_i32, %c0_i32_0 : i32, i32
  }
  func.func @transform_14(%arg0: i32) -> (i32, i32) {
    %c0_i32 = arith.constant 0 : i32
    %c0_i32_0 = arith.constant 0 : i32
    return %arg0, %c0_i32 : i32, i32
  }
}

</mosaic_0001>

<bundles_post_ra>
// kernel: mtcnn_condse_forward.1
= control target key start
LH: loop header
LB: loop body
LE: loop exit
PB: predicated region body
PF: predicated region fallthrough
CT: control target
= control target key end

     0   :  { %s9465_s0 = inlined_call_operand.vmem [shape: f32[32,128], index: 0, kind: input, shape index: {}]   ;;  %s9466_s1 = inlined_call_operand.vmem [shape: s32[32,1], index: 1, kind: input, shape index: {}]   ;;  %s9467_s2 = inlined_call_operand.vmem [shape: bf16[128,2048], index: 2, kind: input, shape index: {}]   ;;  %s9468_s3 = inlined_call_operand.hbm [shape: f32[1,2048], index: 3, kind: input, shape index: {}]   ;;  %s9469_s4 = inlined_call_operand.hbm [shape: f32[1,2048], index: 4, kind: input, shape index: {}]   ;;  %s9470_s5 = inlined_call_operand.vmem [shape: bf16[2048,8], index: 5, kind: input, shape index: {}]   ;;  %s9471_s6 = inlined_call_operand.vmem [shape: f32[4,8], index: 6, kind: input, shape index: {}]   ;;  %s9472_s7 = inlined_call_operand.vmem [shape: bf16[8,1024], index: 7, kind: input, shape index: {}]   ;;  %s9473_s8 = inlined_call_operand.hbm [shape: bf16[1024,256], index: 8, kind: input, shape index: {}]   ;;  %s9474_s9 = inlined_call_operand.vmem [shape: f32[1,256], index: 9, kind: input, shape index: {}]   ;;  %s9475_s10 = inlined_call_operand.vmem [shape: bf16[256,128], index: 10, kind: input, shape index: {}]   ;;  %s9476_s11 = inlined_call_operand.vmem [shape: f32[1,128], index: 11, kind: input, shape index: {}]   ;;  %s9477_s12 = inlined_call_operand.hbm [shape: bf16[128,128], index: 12, kind: input, shape index: {}]   ;;  %s9478_s13 = inlined_call_operand.vmem [shape: f32[1,128], index: 13, kind: input, shape index: {}]   ;;  %s9479_s14 = inlined_call_operand.vmem [shape: f32[32,128], index: 14, kind: output, shape index: {}]  }
   0x1   :  { %9485 = sst [smem:[#allocation21_spill]] %s9468_s3 }
   0x2   :  { %9486 = sst [smem:[#allocation22_spill]] %s9469_s4 }
   0x3   :  { %9487 = sst [smem:[#allocation23_spill]] %s9473_s8 }
   0x4   :  { %9488 = sst [smem:[#allocation24_spill]] %s9479_s14 }
   0x5   :  { %19 = vsyncpa [#allocation3], 0 }
   0x6   :  { %20 = vsyncpa [#allocation5], 0 }
   0x7   :  { %21 = vsyncpa [#allocation8], 0  ;;  %s7402_s29 = smov 0  }
   0x8 LB: > { %s9489_s4 = sld [smem:[#allocation22_spill]]  ;;  %s9480_s17 = sadd.s32 4294967295, %s7315_s29   ;;  %s7315_s29 = sphi %s7402_s29, %s27_s29  }
   0x9   : > { %p4943_p0 = scmp.ge.s32.totalorder %s7315_s29, 1  ;;  %p362_p1 = scmp.lt.s32.totalorder %s7315_s29, 3 }
   0xa   : > { %p7415_p2 = scmp.eq.s32.totalorder %s9480_s17, 0  ;;  %s7317_s20 = smov [#allocation4]  }
   0xb   : > { %p7419_p3 = pnand %p4943_p0, %p362_p1  ;;  %s391_s21 = sshll.u32 %s7317_s20, 4  ;;  %s392_s21 = int_to_ptr.vmem [resolvable:$true] %s391_s21 }
   0xc   : > { %s9492_s3 = sld [smem:[#allocation21_spill]]  ;;  %s7318_s30 = smov [#allocation2]  }
   0xd   : > { %p7050_p4 = pneg %p7419_p3  ;;  %s9493_s8 = sld [smem:[#allocation23_spill]] }
   0xe   : > { %s389_s16 = sshll.u32 %s9489_s4, 4  ;;  %s379_s15 = sshll.u32 %s7318_s30, 4  ;;  %s390_s16 = int_to_ptr.hbm [resolvable:$true] %s389_s16  ;;  %s380_s15 = int_to_ptr.vmem [resolvable:$true] %s379_s15 }
   0xf   : > { %p7433_p5 = pnand %p7415_p2, %p7050_p4  ;;  %s7319_s20 = smov [#allocation6]  }
  0x10   : > { %s411_s22 = sshll.u32 %s7319_s20, 4  ;;  %s7320_s23 = smov 128   ;;  %s412_s22 = int_to_ptr.vmem [resolvable:$true] %s411_s22 }
  0x11   : > { %7056 = dma.hbm_to_vmem [thread:$0]  (!%p7433_p5), %s390_s16, 256, %s392_s21, [#allocation5]  }
  0x12   : > { %s377_s24 = sshll.u32 %s9492_s3, 4  ;;  %s7321_s25 = smov 8   ;;  %s378_s24 = int_to_ptr.hbm [resolvable:$true] %s377_s24 }
  0x13   : > { %s409_s27 = sshll.u32 %s9493_s8, 4  ;;  %s432_s3 = sshll.u32 %s9477_s12, 4  ;;  %s410_s27 = int_to_ptr.hbm [resolvable:$true] %s409_s27  ;;  %s433_s3 = int_to_ptr.hbm [resolvable:$true] %s432_s3 }
  0x14   : > { %7053 = dma.hbm_to_vmem [thread:$0]  (!%p7433_p5), %s378_s24, 256, %s380_s15, [#allocation3]  }
  0x15   : > { %7059 = dma.hbm_to_vmem [thread:$0]  (!%p7433_p5), %s410_s27, 16384, %s412_s22, [#allocation5], %s7320_s23, %s7320_s23, %s7321_s25  }
  0x16   : > { %s7322_s30 = smov [#allocation7]   ;;  %s7323_s8 = smov 64  }
  0x17   : > { %s434_s4 = sshll.u32 %s7322_s30, 4  ;;  %s7324_s14 = smov 4   ;;  %s435_s4 = int_to_ptr.vmem [resolvable:$true] %s434_s4 }
  0x18   : > { %7062 = dma.hbm_to_vmem [thread:$0]  (!%p7433_p5), %s433_s3, 1024, %s435_s4, [#allocation8], %s7323_s8, %s7323_s8, %s7324_s14  }
  0x19   : > { %471 = sbr.rel (%p7419_p3) target bundleno = 1174 (0x496), region = 76 }
  0x1e   : > { %7302 = dma.done.wait (%p7415_p2), [#allocation3], 256  }
  0x1f   : > { %7304 = vsyncadd (%p7415_p2), [#allocation3], 4294967040 }
  0x20   : > { %7306 = dma.done.wait (%p7415_p2), [#allocation5], 16640  }
  0x21   : > { %7308 = vsyncadd (%p7415_p2), [#allocation5], 4294950656 }
  0x22   : > { %7310 = dma.done.wait (%p7415_p2), [#allocation8], 1024  }
  0x23   : > { %7312 = vsyncadd (%p7415_p2), [#allocation8], 4294966272  ;;  %v5410_v0 = vld [vmem:[%s9467_s2 + $0x380] sm:$0xf]  ;;  %v6738_v2 = vld [vmem:[%s9467_s2 + $0x384] sm:$0xf] }
  0x24   : > { %v6746_v1 = vld [vmem:[%s9467_s2 + $0x3bc] sm:$0xf0]  ;;  %v5412_v4 = vld [vmem:[%s9467_s2 + $0x3c0] sm:$0xf0]  ;;  %v5418_v5 = vld [vmem:[%s9467_s2 + $0x388] sm:$0xf] }
  0x25   : > { %v5411_v3 = vor.u32 %v6746_v1, %v5410_v0  ;;  %v6747_v6 = vld [vmem:[%s9467_s2 + $0x3c4] sm:$0xf0]  ;;  %v5415_v7 = vor.u32 %v6738_v2, %v5412_v4  ;;  %v6739_v9 = vld [vmem:[%s9467_s2 + $0x38c] sm:$0xf]  ;;  %v5346_v11 = vld [vmem:[%s9467_s2 + $0x300] sm:$0xf] }
  0x26   : > { %v5419_v8 = vor.u32 %v6747_v6, %v5418_v5  ;;  %v5420_v10 = vld [vmem:[%s9467_s2 + $0x3c8] sm:$0xf0]  ;;  %v6730_v13 = vld [vmem:[%s9467_s2 + $0x33c] sm:$0xf0]  ;;  %v6722_v14 = vld [vmem:[%s9467_s2 + $0x304] sm:$0xf] }
  0x27   : > { %1328 = vmatpush.bf16.msra.mxu0 %v5411_v3  ;;  %v5423_v12 = vor.u32 %v6739_v9, %v5420_v10  ;;  %v5348_v15 = vld [vmem:[%s9467_s2 + $0x340] sm:$0xf0]  ;;  %1342 = vmatpush.bf16.msra.mxu1 %v5415_v7  ;;  %v5347_v16 = vor.u32 %v6730_v13, %v5346_v11  ;;  %v5354_v18 = vld [vmem:[%s9467_s2 + $0x308] sm:$0xf]  ;;  %v6723_v20 = vld [vmem:[%s9467_s2 + $0x30c] sm:$0xf] }
  0x28   : > { %1356 = vmatpush.bf16.msra.mxu2 %v5419_v8  ;;  %v5351_v17 = vor.u32 %v6722_v14, %v5348_v15  ;;  %v6731_v19 = vld [vmem:[%s9467_s2 + $0x344] sm:$0xf0]  ;;  %v5356_v22 = vld [vmem:[%s9467_s2 + $0x348] sm:$0xf0]  ;;  %v5282_v23 = vld [vmem:[%s9467_s2 + $0x280] sm:$0xf] }
  0x29   : > { %1370 = vmatpush.bf16.msra.mxu3 %v5423_v12  ;;  %v5355_v21 = vor.u32 %v6731_v19, %v5354_v18  ;;  %v6714_v24 = vld [vmem:[%s9467_s2 + $0x2bc] sm:$0xf0]  ;;  %v5359_v25 = vor.u32 %v6723_v20, %v5356_v22  ;;  %v6706_v26 = vld [vmem:[%s9467_s2 + $0x284] sm:$0xf]  ;;  %v5290_v28 = vld [vmem:[%s9467_s2 + $0x288] sm:$0xf] }
  0x2a   : > { %v5284_v27 = vld [vmem:[%s9467_s2 + $0x2c0] sm:$0xf0]  ;;  %v5283_v29 = vor.u32 %v6714_v24, %v5282_v23  ;;  %v6715_v30 = vld [vmem:[%s9467_s2 + $0x2c4] sm:$0xf0]  ;;  %v6707_v31 = vld [vmem:[%s9467_s2 + $0x28c] sm:$0xf] }
  0x2b   : > { %1329 = vmatpush.bf16.msra.mxu0 %v5347_v16  ;;  %v5292_v32 = vld [vmem:[%s9467_s2 + $0x2c8] sm:$0xf0]  ;;  %1343 = vmatpush.bf16.msra.mxu1 %v5351_v17  ;;  %v5287_v33 = vor.u32 %v6706_v26, %v5284_v27  ;;  %v5291_v34 = vor.u32 %v6715_v30, %v5290_v28  ;;  %v5218_v35 = vld [vmem:[%s9467_s2 + $0x200] sm:$0xf]  ;;  %v6690_v37 = vld [vmem:[%s9467_s2 + $0x204] sm:$0xf] }
  0x2c   : > { %1357 = vmatpush.bf16.msra.mxu2 %v5355_v21  ;;  %v6698_v36 = vld [vmem:[%s9467_s2 + $0x23c] sm:$0xf0]  ;;  %v5295_v38 = vor.u32 %v6707_v31, %v5292_v32  ;;  %v5220_v39 = vld [vmem:[%s9467_s2 + $0x240] sm:$0xf0]  ;;  %v5226_v40 = vld [vmem:[%s9467_s2 + $0x208] sm:$0xf] }
  0x2d   : > { %1371 = vmatpush.bf16.msra.mxu3 %v5359_v25  ;;  %v6699_v41 = vld [vmem:[%s9467_s2 + $0x244] sm:$0xf0]  ;;  %v6691_v42 = vld [vmem:[%s9467_s2 + $0x20c] sm:$0xf]  ;;  %v5219_v44 = vor.u32 %v6698_v36, %v5218_v35  ;;  %s9495_s21 = sadd.s32 4294967295, %s7315_s29   ;;  %v5223_v45 = vor.u32 %v6690_v37, %v5220_v39  ;;  %vm3100_vm8 = vcmask 1043456  }
  0x2e   : > { %v5228_v43 = vld [vmem:[%s9467_s2 + $0x248] sm:$0xf0]  ;;  %s7560_s24 = sshll.u32 %s9495_s21, 1  ;;  %v5227_v46 = vor.u32 %v6699_v41, %v5226_v40  ;;  %v5154_v47 = vld [vmem:[%s9467_s2 + $0x180] sm:$0xf]  ;;  %vm3096_vm9 = vcmask 64512  }
  0x2f   : > { %1330 = vmatpush.bf16.msra.mxu0 %v5283_v29  ;;  %1344 = vmatpush.bf16.msra.mxu1 %v5287_v33  ;;  %v6682_v48 = vld [vmem:[%s9467_s2 + $0x1bc] sm:$0xf0]  ;;  %v6674_v49 = vld [vmem:[%s9467_s2 + $0x184] sm:$0xf]  ;;  %v5231_v50 = vor.u32 %v6691_v42, %v5228_v43  ;;  %v5162_v52 = vld [vmem:[%s9467_s2 + $0x188] sm:$0xf] }
  0x30   : > { %1358 = vmatpush.bf16.msra.mxu2 %v5291_v34  ;;  %v5156_v51 = vld [vmem:[%s9467_s2 + $0x1c0] sm:$0xf0]  ;;  %v6683_v53 = vld [vmem:[%s9467_s2 + $0x1c4] sm:$0xf0]  ;;  %v6675_v54 = vld [vmem:[%s9467_s2 + $0x18c] sm:$0xf]  ;;  %v5155_v56 = vor.u32 %v6682_v48, %v5154_v47 }
  0x31   : > { %1372 = vmatpush.bf16.msra.mxu3 %v5295_v38  ;;  %v5164_v55 = vld [vmem:[%s9467_s2 + $0x1c8] sm:$0xf0]  ;;  %p539_p6 = scmp.lt.s32.totalorder %s7560_s24, 3  ;;  %v5159_v57 = vor.u32 %v6674_v49, %v5156_v51  ;;  %v5163_v58 = vor.u32 %v6683_v53, %v5162_v52  ;;  %v5090_v59 = vld [vmem:[%s9467_s2 + $0x100] sm:$0xf] }
  0x32   : > { %v6666_v60 = vld [vmem:[%s9467_s2 + $0x13c] sm:$0xf0]  ;;  %v6658_v61 = vld [vmem:[%s9467_s2 + $0x104] sm:$0xf]  ;;  %v5167_v62 = vor.u32 %v6675_v54, %v5164_v55  ;;  %v5098_v0 = vld [vmem:[%s9467_s2 + $0x108] sm:$0xf] }
  0x33   : > { %1331 = vmatpush.bf16.msra.mxu0 %v5219_v44  ;;  %1345 = vmatpush.bf16.msra.mxu1 %v5223_v45  ;;  %v5092_v63 = vld [vmem:[%s9467_s2 + $0x140] sm:$0xf0]  ;;  %v6667_v1 = vld [vmem:[%s9467_s2 + $0x144] sm:$0xf0]  ;;  %v6659_v2 = vld [vmem:[%s9467_s2 + $0x10c] sm:$0xf]  ;;  %v5091_v4 = vor.u32 %v6666_v60, %v5090_v59 }
  0x34   : > { %1359 = vmatpush.bf16.msra.mxu2 %v5227_v46  ;;  %v5100_v3 = vld [vmem:[%s9467_s2 + $0x148] sm:$0xf0]  ;;  %s9561_s24 = smov (!%p539_p6, %s7560_s24), 3  ;;  %v5095_v5 = vor.u32 %v6658_v61, %v5092_v63  ;;  %v5099_v6 = vor.u32 %v6667_v1, %v5098_v0  ;;  %v5026_v7 = vld [vmem:[%s9467_s2 + $0x80] sm:$0xf] }
  0x35   : > { %1373 = vmatpush.bf16.msra.mxu3 %v5231_v50  ;;  %v6650_v8 = vld [vmem:[%s9467_s2 + $0xbc] sm:$0xf0]  ;;  %v6642_v9 = vld [vmem:[%s9467_s2 + $0x84] sm:$0xf]  ;;  %v5103_v10 = vor.u32 %v6659_v2, %v5100_v3  ;;  %v5034_v12 = vld [vmem:[%s9467_s2 + $0x88] sm:$0xf] }
  0x36   : > { %v5028_v11 = vld [vmem:[%s9467_s2 + $0xc0] sm:$0xf0]  ;;  %v6651_v13 = vld [vmem:[%s9467_s2 + $0xc4] sm:$0xf0]  ;;  %v6643_v14 = vld [vmem:[%s9467_s2 + $0x8c] sm:$0xf]  ;;  %v5027_v16 = vor.u32 %v6650_v8, %v5026_v7 }
  0x37   : > { %1332 = vmatpush.bf16.msra.mxu0 %v5155_v56  ;;  %1346 = vmatpush.bf16.msra.mxu1 %v5159_v57  ;;  %v5036_v15 = vld [vmem:[%s9467_s2 + $0xc8] sm:$0xf0]  ;;  %v4962_v17 = vld [vmem:[%s9467_s2] sm:$0xf]  ;;  %s7644_s19 = sshll.u32 %s9561_s24, 3  ;;  %v5031_v19 = vor.u32 %v6642_v9, %v5028_v11  ;;  %v5035_v20 = vor.u32 %v6651_v13, %v5034_v12  ;;  %s9559_s24 = sld [smem:[#allocation24_spill]] }
  0x38   : > { %1360 = vmatpush.bf16.msra.mxu2 %v5163_v58  ;;  %v6634_v18 = vld [vmem:[%s9467_s2 + $0x3c] sm:$0xf0]  ;;  %v6626_v21 = vld [vmem:[%s9467_s2 + $0x4] sm:$0xf]  ;;  %v4970_v23 = vld [vmem:[%s9467_s2 + $0x8] sm:$0xf]  ;;  %v5039_v24 = vor.u32 %v6643_v14, %v5036_v15  ;;  %s542_s8 = scalar_lea.vmem %s9465_s0, %s7644_s19  ;;  %s548_s16 = scalar_lea.vmem %s9466_s1, %s7644_s19 }
  0x39   : > { %1374 = vmatpush.bf16.msra.mxu3 %v5167_v62  ;;  %v4964_v22 = vld [vmem:[%s9467_s2 + $0x40] sm:$0xf0]  ;;  %v6635_v25 = vld [vmem:[%s9467_s2 + $0x44] sm:$0xf0]  ;;  %v6627_v26 = vld [vmem:[%s9467_s2 + $0xc] sm:$0xf]  ;;  %v4963_v31 = vor.u32 %v6634_v18, %v4962_v17 }
  0x3a   : > { %v4972_v27 = vld [vmem:[%s9467_s2 + $0x48] sm:$0xf0]  ;;  %v5426_v28 = vld [vmem:[%s9467_s2 + $0x390] sm:$0xf]  ;;  %v6740_v30 = vld [vmem:[%s9467_s2 + $0x394] sm:$0xf]  ;;  %v4967_v35 = vor.u32 %v6626_v21, %v4964_v22  ;;  %v4971_v36 = vor.u32 %v6635_v25, %v4970_v23 }
  0x3b   : > { %1333 = vmatpush.bf16.msra.mxu0 %v5091_v4  ;;  %1347 = vmatpush.bf16.msra.mxu1 %v5095_v5  ;;  %v6748_v29 = vld [vmem:[%s9467_s2 + $0x3cc] sm:$0xf0]  ;;  %v5428_v32 = vld [vmem:[%s9467_s2 + $0x3d0] sm:$0xf0]  ;;  %v5434_v33 = vld [vmem:[%s9467_s2 + $0x398] sm:$0xf]  ;;  %v4975_v39 = vor.u32 %v6627_v26, %v4972_v27 }
  0x3c   : > { %1361 = vmatpush.bf16.msra.mxu2 %v5099_v6  ;;  %v6749_v34 = vld [vmem:[%s9467_s2 + $0x3d4] sm:$0xf0]  ;;  %v6741_v37 = vld [vmem:[%s9467_s2 + $0x39c] sm:$0xf]  ;;  %v5427_v40 = vor.u32 %v6748_v29, %v5426_v28  ;;  %v5362_v41 = vld [vmem:[%s9467_s2 + $0x310] sm:$0xf]  ;;  %v5431_v42 = vor.u32 %v6740_v30, %v5428_v32 }
  0x3d   : > { %1375 = vmatpush.bf16.msra.mxu3 %v5103_v10  ;;  %v5436_v38 = vld [vmem:[%s9467_s2 + $0x3d8] sm:$0xf0]  ;;  %v5435_v43 = vor.u32 %v6749_v34, %v5434_v33  ;;  %v6732_v44 = vld [vmem:[%s9467_s2 + $0x34c] sm:$0xf0]  ;;  %v6724_v45 = vld [vmem:[%s9467_s2 + $0x314] sm:$0xf]  ;;  %s554_s22 = scalar_lea.vmem %s9559_s24, %s7644_s19 }
  0x3e   : > { %v5364_v46 = vld [vmem:[%s9467_s2 + $0x350] sm:$0xf0]  ;;  %v5439_v47 = vor.u32 %v6741_v37, %v5436_v38  ;;  %v5370_v48 = vld [vmem:[%s9467_s2 + $0x318] sm:$0xf]  ;;  %v6725_v50 = vld [vmem:[%s9467_s2 + $0x31c] sm:$0xf]  ;;  %v5363_v54 = vor.u32 %v6732_v44, %v5362_v41 }
  0x3f   : > { %1334 = vmatpush.bf16.msra.mxu0 %v5027_v16  ;;  %1348 = vmatpush.bf16.msra.mxu1 %v5031_v19  ;;  %v6733_v49 = vld [vmem:[%s9467_s2 + $0x354] sm:$0xf0]  ;;  %v5372_v51 = vld [vmem:[%s9467_s2 + $0x358] sm:$0xf0]  ;;  %v557_v52 = vld [vmem:[%s542_s8] sm:$0xff]  ;;  %v5367_v56 = vor.u32 %v6724_v45, %v5364_v46 }
  0x40   : > { %1362 = vmatpush.bf16.msra.mxu2 %v5035_v20  ;;  %v558_v53 = vld [vmem:[%s542_s8 + $0x8] sm:$0xff]  ;;  %v5371_v57 = vor.u32 %v6733_v49, %v5370_v48  ;;  %v5298_v58 = vld [vmem:[%s9467_s2 + $0x290] sm:$0xf]  ;;  %v6708_v60 = vld [vmem:[%s9467_s2 + $0x294] sm:$0xf]  ;;  %v5375_v61 = vor.u32 %v6725_v50, %v5372_v51 }
  0x41   : > { %1376 = vmatpush.bf16.msra.mxu3 %v5039_v24  ;;  %v7716_v55 = vpack.c.bf16 %v558_v53, %v557_v52  ;;  %v6716_v59 = vld [vmem:[%s9467_s2 + $0x2cc] sm:$0xf0]  ;;  %v5300_v62 = vld [vmem:[%s9467_s2 + $0x2d0] sm:$0xf0]  ;;  %v5306_v63 = vld [vmem:[%s9467_s2 + $0x298] sm:$0xf] }
  0x42   : > { %v6717_v0 = vld [vmem:[%s9467_s2 + $0x2d4] sm:$0xf0]  ;;  %v6709_v1 = vld [vmem:[%s9467_s2 + $0x29c] sm:$0xf]  ;;  %v5299_v3 = vor.u32 %v6716_v59, %v5298_v58  ;;  %v5303_v4 = vor.u32 %v6708_v60, %v5300_v62  ;;  %v5234_v6 = vld [vmem:[%s9467_s2 + $0x210] sm:$0xf] }
  0x43   : > { %1335 = vmatpush.bf16.msra.mxu0 %v4963_v31  ;;  %1349 = vmatpush.bf16.msra.mxu1 %v4967_v35  ;;  %v5308_v2 = vld [vmem:[%s9467_s2 + $0x2d8] sm:$0xf0]  ;;  %v5307_v5 = vor.u32 %v6717_v0, %v5306_v63  ;;  %v6700_v7 = vld [vmem:[%s9467_s2 + $0x24c] sm:$0xf0]  ;;  %v6692_v8 = vld [vmem:[%s9467_s2 + $0x214] sm:$0xf] }
  0x44   : > { %1363 = vmatpush.bf16.msra.mxu2 %v4971_v36  ;;  %v5311_v9 = vor.u32 %v6709_v1, %v5308_v2  ;;  %v5236_v10 = vld [vmem:[%s9467_s2 + $0x250] sm:$0xf0]  ;;  %v5242_v11 = vld [vmem:[%s9467_s2 + $0x218] sm:$0xf]  ;;  %v6693_v13 = vld [vmem:[%s9467_s2 + $0x21c] sm:$0xf]  ;;  %v5235_v15 = vor.u32 %v6700_v7, %v5234_v6 }
  0x45   : > { %1377 = vmatpush.bf16.msra.mxu3 %v4975_v39  ;;  %v6701_v12 = vld [vmem:[%s9467_s2 + $0x254] sm:$0xf0]  ;;  %v5244_v14 = vld [vmem:[%s9467_s2 + $0x258] sm:$0xf0]  ;;  %v5239_v16 = vor.u32 %v6692_v8, %v5236_v10  ;;  %v5170_v18 = vld [vmem:[%s9467_s2 + $0x190] sm:$0xf] }
  0x46   : > { %1336 = vmatmul.bf16.vlgmr.msra.gmra.mxu0 %v7716_v55  ;;  %1350 = vmatmul.bf16.vlgmr.msra.gmra.mxu1 %v7716_v55  ;;  %v5243_v17 = vor.u32 %v6701_v12, %v5242_v11  ;;  %v6684_v19 = vld [vmem:[%s9467_s2 + $0x1cc] sm:$0xf0]  ;;  %v6676_v20 = vld [vmem:[%s9467_s2 + $0x194] sm:$0xf]  ;;  %v5247_v21 = vor.u32 %v6693_v13, %v5244_v14  ;;  %v5178_v23 = vld [vmem:[%s9467_s2 + $0x198] sm:$0xf] }
  0x47   : > { %1384 = vmatpush.bf16.msrb.mxu0 %v5427_v40  ;;  %1398 = vmatpush.bf16.msrb.mxu1 %v5431_v42  ;;  %v5172_v22 = vld [vmem:[%s9467_s2 + $0x1d0] sm:$0xf0]  ;;  %v6685_v24 = vld [vmem:[%s9467_s2 + $0x1d4] sm:$0xf0]  ;;  %v6677_v25 = vld [vmem:[%s9467_s2 + $0x19c] sm:$0xf]  ;;  %v5171_v27 = vor.u32 %v6684_v19, %v5170_v18 }
  0x48   : > { %1412 = vmatpush.bf16.msrb.mxu2 %v5435_v43  ;;  %1378 = vmatmul.bf16.vlgmr.msra.gmra.mxu3 %v7716_v55  ;;  %v5180_v26 = vld [vmem:[%s9467_s2 + $0x1d8] sm:$0xf0]  ;;  %v5175_v28 = vor.u32 %v6676_v20, %v5172_v22  ;;  %v5179_v29 = vor.u32 %v6685_v24, %v5178_v23  ;;  %v5106_v30 = vld [vmem:[%s9467_s2 + $0x110] sm:$0xf]  ;;  %v6660_v32 = vld [vmem:[%s9467_s2 + $0x114] sm:$0xf] }
  0x49   : > { %1426 = vmatpush.bf16.msrb.mxu3 %v5439_v47  ;;  %1364 = vmatmul.bf16.vlgmr.msra.gmra.mxu2 %v7716_v55  ;;  %v6668_v31 = vld [vmem:[%s9467_s2 + $0x14c] sm:$0xf0]  ;;  %v5183_v33 = vor.u32 %v6677_v25, %v5180_v26  ;;  %v5108_v34 = vld [vmem:[%s9467_s2 + $0x150] sm:$0xf0]  ;;  %v5114_v35 = vld [vmem:[%s9467_s2 + $0x118] sm:$0xf] }
  0x4a   : > { %v6669_v36 = vld [vmem:[%s9467_s2 + $0x154] sm:$0xf0]  ;;  %v6661_v37 = vld [vmem:[%s9467_s2 + $0x11c] sm:$0xf]  ;;  %v5107_v39 = vor.u32 %v6668_v31, %v5106_v30  ;;  %v5111_v40 = vor.u32 %v6660_v32, %v5108_v34  ;;  %v5042_v42 = vld [vmem:[%s9467_s2 + $0x90] sm:$0xf] }
  0x4b   : > { %1385 = vmatpush.bf16.msrb.mxu0 %v5363_v54  ;;  %1399 = vmatpush.bf16.msrb.mxu1 %v5367_v56  ;;  %v5116_v38 = vld [vmem:[%s9467_s2 + $0x158] sm:$0xf0]  ;;  %v5115_v41 = vor.u32 %v6669_v36, %v5114_v35  ;;  %v6652_v43 = vld [vmem:[%s9467_s2 + $0xcc] sm:$0xf0]  ;;  %v6644_v44 = vld [vmem:[%s9467_s2 + $0x94] sm:$0xf] }
  0x4c   : > { %1413 = vmatpush.bf16.msrb.mxu2 %v5371_v57  ;;  %v5119_v45 = vor.u32 %v6661_v37, %v5116_v38  ;;  %v5044_v46 = vld [vmem:[%s9467_s2 + $0xd0] sm:$0xf0]  ;;  %v5050_v47 = vld [vmem:[%s9467_s2 + $0x98] sm:$0xf]  ;;  %v6645_v49 = vld [vmem:[%s9467_s2 + $0x9c] sm:$0xf]  ;;  %v5043_v51 = vor.u32 %v6652_v43, %v5042_v42 }
  0x4d   : > { %1427 = vmatpush.bf16.msrb.mxu3 %v5375_v61  ;;  %v6653_v48 = vld [vmem:[%s9467_s2 + $0xd4] sm:$0xf0]  ;;  %v5052_v50 = vld [vmem:[%s9467_s2 + $0xd8] sm:$0xf0]  ;;  %v4978_v52 = vld [vmem:[%s9467_s2 + $0x10] sm:$0xf]  ;;  %v5047_v54 = vor.u32 %v6644_v44, %v5044_v46 }
  0x4e   : > { %v6636_v53 = vld [vmem:[%s9467_s2 + $0x4c] sm:$0xf0]  ;;  %v5051_v56 = vor.u32 %v6653_v48, %v5050_v47  ;;  %v6628_v57 = vld [vmem:[%s9467_s2 + $0x14] sm:$0xf]  ;;  %v4986_v59 = vld [vmem:[%s9467_s2 + $0x18] sm:$0xf]  ;;  %v5055_v60 = vor.u32 %v6645_v49, %v5052_v50 }
  0x4f   : > { %1386 = vmatpush.bf16.msrb.mxu0 %v5299_v3  ;;  %1400 = vmatpush.bf16.msrb.mxu1 %v5303_v4  ;;  %v4980_v58 = vld [vmem:[%s9467_s2 + $0x50] sm:$0xf0]  ;;  %v6637_v61 = vld [vmem:[%s9467_s2 + $0x54] sm:$0xf0]  ;;  %v6629_v62 = vld [vmem:[%s9467_s2 + $0x1c] sm:$0xf]  ;;  %v4979_v3 = vor.u32 %v6636_v53, %v4978_v52 }
  0x50   : > { %1414 = vmatpush.bf16.msrb.mxu2 %v5307_v5  ;;  %v4988_v63 = vld [vmem:[%s9467_s2 + $0x58] sm:$0xf0]  ;;  %v5442_v0 = vld [vmem:[%s9467_s2 + $0x3a0] sm:$0xf]  ;;  %v6742_v2 = vld [vmem:[%s9467_s2 + $0x3a4] sm:$0xf]  ;;  %v4983_v7 = vor.u32 %v6628_v57, %v4980_v58  ;;  %v4987_v8 = vor.u32 %v6637_v61, %v4986_v59 }
  0x51   : > { %1428 = vmatpush.bf16.msrb.mxu3 %v5311_v9  ;;  %v6750_v1 = vld [vmem:[%s9467_s2 + $0x3dc] sm:$0xf0]  ;;  %v5444_v4 = vld [vmem:[%s9467_s2 + $0x3e0] sm:$0xf0]  ;;  %v5450_v5 = vld [vmem:[%s9467_s2 + $0x3a8] sm:$0xf]  ;;  %v4991_v11 = vor.u32 %v6629_v62, %v4988_v63 }
  0x52   : > { %v6751_v6 = vld [vmem:[%s9467_s2 + $0x3e4] sm:$0xf0]  ;;  %v6743_v9 = vld [vmem:[%s9467_s2 + $0x3ac] sm:$0xf]  ;;  %v5443_v12 = vor.u32 %v6750_v1, %v5442_v0  ;;  %v5447_v13 = vor.u32 %v6742_v2, %v5444_v4  ;;  %v5380_v19 = vld [vmem:[%s9467_s2 + $0x360] sm:$0xf0] }
  0x53   : > { %1387 = vmatpush.bf16.msrb.mxu0 %v5235_v15  ;;  %1401 = vmatpush.bf16.msrb.mxu1 %v5239_v16  ;;  %v5452_v10 = vld [vmem:[%s9467_s2 + $0x3e8] sm:$0xf0]  ;;  %v5451_v14 = vor.u32 %v6751_v6, %v5450_v5  ;;  %v5378_v15 = vld [vmem:[%s9467_s2 + $0x320] sm:$0xf]  ;;  %v5386_v20 = vld [vmem:[%s9467_s2 + $0x328] sm:$0xf] }
  0x54   : > { %1415 = vmatpush.bf16.msrb.mxu2 %v5243_v17  ;;  %v6734_v16 = vld [vmem:[%s9467_s2 + $0x35c] sm:$0xf0]  ;;  %v6726_v17 = vld [vmem:[%s9467_s2 + $0x324] sm:$0xf]  ;;  %v5455_v18 = vor.u32 %v6743_v9, %v5452_v10  ;;  %v6727_v22 = vld [vmem:[%s9467_s2 + $0x32c] sm:$0xf] }
  0x55   : > { %1429 = vmatpush.bf16.msrb.mxu3 %v5247_v21  ;;  %v6735_v21 = vld [vmem:[%s9467_s2 + $0x364] sm:$0xf0]  ;;  %v5388_v23 = vld [vmem:[%s9467_s2 + $0x368] sm:$0xf0]  ;;  %v5379_v24 = vor.u32 %v6734_v16, %v5378_v15  ;;  %v5383_v25 = vor.u32 %v6726_v17, %v5380_v19  ;;  %v5316_v31 = vld [vmem:[%s9467_s2 + $0x2e0] sm:$0xf0] }
  0x56   : > { %v5387_v26 = vor.u32 %v6735_v21, %v5386_v20  ;;  %v5391_v30 = vor.u32 %v6727_v22, %v5388_v23  ;;  %v5322_v32 = vld [vmem:[%s9467_s2 + $0x2a8] sm:$0xf]  ;;  %v6711_v34 = vld [vmem:[%s9467_s2 + $0x2ac] sm:$0xf]  ;;  %v5252_v43 = vld [vmem:[%s9467_s2 + $0x260] sm:$0xf0] }
  0x57   : > { %1388 = vmatpush.bf16.msrb.mxu0 %v5171_v27  ;;  %1402 = vmatpush.bf16.msrb.mxu1 %v5175_v28  ;;  %v5314_v27 = vld [vmem:[%s9467_s2 + $0x2a0] sm:$0xf]  ;;  %v5324_v35 = vld [vmem:[%s9467_s2 + $0x2e8] sm:$0xf0]  ;;  %v5258_v44 = vld [vmem:[%s9467_s2 + $0x228] sm:$0xf] }
  0x58   : > { %1416 = vmatpush.bf16.msrb.mxu2 %v5179_v29  ;;  %v6718_v28 = vld [vmem:[%s9467_s2 + $0x2dc] sm:$0xf0]  ;;  %v6710_v29 = vld [vmem:[%s9467_s2 + $0x2a4] sm:$0xf]  ;;  %v5327_v42 = vor.u32 %v6711_v34, %v5324_v35  ;;  %v6695_v46 = vld [vmem:[%s9467_s2 + $0x22c] sm:$0xf] }
  0x59   : > { %1430 = vmatpush.bf16.msrb.mxu3 %v5183_v33  ;;  %v6719_v33 = vld [vmem:[%s9467_s2 + $0x2e4] sm:$0xf0]  ;;  %v5315_v36 = vor.u32 %v6718_v28, %v5314_v27  ;;  %v5319_v37 = vor.u32 %v6710_v29, %v5316_v31  ;;  %v5260_v47 = vld [vmem:[%s9467_s2 + $0x268] sm:$0xf0]  ;;  %v6686_v52 = vld [vmem:[%s9467_s2 + $0x1dc] sm:$0xf0] }
  0x5a   : > { %v5323_v38 = vor.u32 %v6719_v33, %v5322_v32  ;;  %v6678_v53 = vld [vmem:[%s9467_s2 + $0x1a4] sm:$0xf]  ;;  %v5194_v57 = vld [vmem:[%s9467_s2 + $0x1a8] sm:$0xf]  ;;  %v6679_v59 = vld [vmem:[%s9467_s2 + $0x1ac] sm:$0xf] }
  0x5b   : > { %1389 = vmatpush.bf16.msrb.mxu0 %v5107_v39  ;;  %1403 = vmatpush.bf16.msrb.mxu1 %v5111_v40  ;;  %v5250_v39 = vld [vmem:[%s9467_s2 + $0x220] sm:$0xf]  ;;  %v6687_v58 = vld [vmem:[%s9467_s2 + $0x1e4] sm:$0xf0]  ;;  %v6662_v2 = vld [vmem:[%s9467_s2 + $0x124] sm:$0xf] }
  0x5c   : > { %1417 = vmatpush.bf16.msrb.mxu2 %v5115_v41  ;;  %v6702_v40 = vld [vmem:[%s9467_s2 + $0x25c] sm:$0xf0]  ;;  %v6694_v41 = vld [vmem:[%s9467_s2 + $0x224] sm:$0xf]  ;;  %v5195_v0 = vor.u32 %v6687_v58, %v5194_v57  ;;  %v5130_v5 = vld [vmem:[%s9467_s2 + $0x128] sm:$0xf] }
  0x5d   : > { %1431 = vmatpush.bf16.msrb.mxu3 %v5119_v45  ;;  %v6703_v45 = vld [vmem:[%s9467_s2 + $0x264] sm:$0xf0]  ;;  %v5251_v48 = vor.u32 %v6702_v40, %v5250_v39  ;;  %v5255_v49 = vor.u32 %v6694_v41, %v5252_v43  ;;  %v5122_v62 = vld [vmem:[%s9467_s2 + $0x120] sm:$0xf]  ;;  %v5060_v16 = vld [vmem:[%s9467_s2 + $0xe0] sm:$0xf0] }
  0x5e   : > { %v5259_v50 = vor.u32 %v6703_v45, %v5258_v44  ;;  %v6670_v1 = vld [vmem:[%s9467_s2 + $0x15c] sm:$0xf0]  ;;  %v6671_v6 = vld [vmem:[%s9467_s2 + $0x164] sm:$0xf0]  ;;  %v6647_v19 = vld [vmem:[%s9467_s2 + $0xac] sm:$0xf] }
  0x5f   : > { %1390 = vmatpush.bf16.msrb.mxu0 %v5043_v51  ;;  %1404 = vmatpush.bf16.msrb.mxu1 %v5047_v54  ;;  %v5186_v51 = vld [vmem:[%s9467_s2 + $0x1a0] sm:$0xf]  ;;  %v5263_v54 = vor.u32 %v6695_v46, %v5260_v47  ;;  %v5123_v9 = vor.u32 %v6670_v1, %v5122_v62  ;;  %v5066_v17 = vld [vmem:[%s9467_s2 + $0xa8] sm:$0xf]  ;;  %v5068_v20 = vld [vmem:[%s9467_s2 + $0xe8] sm:$0xf0] }
  0x60   : > { %1418 = vmatpush.bf16.msrb.mxu2 %v5051_v56  ;;  %v5188_v56 = vld [vmem:[%s9467_s2 + $0x1e0] sm:$0xf0]  ;;  %v5187_v61 = vor.u32 %v6686_v52, %v5186_v51  ;;  %v4994_v22 = vld [vmem:[%s9467_s2 + $0x20] sm:$0xf]  ;;  %v5002_v28 = vld [vmem:[%s9467_s2 + $0x28] sm:$0xf]  ;;  %v5071_v29 = vor.u32 %v6647_v19, %v5068_v20 }
  0x61   : > { %1432 = vmatpush.bf16.msrb.mxu3 %v5055_v60  ;;  %v5196_v60 = vld [vmem:[%s9467_s2 + $0x1e8] sm:$0xf0]  ;;  %v5191_v63 = vor.u32 %v6678_v53, %v5188_v56  ;;  %v6638_v23 = vld [vmem:[%s9467_s2 + $0x5c] sm:$0xf0]  ;;  %v4996_v27 = vld [vmem:[%s9467_s2 + $0x60] sm:$0xf0] }
  0x62   : > { %v5199_v4 = vor.u32 %v6679_v59, %v5196_v60  ;;  %v6631_v31 = vld [vmem:[%s9467_s2 + $0x2c] sm:$0xf]  ;;  %v5458_v33 = vld [vmem:[%s9467_s2 + $0x3b0] sm:$0xf]  ;;  %v6744_v35 = vld [vmem:[%s9467_s2 + $0x3b4] sm:$0xf] }
  0x63   : > { %1391 = vmatpush.bf16.msrb.mxu0 %v4979_v3  ;;  %1405 = vmatpush.bf16.msrb.mxu1 %v4983_v7  ;;  %v5124_v3 = vld [vmem:[%s9467_s2 + $0x160] sm:$0xf0]  ;;  %v6663_v7 = vld [vmem:[%s9467_s2 + $0x12c] sm:$0xf]  ;;  %v6752_v34 = vld [vmem:[%s9467_s2 + $0x3ec] sm:$0xf0] }
  0x64   : > { %1419 = vmatpush.bf16.msrb.mxu2 %v4987_v8  ;;  %v5132_v8 = vld [vmem:[%s9467_s2 + $0x168] sm:$0xf0]  ;;  %v5127_v10 = vor.u32 %v6662_v2, %v5124_v3  ;;  %v6753_v39 = vld [vmem:[%s9467_s2 + $0x3f4] sm:$0xf0]  ;;  %v5468_v43 = vld [vmem:[%s9467_s2 + $0x3f8] sm:$0xf0]  ;;  %v5459_v45 = vor.u32 %v6752_v34, %v5458_v33 }
  0x65   : > { %1433 = vmatpush.bf16.msrb.mxu3 %v4991_v11  ;;  %v5131_v11 = vor.u32 %v6671_v6, %v5130_v5  ;;  %v5135_v15 = vor.u32 %v6663_v7, %v5132_v8  ;;  %v5004_v32 = vld [vmem:[%s9467_s2 + $0x68] sm:$0xf0]  ;;  %v5396_v52 = vld [vmem:[%s9467_s2 + $0x370] sm:$0xf0]  ;;  %v5402_v53 = vld [vmem:[%s9467_s2 + $0x338] sm:$0xf] }
  0x66   : > { %1392 = vmatmul.bf16.vlgmr.msrb.gmra.mxu0 %v7716_v55  ;;  %1406 = vmatmul.bf16.vlgmr.msrb.gmra.mxu1 %v7716_v55  ;;  %v5007_v44 = vor.u32 %v6631_v31, %v5004_v32  ;;  %v6729_v56 = vld [vmem:[%s9467_s2 + $0x33c] sm:$0xf]  ;;  %v6720_v62 = vld [vmem:[%s9467_s2 + $0x2ec] sm:$0xf0]  ;;  %v5332_v1 = vld [vmem:[%s9467_s2 + $0x2f0] sm:$0xf0] }
  0x67   : > { %1440 = vmatpush.bf16.msra.mxu0 %v5443_v12  ;;  %1454 = vmatpush.bf16.msra.mxu1 %v5447_v13  ;;  %v5058_v12 = vld [vmem:[%s9467_s2 + $0xa0] sm:$0xf]  ;;  %v5404_v57 = vld [vmem:[%s9467_s2 + $0x378] sm:$0xf0]  ;;  %v5338_v2 = vld [vmem:[%s9467_s2 + $0x2b8] sm:$0xf] }
  0x68   : > { %1468 = vmatpush.bf16.msra.mxu2 %v5451_v14  ;;  %1434 = vmatmul.bf16.vlgmr.msrb.gmra.mxu3 %v7716_v55  ;;  %v6654_v13 = vld [vmem:[%s9467_s2 + $0xdc] sm:$0xf0]  ;;  %v6646_v14 = vld [vmem:[%s9467_s2 + $0xa4] sm:$0xf]  ;;  %v6721_v3 = vld [vmem:[%s9467_s2 + $0x2f4] sm:$0xf0] }
  0x69   : > { %1482 = vmatpush.bf16.msra.mxu3 %v5455_v18  ;;  %1420 = vmatmul.bf16.vlgmr.msrb.gmra.mxu2 %v7716_v55  ;;  %v6655_v18 = vld [vmem:[%s9467_s2 + $0xe4] sm:$0xf0]  ;;  %v5059_v21 = vor.u32 %v6654_v13, %v5058_v12  ;;  %v5340_v5 = vld [vmem:[%s9467_s2 + $0x2f8] sm:$0xf0]  ;;  %v5339_v8 = vor.u32 %v6721_v3, %v5338_v2  ;;  %v5268_v13 = vld [vmem:[%s9467_s2 + $0x270] sm:$0xf0] }
  0x6a   : > { %v5138_v33 = vld [vmem:[%s9467_s2 + $0x130] sm:$0xf]  ;;  %v5020_v2 = vld [vmem:[%s9467_s2 + $0x78] sm:$0xf0] }
  0x6b   : > { %1441 = vmatpush.bf16.msra.mxu0 %v5379_v24  ;;  %1455 = vmatpush.bf16.msra.mxu1 %v5383_v25  ;;  %v5063_v24 = vor.u32 %v6646_v14, %v5060_v16  ;;  %v5067_v25 = vor.u32 %v6655_v18, %v5066_v17  ;;  %v5274_v14 = vld [vmem:[%s9467_s2 + $0x238] sm:$0xf]  ;;  %v6697_v16 = vld [vmem:[%s9467_s2 + $0x23c] sm:$0xf]  ;;  %v6672_v34 = vld [vmem:[%s9467_s2 + $0x16c] sm:$0xf0] }
  0x6c   : > { %1469 = vmatpush.bf16.msra.mxu2 %v5387_v26  ;;  %v6630_v26 = vld [vmem:[%s9467_s2 + $0x24] sm:$0xf]  ;;  %v5276_v17 = vld [vmem:[%s9467_s2 + $0x278] sm:$0xf0] }
  0x6d   : > { %1483 = vmatpush.bf16.msra.mxu3 %v5391_v30  ;;  %v6639_v30 = vld [vmem:[%s9467_s2 + $0x64] sm:$0xf0]  ;;  %v4999_v40 = vor.u32 %v6630_v26, %v4996_v27  ;;  %v5210_v26 = vld [vmem:[%s9467_s2 + $0x1b8] sm:$0xf] }
  0x6e   : > { %v5003_v41 = vor.u32 %v6639_v30, %v5002_v28  ;;  %v6689_v27 = vld [vmem:[%s9467_s2 + $0x1f4] sm:$0xf0]  ;;  %v6681_v28 = vld [vmem:[%s9467_s2 + $0x1bc] sm:$0xf] }
  0x6f   : > { %1442 = vmatpush.bf16.msra.mxu0 %v5315_v36  ;;  %1456 = vmatpush.bf16.msra.mxu1 %v5319_v37  ;;  %v4995_v36 = vor.u32 %v6638_v23, %v4994_v22  ;;  %v5460_v37 = vld [vmem:[%s9467_s2 + $0x3f0] sm:$0xf0]  ;;  %v6688_v22 = vld [vmem:[%s9467_s2 + $0x1ec] sm:$0xf0]  ;;  %v5211_v32 = vor.u32 %v6689_v27, %v5210_v26  ;;  %v6781_v26 = vld [vmem:[%s9470_s5 + $0xd8] sm:$0xff] }
  0x70   : > { %1470 = vmatpush.bf16.msra.mxu2 %v5323_v38  ;;  %v5466_v38 = vld [vmem:[%s9467_s2 + $0x3b8] sm:$0xf]  ;;  %v5463_v46 = vor.u32 %v6744_v35, %v5460_v37  ;;  %v6680_v23 = vld [vmem:[%s9467_s2 + $0x1b4] sm:$0xf] }
  0x71   : > { %1484 = vmatpush.bf16.msra.mxu3 %v5327_v42  ;;  %v6745_v42 = vld [vmem:[%s9467_s2 + $0x3bc] sm:$0xf]  ;;  %v5467_v47 = vor.u32 %v6753_v39, %v5466_v38  ;;  %v6664_v35 = vld [vmem:[%s9467_s2 + $0x134] sm:$0xf]  ;;  %v5146_v38 = vld [vmem:[%s9467_s2 + $0x138] sm:$0xf] }
  0x72   : > { %v5471_v51 = vor.u32 %v6745_v42, %v5468_v43  ;;  %v5140_v37 = vld [vmem:[%s9467_s2 + $0x170] sm:$0xf0]  ;;  %v6673_v39 = vld [vmem:[%s9467_s2 + $0x174] sm:$0xf0]  ;;  %v5139_v42 = vor.u32 %v6672_v34, %v5138_v33  ;;  %v6754_v33 = vld [vmem:[%s9470_s5] sm:$0xff] }
  0x73   : > { %1443 = vmatpush.bf16.msra.mxu0 %v5251_v48  ;;  %1457 = vmatpush.bf16.msra.mxu1 %v5255_v49  ;;  %v5394_v48 = vld [vmem:[%s9467_s2 + $0x330] sm:$0xf]  ;;  %v5143_v43 = vor.u32 %v6664_v35, %v5140_v37  ;;  %v6779_v34 = vld [vmem:[%s9470_s5 + $0xc8] sm:$0xff]  ;;  %v6762_v35 = vld [vmem:[%s9470_s5 + $0x40] sm:$0xff] }
  0x74   : > { %1471 = vmatpush.bf16.msra.mxu2 %v5259_v50  ;;  %v6736_v49 = vld [vmem:[%s9467_s2 + $0x36c] sm:$0xf0]  ;;  %v6728_v50 = vld [vmem:[%s9467_s2 + $0x334] sm:$0xf]  ;;  %v6801_v37 = vld [vmem:[%s9470_s5 + $0x178] sm:$0xff] }
  0x75   : > { %1485 = vmatpush.bf16.msra.mxu3 %v5263_v54  ;;  %v6737_v54 = vld [vmem:[%s9467_s2 + $0x374] sm:$0xf0]  ;;  %v5395_v58 = vor.u32 %v6736_v49, %v5394_v48  ;;  %v5399_v59 = vor.u32 %v6728_v50, %v5396_v52  ;;  %v5076_v49 = vld [vmem:[%s9467_s2 + $0xf0] sm:$0xf0]  ;;  %v6649_v52 = vld [vmem:[%s9467_s2 + $0xbc] sm:$0xf] }
  0x76   : > { %v5403_v60 = vor.u32 %v6737_v54, %v5402_v53  ;;  %v5082_v50 = vld [vmem:[%s9467_s2 + $0xb8] sm:$0xf]  ;;  %v5084_v53 = vld [vmem:[%s9467_s2 + $0xf8] sm:$0xf0]  ;;  %v6764_v27 = vld [vmem:[%s9470_s5 + $0x50] sm:$0xff] }
  0x77   : > { %1444 = vmatpush.bf16.msra.mxu0 %v5187_v61  ;;  %1458 = vmatpush.bf16.msra.mxu1 %v5191_v63  ;;  %v5330_v61 = vld [vmem:[%s9467_s2 + $0x2b0] sm:$0xf]  ;;  %v6712_v63 = vld [vmem:[%s9467_s2 + $0x2b4] sm:$0xf] }
  0x78   : > { %1472 = vmatpush.bf16.msra.mxu2 %v5195_v0  ;;  %v5407_v0 = vor.u32 %v6729_v56, %v5404_v57  ;;  %v5331_v6 = vor.u32 %v6720_v62, %v5330_v61  ;;  %v5335_v7 = vor.u32 %v6712_v63, %v5332_v1  ;;  %v5087_v61 = vor.u32 %v6649_v52, %v5084_v53  ;;  %v5012_v62 = vld [vmem:[%s9467_s2 + $0x70] sm:$0xf0]  ;;  %v5018_v63 = vld [vmem:[%s9467_s2 + $0x38] sm:$0xf]  ;;  %v6633_v1 = vld [vmem:[%s9467_s2 + $0x3c] sm:$0xf] }
  0x79   : > { %1486 = vmatpush.bf16.msra.mxu3 %v5199_v4  ;;  %v6713_v4 = vld [vmem:[%s9467_s2 + $0x2bc] sm:$0xf]  ;;  %v6815_v52 = vld [vmem:[%s9470_s5 + $0x1e8] sm:$0xff] }
  0x7a   : > { %v5343_v12 = vor.u32 %v6713_v4, %v5340_v5 }
  0x7b   : > { %1445 = vmatpush.bf16.msra.mxu0 %v5123_v9  ;;  %1459 = vmatpush.bf16.msra.mxu1 %v5127_v10  ;;  %v5266_v9 = vld [vmem:[%s9467_s2 + $0x230] sm:$0xf] }
  0x7c   : > { %1473 = vmatpush.bf16.msra.mxu2 %v5131_v11  ;;  %v6704_v10 = vld [vmem:[%s9467_s2 + $0x26c] sm:$0xf0]  ;;  %v6696_v11 = vld [vmem:[%s9467_s2 + $0x234] sm:$0xf] }
  0x7d   : > { %1487 = vmatpush.bf16.msra.mxu3 %v5135_v15  ;;  %v6705_v15 = vld [vmem:[%s9467_s2 + $0x274] sm:$0xf0]  ;;  %v5267_v18 = vor.u32 %v6704_v10, %v5266_v9  ;;  %v5271_v19 = vor.u32 %v6696_v11, %v5268_v13  ;;  %v6760_v10 = vld [vmem:[%s9470_s5 + $0x30] sm:$0xff] }
  0x7e   : > { %v5275_v20 = vor.u32 %v6705_v15, %v5274_v14  ;;  %v6777_v9 = vld [vmem:[%s9470_s5 + $0xb8] sm:$0xff]  ;;  %v6776_v13 = vld [vmem:[%s9470_s5 + $0xb0] sm:$0xff]  ;;  %v6759_v14 = vld [vmem:[%s9470_s5 + $0x28] sm:$0xff] }
  0x7f   : > { %1446 = vmatpush.bf16.msra.mxu0 %v5059_v21  ;;  %1460 = vmatpush.bf16.msra.mxu1 %v5063_v24  ;;  %v5202_v21 = vld [vmem:[%s9467_s2 + $0x1b0] sm:$0xf]  ;;  %v5279_v24 = vor.u32 %v6697_v16, %v5276_v17  ;;  %v6785_v11 = vld [vmem:[%s9470_s5 + $0xf8] sm:$0xff]  ;;  %v6775_v16 = vld [vmem:[%s9470_s5 + $0xa8] sm:$0xff] }
  0x80   : > { %1474 = vmatpush.bf16.msra.mxu2 %v5067_v25  ;;  %v5204_v25 = vld [vmem:[%s9467_s2 + $0x1f0] sm:$0xf0]  ;;  %v5203_v30 = vor.u32 %v6688_v22, %v5202_v21  ;;  %v6758_v17 = vld [vmem:[%s9470_s5 + $0x20] sm:$0xff]  ;;  %v6757_v21 = vld [vmem:[%s9470_s5 + $0x18] sm:$0xff] }
  0x81   : > { %1488 = vmatpush.bf16.msra.mxu3 %v5071_v29  ;;  %v5212_v29 = vld [vmem:[%s9467_s2 + $0x1f8] sm:$0xf0]  ;;  %v5207_v31 = vor.u32 %v6680_v23, %v5204_v25  ;;  %v6784_v15 = vld [vmem:[%s9470_s5 + $0xf0] sm:$0xff]  ;;  %v6782_v22 = vld [vmem:[%s9470_s5 + $0xe0] sm:$0xff] }
  0x82   : > { %v6765_v23 = vld [vmem:[%s9470_s5 + $0x58] sm:$0xff]  ;;  %v6756_v25 = vld [vmem:[%s9470_s5 + $0x10] sm:$0xff] }
  0x83   : > { %1447 = vmatpush.bf16.msra.mxu0 %v4995_v36  ;;  %1461 = vmatpush.bf16.msra.mxu1 %v4999_v40  ;;  %v5215_v36 = vor.u32 %v6681_v28, %v5212_v29  ;;  %v6665_v40 = vld [vmem:[%s9467_s2 + $0x13c] sm:$0xf]  ;;  %v6772_v28 = vld [vmem:[%s9470_s5 + $0x90] sm:$0xff]  ;;  %v6755_v29 = vld [vmem:[%s9470_s5 + $0x8] sm:$0xff] }
  0x84   : > { %1475 = vmatpush.bf16.msra.mxu2 %v5003_v41  ;;  %v5148_v41 = vld [vmem:[%s9467_s2 + $0x178] sm:$0xf0] }
  0x85   : > { %1489 = vmatpush.bf16.msra.mxu3 %v5007_v44  ;;  %v5147_v44 = vor.u32 %v6673_v39, %v5146_v38  ;;  %v5151_v48 = vor.u32 %v6665_v40, %v5148_v41  ;;  %v6770_v38 = vld [vmem:[%s9470_s5 + $0x80] sm:$0xff]  ;;  %v6809_v40 = vld [vmem:[%s9470_s5 + $0x1b8] sm:$0xff]  ;;  %v6792_v41 = vld [vmem:[%s9470_s5 + $0x130] sm:$0xff] }
  0x86   : > { %1448 = vmatmul.bf16.vlgmr.msra.gmra.mxu0 %v7716_v55  ;;  %1462 = vmatmul.bf16.vlgmr.msra.gmra.mxu1 %v7716_v55  ;;  %v6778_v39 = vld [vmem:[%s9470_s5 + $0xc0] sm:$0xff] }
  0x87   : > { %1496 = vmatpush.bf16.msrb.mxu0 %v5459_v45  ;;  %1510 = vmatpush.bf16.msrb.mxu1 %v5463_v46  ;;  %v5074_v45 = vld [vmem:[%s9467_s2 + $0xb0] sm:$0xf] }
  0x88   : > { %1524 = vmatpush.bf16.msrb.mxu2 %v5467_v47  ;;  %1490 = vmatmul.bf16.vlgmr.msra.gmra.mxu3 %v7716_v55  ;;  %v6656_v46 = vld [vmem:[%s9467_s2 + $0xec] sm:$0xf0]  ;;  %v6648_v47 = vld [vmem:[%s9467_s2 + $0xb4] sm:$0xf] }
  0x89   : > { %1538 = vmatpush.bf16.msrb.mxu3 %v5471_v51  ;;  %1476 = vmatmul.bf16.vlgmr.msra.gmra.mxu2 %v7716_v55  ;;  %v6657_v51 = vld [vmem:[%s9467_s2 + $0xf4] sm:$0xf0]  ;;  %v5075_v54 = vor.u32 %v6656_v46, %v5074_v45  ;;  %v5079_v56 = vor.u32 %v6648_v47, %v5076_v49  ;;  %v6791_v45 = vld [vmem:[%s9470_s5 + $0x128] sm:$0xff]  ;;  %v6816_v46 = vld [vmem:[%s9470_s5 + $0x1f0] sm:$0xff] }
  0x8a   : > { %v5083_v57 = vor.u32 %v6657_v51, %v5082_v50  ;;  %v8385_v47 = vld [vmem:[#allocation2] sm:$0xff]  ;;  %v6807_v49 = vld [vmem:[%s9470_s5 + $0x1a8] sm:$0xff] }
  0x8b   : > { %1497 = vmatpush.bf16.msrb.mxu0 %v5395_v58  ;;  %1511 = vmatpush.bf16.msrb.mxu1 %v5399_v59  ;;  %v5010_v58 = vld [vmem:[%s9467_s2 + $0x30] sm:$0xf]  ;;  %v1556_v50 = vperm.slane %v8385_v47, 0  ;;  %v6790_v51 = vld [vmem:[%s9470_s5 + $0x120] sm:$0xff] }
  0x8c   : > { %1525 = vmatpush.bf16.msrb.mxu2 %v5403_v60  ;;  %v6640_v59 = vld [vmem:[%s9467_s2 + $0x6c] sm:$0xf0]  ;;  %v6632_v60 = vld [vmem:[%s9467_s2 + $0x34] sm:$0xf] }
  0x8d   : > { %1539 = vmatpush.bf16.msrb.mxu3 %v5407_v0  ;;  %v6641_v0 = vld [vmem:[%s9467_s2 + $0x74] sm:$0xf0]  ;;  %v5011_v3 = vor.u32 %v6640_v59, %v5010_v58  ;;  %v5015_v4 = vor.u32 %v6632_v60, %v5012_v62  ;;  %v6806_v59 = vld [vmem:[%s9470_s5 + $0x1a0] sm:$0xff] }
  0x8e   : > { %v5019_v5 = vor.u32 %v6641_v0, %v5018_v63  ;;  %v6789_v62 = vld [vmem:[%s9470_s5 + $0x118] sm:$0xff]  ;;  %v6814_v63 = vld [vmem:[%s9470_s5 + $0x1e0] sm:$0xff] }
  0x8f   : > { %1498 = vmatpush.bf16.msrb.mxu0 %v5331_v6  ;;  %1512 = vmatpush.bf16.msrb.mxu1 %v5335_v7  ;;  %v5023_v6 = vor.u32 %v6633_v1, %v5020_v2  ;;  %v6761_v7 = vld [vmem:[%s9470_s5 + $0x38] sm:$0xff]  ;;  %v1558_v2 = vperm.slane %v8385_v47, 2 }
  0x90   : > { %1526 = vmatpush.bf16.msrb.mxu2 %v5339_v8  ;;  %v6769_v8 = vld [vmem:[%s9470_s5 + $0x78] sm:$0xff] }
  0x91   : > { %1540 = vmatpush.bf16.msrb.mxu3 %v5343_v12  ;;  %v6768_v12 = vld [vmem:[%s9470_s5 + $0x70] sm:$0xff] }
  0x93   : > { %1499 = vmatpush.bf16.msrb.mxu0 %v5267_v18  ;;  %1513 = vmatpush.bf16.msrb.mxu1 %v5271_v19  ;;  %v6783_v18 = vld [vmem:[%s9470_s5 + $0xe8] sm:$0xff]  ;;  %v6766_v19 = vld [vmem:[%s9470_s5 + $0x60] sm:$0xff] }
  0x94   : > { %1527 = vmatpush.bf16.msrb.mxu2 %v5275_v20  ;;  %v6774_v20 = vld [vmem:[%s9470_s5 + $0xa0] sm:$0xff] }
  0x95   : > { %1541 = vmatpush.bf16.msrb.mxu3 %v5279_v24  ;;  %v6773_v24 = vld [vmem:[%s9470_s5 + $0x98] sm:$0xff] }
  0x97   : > { %1500 = vmatpush.bf16.msrb.mxu0 %v5203_v30  ;;  %1514 = vmatpush.bf16.msrb.mxu1 %v5207_v31  ;;  %v6780_v30 = vld [vmem:[%s9470_s5 + $0xd0] sm:$0xff]  ;;  %v6763_v31 = vld [vmem:[%s9470_s5 + $0x48] sm:$0xff] }
  0x98   : > { %1528 = vmatpush.bf16.msrb.mxu2 %v5211_v32  ;;  %v6771_v32 = vld [vmem:[%s9470_s5 + $0x88] sm:$0xff] }
  0x99   : > { %1542 = vmatpush.bf16.msrb.mxu3 %v5215_v36  ;;  %v6793_v36 = vld [vmem:[%s9470_s5 + $0x138] sm:$0xff] }
  0x9b   : > { %1501 = vmatpush.bf16.msrb.mxu0 %v5139_v42  ;;  %1515 = vmatpush.bf16.msrb.mxu1 %v5143_v43  ;;  %v6817_v42 = vld [vmem:[%s9470_s5 + $0x1f8] sm:$0xff]  ;;  %v6800_v43 = vld [vmem:[%s9470_s5 + $0x170] sm:$0xff] }
  0x9c   : > { %1529 = vmatpush.bf16.msrb.mxu2 %v5147_v44  ;;  %v6808_v44 = vld [vmem:[%s9470_s5 + $0x1b0] sm:$0xff] }
  0x9d   : > { %1543 = vmatpush.bf16.msrb.mxu3 %v5151_v48  ;;  %v6799_v48 = vld [vmem:[%s9470_s5 + $0x168] sm:$0xff] }
  0x9f   : > { %1502 = vmatpush.bf16.msrb.mxu0 %v5075_v54  ;;  %1516 = vmatpush.bf16.msrb.mxu1 %v5079_v56  ;;  %v8400_v54 = vld [vmem:[#allocation4] sm:$0xff]  ;;  %v1557_v56 = vperm.slane %v8385_v47, 1 }
  0xa0   : > { %1530 = vmatpush.bf16.msrb.mxu2 %v5083_v57  ;;  %v6798_v57 = vld [vmem:[%s9470_s5 + $0x160] sm:$0xff]  ;;  %v1625_v1 = vperm.slane %v8400_v54, 1 }
  0xa1   : > { %1544 = vmatpush.bf16.msrb.mxu3 %v5087_v61  ;;  %v1624_v61 = vperm.slane %v8400_v54, 0 }
  0xa3   : > { %1503 = vmatpush.bf16.msrb.mxu0 %v5011_v3  ;;  %1517 = vmatpush.bf16.msrb.mxu1 %v5015_v4  ;;  %v6797_v3 = vld [vmem:[%s9470_s5 + $0x158] sm:$0xff] }
  0xa4   : > { %1531 = vmatpush.bf16.msrb.mxu2 %v5019_v5  ;;  %v1559_v5 = vperm.slane %v8385_v47, 3 }
  0xa5   : > { %1545 = vmatpush.bf16.msrb.mxu3 %v5023_v6 }
  0xa6   : > { %1504 = vmatmul.bf16.vlgmr.msrb.gmra.mxu0 %v7716_v55  ;;  %1518 = vmatmul.bf16.vlgmr.msrb.gmra.mxu1 %v7716_v55 }
  0xa7   : > { %2782 = vmatpush.bf16.msra.mxu0 %v6761_v7  ;;  %2796 = vmatpush.bf16.msra.mxu1 %v6769_v8  ;;  %v6805_v7 = vld [vmem:[%s9470_s5 + $0x198] sm:$0xff] }
  0xa8   : > { %1532 = vmatmul.bf16.vlgmr.msrb.gmra.mxu2 %v7716_v55  ;;  %1546 = vmatmul.bf16.vlgmr.msrb.gmra.mxu3 %v7716_v55  ;;  %v6767_v55 = vld [vmem:[%s9470_s5 + $0x68] sm:$0xff] }
  0xa9   : > { %2810 = vmatpush.bf16.msra.mxu2 %v6777_v9  ;;  %2824 = vmatpush.bf16.msra.mxu3 %v6785_v11  ;;  %v6788_v9 = vld [vmem:[%s9470_s5 + $0x110] sm:$0xff] }
  0xab   : > { %2783 = vmatpush.bf16.msra.mxu0 %v6760_v10  ;;  %2797 = vmatpush.bf16.msra.mxu1 %v6768_v12  ;;  %v6813_v10 = vld [vmem:[%s9470_s5 + $0x1d8] sm:$0xff] }
  0xad   : > { %2811 = vmatpush.bf16.msra.mxu2 %v6776_v13  ;;  %2825 = vmatpush.bf16.msra.mxu3 %v6784_v15  ;;  %v1626_v13 = vperm.slane %v8400_v54, 2  ;;  %v6796_v15 = vld [vmem:[%s9470_s5 + $0x150] sm:$0xff] }
  0xaf   : > { %2784 = vmatpush.bf16.msra.mxu0 %v6759_v14  ;;  %2798 = vmatpush.bf16.msra.mxu1 %v6767_v55 }
  0xb1   : > { %2812 = vmatpush.bf16.msra.mxu2 %v6775_v16  ;;  %2826 = vmatpush.bf16.msra.mxu3 %v6783_v18  ;;  %v1627_v16 = vperm.slane %v8400_v54, 3 }
  0xb3   : > { %2785 = vmatpush.bf16.msra.mxu0 %v6758_v17  ;;  %2799 = vmatpush.bf16.msra.mxu1 %v6766_v19 }
  0xb5   : > { %2813 = vmatpush.bf16.msra.mxu2 %v6774_v20  ;;  %2827 = vmatpush.bf16.msra.mxu3 %v6782_v22  ;;  %v6804_v20 = vld [vmem:[%s9470_s5 + $0x190] sm:$0xff] }
  0xb7   : > { %2786 = vmatpush.bf16.msra.mxu0 %v6757_v21  ;;  %2800 = vmatpush.bf16.msra.mxu1 %v6765_v23  ;;  %v6787_v23 = vld [vmem:[%s9470_s5 + $0x108] sm:$0xff] }
  0xb9   : > { %2814 = vmatpush.bf16.msra.mxu2 %v6773_v24  ;;  %2828 = vmatpush.bf16.msra.mxu3 %v6781_v26  ;;  %v6812_v24 = vld [vmem:[%s9470_s5 + $0x1d0] sm:$0xff] }
  0xbb   : > { %2787 = vmatpush.bf16.msra.mxu0 %v6756_v25  ;;  %2801 = vmatpush.bf16.msra.mxu1 %v6764_v27 }
  0xbd   : > { %2815 = vmatpush.bf16.msra.mxu2 %v6772_v28  ;;  %2829 = vmatpush.bf16.msra.mxu3 %v6780_v30  ;;  %v6795_v28 = vld [vmem:[%s9470_s5 + $0x148] sm:$0xff] }
  0xbf   : > { %2788 = vmatpush.bf16.msra.mxu0 %v6755_v29  ;;  %2802 = vmatpush.bf16.msra.mxu1 %v6763_v31 }
  0xc1   : > { %2816 = vmatpush.bf16.msra.mxu2 %v6771_v32  ;;  %2830 = vmatpush.bf16.msra.mxu3 %v6779_v34 }
  0xc3   : > { %2789 = vmatpush.bf16.msra.mxu0 %v6754_v33  ;;  %2803 = vmatpush.bf16.msra.mxu1 %v6762_v35  ;;  %v1337_v53 = vpop.f32.mrf.mxu0  ;;  %v1351_v58 = vpop.f32.mrf.mxu1  ;;  %v6803_v35 = vld [vmem:[%s9470_s5 + $0x188] sm:$0xff] }
  0xc4   : > { %v1588_v60 = vmul.f32 %v1556_v50, %v1337_v53  ;;  %v1589_v0 = vmul.f32 %v1557_v56, %v1351_v58  ;;  %v6802_v53 = vld [vmem:[%s9470_s5 + $0x180] sm:$0xff] }
  0xc5   : > { %2817 = vmatpush.bf16.msra.mxu2 %v6770_v38  ;;  %2831 = vmatpush.bf16.msra.mxu3 %v6778_v39  ;;  %v6786_v38 = vld [vmem:[%s9470_s5 + $0x100] sm:$0xff]  ;;  %v6811_v39 = vld [vmem:[%s9470_s5 + $0x1c8] sm:$0xff] }
  0xc6   : > { %v8425_v8 = vadd.f32 %v1624_v61, %v1588_v60  ;;  %v8433_v11 = vadd.f32 %v1625_v1, %v1589_v0  ;;  %v6810_v60 = vld [vmem:[%s9470_s5 + $0x1c0] sm:$0xff]  ;;  %v7326_v0 = vmov 0  }
  0xc7   : > { %2838 = vmatpush.bf16.msrb.mxu0 %v6793_v36  ;;  %2852 = vmatpush.bf16.msrb.mxu1 %v6801_v37 }
  0xc8   : > { %v1688_v21 = vmax.f32 %v8425_v8, 0.0  ;;  %v1689_v25 = vmax.f32 %v8433_v11, 0.0  ;;  %7089 = vset.pattern.permute.xlu0 %v7326_v0  ;;  %7100 = vset.pattern.permute.xlu1 %v7326_v0  ;;  %v6819_v0 = vld [vmem:[%s9470_s5 + $0x208] sm:$0xff] }
  0xc9   : > { %2866 = vmatpush.bf16.msrb.mxu2 %v6809_v40  ;;  %2880 = vmatpush.bf16.msrb.mxu3 %v6817_v42 }
  0xcb   : > { %2839 = vmatpush.bf16.msrb.mxu0 %v6792_v41  ;;  %2853 = vmatpush.bf16.msrb.mxu1 %v6800_v43  ;;  %v1379_v6 = vpop.f32.mrf.mxu3  ;;  %v1339_v14 = vpop.f32.mrf.mxu0  ;;  %v6794_v43 = vld [vmem:[%s9470_s5 + $0x140] sm:$0xff] }
  0xcc   : > { %v1365_v4 = vpop.f32.mrf.mxu2  ;;  %v1591_v55 = vmul.f32 %v1559_v5, %v1379_v6  ;;  %v1604_v17 = vmul.f32 %v1556_v50, %v1339_v14  ;;  %v1353_v18 = vpop.f32.mrf.mxu1  ;;  %v6840_v6 = vld [vmem:[%s9470_s5 + $0x2b0] sm:$0xff]  ;;  %v6830_v14 = vld [vmem:[%s9470_s5 + $0x260] sm:$0xff] }
  0xcd   : > { %2867 = vmatpush.bf16.msrb.mxu2 %v6808_v44  ;;  %2881 = vmatpush.bf16.msrb.mxu3 %v6816_v46  ;;  %v1590_v12 = vmul.f32 %v1558_v2, %v1365_v4  ;;  %v1605_v19 = vmul.f32 %v1557_v56, %v1353_v18  ;;  %v6825_v44 = vld [vmem:[%s9470_s5 + $0x238] sm:$0xff]  ;;  %v7325_v56 = vmov 0.0   ;;  %v6823_v4 = vld [vmem:[%s9470_s5 + $0x228] sm:$0xff]  ;;  %v1628_v18 = vperm.slane %v8400_v54, 4 }
  0xce   : > { %v8444_v22 = vadd.f32 %v1624_v61, %v1604_v17  ;;  %v8460_v29 = vadd.f32 %v1627_v16, %v1591_v55 }
  0xcf   : > { %2840 = vmatpush.bf16.msrb.mxu0 %v6791_v45  ;;  %2854 = vmatpush.bf16.msrb.mxu1 %v6799_v48  ;;  %v8453_v26 = vadd.f32 %v1626_v13, %v1590_v12  ;;  %v8455_v27 = vadd.f32 %v1625_v1, %v1605_v19  ;;  %v6833_v48 = vld [vmem:[%s9470_s5 + $0x278] sm:$0xff] }
  0xd0   : > { %v1704_v30 = vmax.f32 %v8444_v22, 0.0  ;;  %v1691_v45 = vmax.f32 %v8460_v29, 0.0  ;;  %v6841_v1 = vld [vmem:[%s9470_s5 + $0x2b8] sm:$0xff] }
  0xd1   : > { %2868 = vmatpush.bf16.msrb.mxu2 %v6807_v49  ;;  %2882 = vmatpush.bf16.msrb.mxu3 %v6815_v52  ;;  %v1705_v32 = vmax.f32 %v8455_v27, 0.0  ;;  %v1690_v40 = vmax.f32 %v8453_v26, 0.0  ;;  %v8500_v49 = vld [vmem:[%s548_s16] sm:$0xff]  ;;  %v6821_v19 = vld [vmem:[%s9470_s5 + $0x218] sm:$0xff] }
  0xd2   : > { %v1720_v36 = vpack.c.bf16 %v1704_v30, %v1688_v21  ;;  %vm1995_vm0 = vcmp.eq.s32.totalorder %v8500_v49, 0  ;;  %vm3006_vm2 = vcmp.eq.s32.totalorder %v8500_v49, 1  ;;  %v6850_v26 = vld [vmem:[%s9470_s5 + $0x300] sm:$0xff]  ;;  %vm3027_vm4 = vcmp.eq.s32.totalorder %v8500_v49, 2 }
  0xd3   : > { %2841 = vmatpush.bf16.msrb.mxu0 %v6790_v51  ;;  %2855 = vmatpush.bf16.msrb.mxu1 %v6798_v57  ;;  %v1381_v34 = vpop.f32.mrf.mxu3  ;;  %v1721_v41 = vpack.c.bf16 %v1705_v32, %v1689_v25  ;;  %v8503_v51 = vld [vmem:[%s548_s16 + $0x8] sm:$0xff]  ;;  %v5472_v57 = vsel %vm1995_vm0, 1.0, %v7325_v56  ;;  %vm3048_vm6 = vcmp.eq.s32.totalorder %v8500_v49, 3 }
  0xd4   : > { %v1367_v31 = vpop.f32.mrf.mxu2  ;;  %v1607_v37 = vmul.f32 %v1559_v5, %v1381_v34  ;;  %2790 = vmatmul.bf16.vlgmr.msra.gmra.mxu0 %v1720_v36  ;;  %vm1996_vm1 = vcmp.eq.s32.totalorder %v8503_v51, 0  ;;  %v6831_v5 = vld [vmem:[%s9470_s5 + $0x268] sm:$0xff]  ;;  %v1563_v36 = vperm.slane %v8385_v47, 7  ;;  %vm3007_vm3 = vcmp.eq.s32.totalorder %v8503_v51, 1 }
  0xd5   : > { %2869 = vmatpush.bf16.msrb.mxu2 %v6806_v59  ;;  %2883 = vmatpush.bf16.msrb.mxu3 %v6814_v63  ;;  %v1606_v33 = vmul.f32 %v1558_v2, %v1367_v31  ;;  %v6824_v59 = vld [vmem:[%s9470_s5 + $0x230] sm:$0xff]  ;;  %v5473_v61 = vsel %vm1996_vm1, 1.0, %v7325_v56  ;;  %v6849_v2 = vld [vmem:[%s9470_s5 + $0x2f8] sm:$0xff]  ;;  %v6846_v31 = vld [vmem:[%s9470_s5 + $0x2e0] sm:$0xff]  ;;  %vm3028_vm5 = vcmp.eq.s32.totalorder %v8503_v51, 2  ;;  %vm3049_vm7 = vcmp.eq.s32.totalorder %v8503_v51, 3 }
  0xd6   : > { %v8495_v46 = vadd.f32 %v1627_v16, %v1607_v37  ;;  %2804 = vmatmul.bf16.vlgmr.msra.gmra.mxu1 %v1721_v41  ;;  %v6832_v63 = vld [vmem:[%s9470_s5 + $0x270] sm:$0xff]  ;;  %v6847_v16 = vld [vmem:[%s9470_s5 + $0x2e8] sm:$0xff] }
  0xd7   : > { %2842 = vmatpush.bf16.msrb.mxu0 %v6789_v62  ;;  %2856 = vmatpush.bf16.msrb.mxu1 %v6797_v3  ;;  %v8486_v42 = vadd.f32 %v1626_v13, %v1606_v33  ;;  %v7090_v3 = vpack.i.bf16 %v5473_v61, %v5472_v57  ;;  %v1561_v13 = vperm.slane %v8385_v47, 5  ;;  %v1562_v33 = vperm.slane %v8385_v47, 6  ;;  %v6820_v37 = vld [vmem:[%s9470_s5 + $0x210] sm:$0xff] }
  0xd8   : > { %v1707_v52 = vmax.f32 %v8495_v46, 0.0 }
  0xd9   : > { %2870 = vmatpush.bf16.msrb.mxu2 %v6805_v7  ;;  %2884 = vmatpush.bf16.msrb.mxu3 %v6813_v10  ;;  %v1706_v50 = vmax.f32 %v8486_v42, 0.0  ;;  %v6848_v7 = vld [vmem:[%s9470_s5 + $0x2f0] sm:$0xff]  ;;  %v6822_v10 = vld [vmem:[%s9470_s5 + $0x220] sm:$0xff]  ;;  %v5989_v42 = vsel %vm3028_vm5, 1.0, %v7325_v56 }
  0xda   : > { %v1723_v62 = vpack.c.bf16 %v1707_v52, %v1691_v45  ;;  %7091 = vperm.xlu0 %7089, %v7090_v3   ;;  %v6827_v3 = vld [vmem:[%s9470_s5 + $0x248] sm:$0xff] }
  0xdb   : > { %2843 = vmatpush.bf16.msrb.mxu0 %v6788_v9  ;;  %2857 = vmatpush.bf16.msrb.mxu1 %v6796_v15  ;;  %v1722_v58 = vpack.c.bf16 %v1706_v50, %v1690_v40  ;;  %v1560_v9 = vperm.slane %v8385_v47, 4  ;;  %v6839_v15 = vld [vmem:[%s9470_s5 + $0x2a8] sm:$0xff] }
  0xdc   : > { %2832 = vmatmul.bf16.vlgmr.msra.gmra.mxu3 %v1723_v62 }
  0xdd   : > { %2871 = vmatpush.bf16.msrb.mxu2 %v6804_v20  ;;  %2885 = vmatpush.bf16.msrb.mxu3 %v6812_v24  ;;  %v6829_v24 = vld [vmem:[%s9470_s5 + $0x258] sm:$0xff] }
  0xde   : > { %2818 = vmatmul.bf16.vlgmr.msra.gmra.mxu2 %v1722_v58  ;;  %v1630_v58 = vperm.slane %v8400_v54, 6 }
  0xdf   : > { %2844 = vmatpush.bf16.msrb.mxu0 %v6787_v23  ;;  %2858 = vmatpush.bf16.msrb.mxu1 %v6795_v28  ;;  %v1629_v23 = vperm.slane %v8400_v54, 5  ;;  %v6838_v28 = vld [vmem:[%s9470_s5 + $0x2a0] sm:$0xff] }
  0xe1   : > { %2872 = vmatpush.bf16.msrb.mxu2 %v6803_v35  ;;  %2886 = vmatpush.bf16.msrb.mxu3 %v6811_v39 }
  0xe3   : > { %2845 = vmatpush.bf16.msrb.mxu0 %v6786_v38  ;;  %2859 = vmatpush.bf16.msrb.mxu1 %v6794_v43  ;;  %v1393_v12 = vpop.f32.mrf.mxu0  ;;  %v1407_v55 = vpop.f32.mrf.mxu1  ;;  %v6828_v43 = vld [vmem:[%s9470_s5 + $0x250] sm:$0xff] }
  0xe4   : > { %v1592_v17 = vmul.f32 %v1560_v9, %v1393_v12  ;;  %v1593_v20 = vmul.f32 %v1561_v13, %v1407_v55 }
  0xe5   : > { %2873 = vmatpush.bf16.msrb.mxu2 %v6802_v53  ;;  %2887 = vmatpush.bf16.msrb.mxu3 %v6810_v60  ;;  %v6845_v53 = vld [vmem:[%s9470_s5 + $0x2d8] sm:$0xff] }
  0xe6   : > { %v8577_v34 = vadd.f32 %v1628_v18, %v1592_v17  ;;  %v8583_v38 = vadd.f32 %v1629_v23, %v1593_v20  ;;  %v6857_v17 = vld [vmem:[%s9470_s5 + $0x338] sm:$0xff]  ;;  %v6835_v20 = vld [vmem:[%s9470_s5 + $0x288] sm:$0xff] }
  0xe7   : > { %2894 = vmatpush.bf16.msra.mxu0 %v6825_v44  ;;  %2908 = vmatpush.bf16.msra.mxu1 %v6833_v48  ;;  %v6837_v44 = vld [vmem:[%s9470_s5 + $0x298] sm:$0xff] }
  0xe8   : > { %v1692_v60 = vmax.f32 %v8577_v34, 0.0 }
  0xe9   : > { %2922 = vmatpush.bf16.msra.mxu2 %v6841_v1  ;;  %2936 = vmatpush.bf16.msra.mxu3 %v6849_v2  ;;  %v1693_v1 = vmax.f32 %v8583_v38, 0.0 }
  0xeb   : > { %2895 = vmatpush.bf16.msra.mxu0 %v6824_v59  ;;  %2909 = vmatpush.bf16.msra.mxu1 %v6832_v63  ;;  %v1395_v39 = vpop.f32.mrf.mxu0  ;;  %v1435_v41 = vpop.f32.mrf.mxu3  ;;  %v1631_v63 = vperm.slane %v8400_v54, 7 }
  0xec   : > { %v1421_v35 = vpop.f32.mrf.mxu2  ;;  %v1608_v47 = vmul.f32 %v1560_v9, %v1395_v39  ;;  %v1409_v48 = vpop.f32.mrf.mxu1  ;;  %v1595_v62 = vmul.f32 %v1563_v36, %v1435_v41  ;;  %v6864_v39 = vld [vmem:[%s9470_s5 + $0x370] sm:$0xff] }
  0xed   : > { %2923 = vmatpush.bf16.msra.mxu2 %v6840_v6  ;;  %2937 = vmatpush.bf16.msra.mxu3 %v6848_v7  ;;  %v1594_v57 = vmul.f32 %v1562_v33, %v1421_v35  ;;  %v1609_v59 = vmul.f32 %v1561_v13, %v1409_v48  ;;  %v6818_v13 = vld [vmem:[%s9470_s5 + $0x200] sm:$0xff]  ;;  %v6873_v48 = vld [vmem:[%s9470_s5 + $0x3b8] sm:$0xff] }
  0xee   : > { %v8596_v61 = vadd.f32 %v1628_v18, %v1608_v47 }
  0xef   : > { %2896 = vmatpush.bf16.msra.mxu0 %v6823_v4  ;;  %2910 = vmatpush.bf16.msra.mxu1 %v6831_v5  ;;  %v8603_v2 = vadd.f32 %v1629_v23, %v1609_v59  ;;  %v6836_v4 = vld [vmem:[%s9470_s5 + $0x290] sm:$0xff]  ;;  %v8615_v6 = vadd.f32 %v1630_v58, %v1594_v57  ;;  %v8680_v57 = vld [vmem:[#allocation2 + $0x8] sm:$0xff] }
  0xf0   : > { %v1708_v54 = vmax.f32 %v8596_v61, 0.0  ;;  %v6844_v5 = vld [vmem:[%s9470_s5 + $0x2d0] sm:$0xff]  ;;  %v6863_v59 = vld [vmem:[%s9470_s5 + $0x368] sm:$0xff]  ;;  %v1569_v46 = vperm.slane %v8680_v57, 5 }
  0xf1   : > { %2924 = vmatpush.bf16.msra.mxu2 %v6839_v15  ;;  %2938 = vmatpush.bf16.msra.mxu3 %v6847_v16  ;;  %v1709_v7 = vmax.f32 %v8603_v2, 0.0  ;;  %v6826_v16 = vld [vmem:[%s9470_s5 + $0x240] sm:$0xff]  ;;  %v1694_v23 = vmax.f32 %v8615_v6, 0.0 }
  0xf2   : > { %v1724_v9 = vpack.c.bf16 %v1708_v54, %v1692_v60 }
  0xf3   : > { %2897 = vmatpush.bf16.msra.mxu0 %v6822_v10  ;;  %2911 = vmatpush.bf16.msra.mxu1 %v6830_v14  ;;  %v8622_v10 = vadd.f32 %v1631_v63, %v1595_v62  ;;  %v1725_v14 = vpack.c.bf16 %v1709_v7, %v1693_v1  ;;  %v1437_v55 = vpop.f32.mrf.mxu3  ;;  %v8688_v62 = vld [vmem:[#allocation4 + $0x8] sm:$0xff] }
  0xf4   : > { %v1423_v12 = vpop.f32.mrf.mxu2  ;;  %v1611_v18 = vmul.f32 %v1563_v36, %v1437_v55  ;;  %2846 = vmatmul.bf16.vlgmr.msrb.gmra.mxu0 %v1724_v9  ;;  %v6856_v36 = vld [vmem:[%s9470_s5 + $0x330] sm:$0xff]  ;;  %v1632_v9 = vperm.slane %v8688_v62, 0 }
  0xf5   : > { %2925 = vmatpush.bf16.msra.mxu2 %v6838_v28  ;;  %2939 = vmatpush.bf16.msra.mxu3 %v6846_v31  ;;  %v1610_v15 = vmul.f32 %v1562_v33, %v1423_v12  ;;  %v6843_v28 = vld [vmem:[%s9470_s5 + $0x2c8] sm:$0xff]  ;;  %v1695_v31 = vmax.f32 %v8622_v10, 0.0  ;;  %v6862_v12 = vld [vmem:[%s9470_s5 + $0x360] sm:$0xff] }
  0xf6   : > { %2860 = vmatmul.bf16.vlgmr.msrb.gmra.mxu1 %v1725_v14  ;;  %v8650_v33 = vadd.f32 %v1631_v63, %v1611_v18  ;;  %v1564_v63 = vperm.slane %v8680_v57, 0  ;;  %v1633_v14 = vperm.slane %v8688_v62, 1 }
  0xf7   : > { %2898 = vmatpush.bf16.msra.mxu0 %v6821_v19  ;;  %2912 = vmatpush.bf16.msra.mxu1 %v6829_v24  ;;  %v6865_v19 = vld [vmem:[%s9470_s5 + $0x378] sm:$0xff]  ;;  %v8644_v24 = vadd.f32 %v1630_v58, %v1610_v15  ;;  %v6855_v58 = vld [vmem:[%s9470_s5 + $0x328] sm:$0xff] }
  0xf9   : > { %2926 = vmatpush.bf16.msra.mxu2 %v6837_v44  ;;  %2940 = vmatpush.bf16.msra.mxu3 %v6845_v53  ;;  %v1710_v35 = vmax.f32 %v8644_v24, 0.0  ;;  %v6842_v44 = vld [vmem:[%s9470_s5 + $0x2c0] sm:$0xff]  ;;  %v6881_v53 = vld [vmem:[%s9470_s5 + $0x3f8] sm:$0xff] }
  0xfb   : > { %2899 = vmatpush.bf16.msra.mxu0 %v6820_v37  ;;  %2913 = vmatpush.bf16.msra.mxu1 %v6828_v43  ;;  %v1711_v37 = vmax.f32 %v8650_v33, 0.0  ;;  %v1726_v41 = vpack.c.bf16 %v1710_v35, %v1694_v23  ;;  %v6834_v43 = vld [vmem:[%s9470_s5 + $0x280] sm:$0xff] }
  0xfd   : > { %2927 = vmatpush.bf16.msra.mxu2 %v6836_v4  ;;  %2941 = vmatpush.bf16.msra.mxu3 %v6844_v5  ;;  %v1727_v47 = vpack.c.bf16 %v1711_v37, %v1695_v31  ;;  %v1565_v4 = vperm.slane %v8680_v57, 1  ;;  %v6854_v5 = vld [vmem:[%s9470_s5 + $0x320] sm:$0xff] }
  0xfe   : > { %2874 = vmatmul.bf16.vlgmr.msrb.gmra.mxu2 %v1726_v41 }
  0xff   : > { %2900 = vmatpush.bf16.msra.mxu0 %v6819_v0  ;;  %2914 = vmatpush.bf16.msra.mxu1 %v6827_v3  ;;  %v6872_v0 = vld [vmem:[%s9470_s5 + $0x3b0] sm:$0xff] }
 0x100   : > { %2888 = vmatmul.bf16.vlgmr.msrb.gmra.mxu3 %v1727_v47  ;;  %v6880_v3 = vld [vmem:[%s9470_s5 + $0x3f0] sm:$0xff]  ;;  %v6878_v47 = vld [vmem:[%s9470_s5 + $0x3e0] sm:$0xff] }
 0x101   : > { %2928 = vmatpush.bf16.msra.mxu2 %v6835_v20  ;;  %2942 = vmatpush.bf16.msra.mxu3 %v6843_v28  ;;  %v6861_v28 = vld [vmem:[%s9470_s5 + $0x358] sm:$0xff] }
 0x103   : > { %2901 = vmatpush.bf16.msra.mxu0 %v6818_v13  ;;  %2915 = vmatpush.bf16.msra.mxu1 %v6826_v16  ;;  %v1449_v13 = vpop.f32.mrf.mxu0  ;;  %v1463_v55 = vpop.f32.mrf.mxu1  ;;  %v6871_v16 = vld [vmem:[%s9470_s5 + $0x3a8] sm:$0xff] }
 0x104   : > { %v1596_v15 = vmul.f32 %v1564_v63, %v1449_v13  ;;  %v1597_v18 = vmul.f32 %v1565_v4, %v1463_v55 }
 0x105   : > { %2929 = vmatpush.bf16.msra.mxu2 %v6834_v43  ;;  %2943 = vmatpush.bf16.msra.mxu3 %v6842_v44  ;;  %v1567_v43 = vperm.slane %v8680_v57, 3  ;;  %v6870_v44 = vld [vmem:[%s9470_s5 + $0x3a0] sm:$0xff] }
 0x106   : > { %v1664_v20 = vadd.f32 %v1632_v9, %v1596_v15 }
 0x107   : > { %2950 = vmatpush.bf16.msrb.mxu0 %v6857_v17  ;;  %2964 = vmatpush.bf16.msrb.mxu1 %v6865_v19  ;;  %v6879_v17 = vld [vmem:[%s9470_s5 + $0x3e8] sm:$0xff]  ;;  %v6853_v19 = vld [vmem:[%s9470_s5 + $0x318] sm:$0xff] }
 0x108   : > { %v1696_v41 = vmax.f32 %v1664_v20, 0.0 }
 0x109   : > { %2978 = vmatpush.bf16.msrb.mxu2 %v6873_v48  ;;  %2992 = vmatpush.bf16.msrb.mxu3 %v6881_v53  ;;  %v1634_v53 = vperm.slane %v8688_v62, 2 }
 0x10b   : > { %2951 = vmatpush.bf16.msrb.mxu0 %v6856_v36  ;;  %2965 = vmatpush.bf16.msrb.mxu1 %v6864_v39  ;;  %v1665_v36 = vadd.f32 %v1633_v14, %v1597_v18  ;;  %v1566_v39 = vperm.slane %v8680_v57, 2  ;;  %v1491_v15 = vpop.f32.mrf.mxu3  ;;  %v1451_v55 = vpop.f32.mrf.mxu0  ;;  %v6877_v18 = vld [vmem:[%s9470_s5 + $0x3d8] sm:$0xff] }
 0x10c   : > { %v1465_v8 = vpop.f32.mrf.mxu1 }
 0x10d   : > { %2979 = vmatpush.bf16.msrb.mxu2 %v6872_v0  ;;  %2993 = vmatpush.bf16.msrb.mxu3 %v6880_v3  ;;  %v1697_v48 = vmax.f32 %v1665_v36, 0.0  ;;  %v1477_v0 = vpop.f32.mrf.mxu2  ;;  %v1635_v3 = vperm.slane %v8688_v62, 3  ;;  %v1613_v11 = vmul.f32 %v1565_v4, %v1465_v8  ;;  %v5986_v4 = vsel %vm3006_vm2, 1.0, %v7325_v56 }
 0x10e   : > { %v1598_v13 = vmul.f32 %v1566_v39, %v1477_v0 }
 0x10f   : > { %2952 = vmatpush.bf16.msrb.mxu0 %v6855_v58  ;;  %2966 = vmatpush.bf16.msrb.mxu1 %v6863_v59  ;;  %v6852_v58 = vld [vmem:[%s9470_s5 + $0x310] sm:$0xff]  ;;  %v8732_v59 = vmax.f32 %v1688_v21, %v1696_v41  ;;  %v6869_v21 = vld [vmem:[%s9470_s5 + $0x398] sm:$0xff] }
 0x111   : > { %2980 = vmatpush.bf16.msrb.mxu2 %v6871_v16  ;;  %2994 = vmatpush.bf16.msrb.mxu3 %v6879_v17  ;;  %v1599_v16 = vmul.f32 %v1567_v43, %v1491_v15  ;;  %v1612_v17 = vmul.f32 %v1564_v63, %v1451_v55 }
 0x113   : > { %2953 = vmatpush.bf16.msrb.mxu0 %v6854_v5  ;;  %2967 = vmatpush.bf16.msrb.mxu1 %v6862_v12  ;;  %v6860_v5 = vld [vmem:[%s9470_s5 + $0x350] sm:$0xff]  ;;  %v8740_v12 = vmax.f32 %v1689_v25, %v1697_v48  ;;  %v6851_v25 = vld [vmem:[%s9470_s5 + $0x308] sm:$0xff]  ;;  %v1667_v20 = vadd.f32 %v1635_v3, %v1599_v16  ;;  %v1680_v63 = vadd.f32 %v1632_v9, %v1612_v17  ;;  %v1493_v22 = vpop.f32.mrf.mxu3 }
 0x114   : > { %v6868_v9 = vld [vmem:[%s9470_s5 + $0x390] sm:$0xff] }
 0x115   : > { %2981 = vmatpush.bf16.msrb.mxu2 %v6870_v44  ;;  %2995 = vmatpush.bf16.msrb.mxu3 %v6878_v47  ;;  %v1681_v44 = vadd.f32 %v1633_v14, %v1613_v11  ;;  %v5987_v47 = vsel %vm3007_vm3, 1.0, %v7325_v56  ;;  %v1712_v0 = vmax.f32 %v1680_v63, 0.0  ;;  %v6876_v14 = vld [vmem:[%s9470_s5 + $0x3d0] sm:$0xff]  ;;  %v1479_v8 = vpop.f32.mrf.mxu2  ;;  %v6874_v11 = vld [vmem:[%s9470_s5 + $0x3c0] sm:$0xff]  ;;  %v1568_v63 = vperm.slane %v8680_v57, 4 }
 0x117   : > { %2954 = vmatpush.bf16.msrb.mxu0 %v6853_v19  ;;  %2968 = vmatpush.bf16.msrb.mxu1 %v6861_v28  ;;  %v1666_v19 = vadd.f32 %v1634_v53, %v1598_v13  ;;  %v6859_v28 = vld [vmem:[%s9470_s5 + $0x348] sm:$0xff]  ;;  %v1713_v15 = vmax.f32 %v1681_v44, 0.0  ;;  %v1728_v16 = vpack.c.bf16 %v1712_v0, %v1696_v41  ;;  %v8774_v17 = vmax.f32 %v1704_v30, %v1712_v0 }
 0x118   : > { %v1615_v30 = vmul.f32 %v1567_v43, %v1493_v22  ;;  %v6867_v41 = vld [vmem:[%s9470_s5 + $0x388] sm:$0xff] }
 0x119   : > { %v1698_v36 = vmax.f32 %v1666_v19, 0.0  ;;  %2982 = vmatpush.bf16.msrb.mxu2 %v6869_v21  ;;  %2996 = vmatpush.bf16.msrb.mxu3 %v6877_v18  ;;  %v1729_v21 = vpack.c.bf16 %v1713_v15, %v1697_v48  ;;  %v8784_v29 = vmax.f32 %v1705_v32, %v1713_v15  ;;  %v6875_v48 = vld [vmem:[%s9470_s5 + $0x3c8] sm:$0xff] }
 0x11a   : > { %2902 = vmatmul.bf16.vlgmr.msra.gmra.mxu0 %v1728_v16  ;;  %v1683_v19 = vadd.f32 %v1635_v3, %v1615_v30 }
 0x11b   : > { %2955 = vmatpush.bf16.msrb.mxu0 %v6852_v58  ;;  %2969 = vmatpush.bf16.msrb.mxu1 %v6860_v5  ;;  %v1699_v58 = vmax.f32 %v1667_v20, 0.0  ;;  %v7095_v5 = vpack.i.bf16 %v5987_v47, %v5986_v4  ;;  %v8763_v13 = vmax.f32 %v1690_v40, %v1698_v36  ;;  %v6858_v40 = vld [vmem:[%s9470_s5 + $0x340] sm:$0xff]  ;;  %v5988_v20 = vsel %vm3027_vm4, 1.0, %v7325_v56 }
 0x11c   : > { %2916 = vmatmul.bf16.vlgmr.msra.gmra.mxu1 %v1729_v21  ;;  %v1715_v32 = vmax.f32 %v1683_v19, 0.0  ;;  %v1637_v4 = vperm.slane %v8688_v62, 5 }
 0x11d   : > { %v8770_v55 = vmax.f32 %v1691_v45, %v1699_v58  ;;  %7096 = vperm.xlu0 %7089, %v7095_v5   ;;  %v1614_v45 = vmul.f32 %v1566_v39, %v1479_v8  ;;  %2983 = vmatpush.bf16.msrb.mxu2 %v6868_v9  ;;  %v6866_v39 = vld [vmem:[%s9470_s5 + $0x380] sm:$0xff]  ;;  %v1570_v5 = vperm.slane %v8680_v57, 6 }
 0x11e   : > { %2997 = vmatpush.bf16.msrb.mxu3 %v6876_v14  ;;  %v1731_v3 = vpack.c.bf16 %v1715_v32, %v1699_v58  ;;  %v1571_v14 = vperm.slane %v8680_v57, 7 }
 0x11f   : > { %2956 = vmatpush.bf16.msrb.mxu0 %v6851_v25  ;;  %2970 = vmatpush.bf16.msrb.mxu1 %v6859_v28  ;;  %v1682_v18 = vadd.f32 %v1634_v53, %v1614_v45  ;;  %v8806_v25 = vmax.f32 %v1707_v52, %v1715_v32  ;;  %v5990_v52 = vsel %vm3048_vm6, 1.0, %v7325_v56  ;;  %v5991_v28 = vsel %vm3049_vm7, 1.0, %v7325_v56 }
 0x120   : > { %2944 = vmatmul.bf16.vlgmr.msra.gmra.mxu3 %v1731_v3  ;;  %v7106_v51 = vpack.i.bf16 %v5991_v28, %v5990_v52  ;;  %v1638_v56 = vperm.slane %v8688_v62, 6 }
 0x121   : > { %v1714_v27 = vmax.f32 %v1682_v18, 0.0  ;;  %2984 = vmatpush.bf16.msrb.mxu2 %v6867_v41 }
 0x122   : > { %2998 = vmatpush.bf16.msrb.mxu3 %v6875_v48 }
 0x123   : > { %2957 = vmatpush.bf16.msrb.mxu0 %v6850_v26  ;;  %2971 = vmatpush.bf16.msrb.mxu1 %v6858_v40  ;;  %v1730_v43 = vpack.c.bf16 %v1714_v27, %v1698_v36  ;;  %v8797_v53 = vmax.f32 %v1706_v50, %v1714_v27  ;;  %v7101_v50 = vpack.i.bf16 %v5989_v42, %v5988_v20  ;;  %v1636_v36 = vperm.slane %v8688_v62, 4  ;;  %v1505_v44 = vpop.f32.mrf.mxu0  ;;  %v1519_v47 = vpop.f32.mrf.mxu1 }
 0x124   : > { %v1600_v49 = vmul.f32 %v1568_v63, %v1505_v44  ;;  %v1601_v58 = vmul.f32 %v1569_v46, %v1519_v47  ;;  %v1639_v40 = vperm.slane %v8688_v62, 7 }
 0x125   : > { %2930 = vmatmul.bf16.vlgmr.msra.gmra.mxu2 %v1730_v43  ;;  %7102 = vperm.xlu1 %7100, %v7101_v50  }
 0x126   : > { %2985 = vmatpush.bf16.msrb.mxu2 %v6866_v39  ;;  %2999 = vmatpush.bf16.msrb.mxu3 %v6874_v11  ;;  %v1668_v0 = vadd.f32 %v1636_v36, %v1600_v49  ;;  %v1669_v9 = vadd.f32 %v1637_v4, %v1601_v58 }
 0x128   : > { %v1700_v15 = vmax.f32 %v1668_v0, 0.0  ;;  %v1701_v16 = vmax.f32 %v1669_v9, 0.0 }
 0x12a   : > { %v8823_v8 = vmax.f32 %v1692_v60, %v1700_v15  ;;  %v8828_v21 = vmax.f32 %v1693_v1, %v1701_v16 }
 0x12b   : > { %v1533_v26 = vpop.f32.mrf.mxu2  ;;  %v1547_v22 = vpop.f32.mrf.mxu3 }
 0x12c   : > { %v1602_v45 = vmul.f32 %v1570_v5, %v1533_v26  ;;  %v1507_v30 = vpop.f32.mrf.mxu0  ;;  %v1603_v41 = vmul.f32 %v1571_v14, %v1547_v22  ;;  %v1521_v18 = vpop.f32.mrf.mxu1 }
 0x12d   : > { %7107 = vperm.xlu1 %7100, %v7106_v51   ;;  %v1616_v57 = vmul.f32 %v1568_v63, %v1507_v30  ;;  %v1617_v19 = vmul.f32 %v1569_v46, %v1521_v18 }
 0x12e   : > { %v1670_v48 = vadd.f32 %v1638_v56, %v1602_v45  ;;  %v1671_v27 = vadd.f32 %v1639_v40, %v1603_v41 }
 0x12f   : > { %v1684_v32 = vadd.f32 %v1636_v36, %v1616_v57  ;;  %v1685_v60 = vadd.f32 %v1637_v4, %v1617_v19  ;;  %v8857_v4 = vld [vmem:[%s9471_s6] sm:$0xf] }
 0x130   : > { %v1702_v34 = vmax.f32 %v1670_v48, 0.0  ;;  %v1703_v39 = vmax.f32 %v1671_v27, 0.0  ;;  %v2011_v24 = vperm.slane %v8857_v4, 0 }
 0x131   : > { %v1716_v43 = vmax.f32 %v1684_v32, 0.0  ;;  %v1717_v38 = vmax.f32 %v1685_v60, 0.0 }
 0x132   : > { %v8832_v62 = vmax.f32 %v1694_v23, %v1702_v34  ;;  %v8836_v1 = vmax.f32 %v1695_v31, %v1703_v39 }
 0x133   : > { %v1732_v11 = vpack.c.bf16 %v1716_v43, %v1700_v15  ;;  %v8840_v3 = vmax.f32 %v1708_v54, %v1716_v43  ;;  %v1535_v20 = vpop.f32.mrf.mxu2  ;;  %v1733_v42 = vpack.c.bf16 %v1717_v38, %v1701_v16  ;;  %v8844_v50 = vmax.f32 %v1709_v7, %v1717_v38  ;;  %v1549_v6 = vpop.f32.mrf.mxu3 }
 0x134   : > { %9496 = vst [vmem:[#allocation12_spill] sm:$0xff] %v8832_v62  ;;  %v1618_v63 = vmul.f32 %v1570_v5, %v1535_v20  ;;  %v1619_v23 = vmul.f32 %v1571_v14, %v1549_v6  ;;  %v6892_v62 = vld [vmem:[#allocation6 + $0x54] sm:$0xf] }
 0x135   : > { %9497 = vst [vmem:[#allocation13_spill] sm:$0xff] %v8836_v1  ;;  %2958 = vmatmul.bf16.vlgmr.msrb.gmra.mxu0 %v1732_v11  ;;  %2972 = vmatmul.bf16.vlgmr.msrb.gmra.mxu1 %v1733_v42  ;;  %v9174_v1 = vld [vmem:[#allocation6 + $0x168] sm:$0xf0] }
 0x136   : > { %9498 = vst [vmem:[#allocation14_spill] sm:$0xff] %v8840_v3  ;;  %v1686_v46 = vadd.f32 %v1638_v56, %v1618_v63  ;;  %v1687_v10 = vadd.f32 %v1639_v40, %v1619_v23  ;;  %v6116_v3 = vld [vmem:[#allocation6 + $0xc8] sm:$0xf0] }
 0x138   : > { %v1718_v31 = vmax.f32 %v1686_v46, 0.0  ;;  %v1719_v52 = vmax.f32 %v1687_v10, 0.0  ;;  %v3072_v10 = vld [vmem:[%s9472_s7] sm:$0xff] }
 0x13a   : > { %v1734_v28 = vpack.c.bf16 %v1718_v31, %v1702_v34  ;;  %v8848_v61 = vmax.f32 %v1710_v35, %v1718_v31  ;;  %v1735_v54 = vpack.c.bf16 %v1719_v52, %v1703_v39  ;;  %v8852_v2 = vmax.f32 %v1711_v37, %v1719_v52  ;;  %v3073_v31 = vld [vmem:[%s9472_s7 + $0x8] sm:$0xff]  ;;  %v3074_v52 = vld [vmem:[%s9472_s7 + $0x10] sm:$0xff] }
 0x13c   : > { %9499 = vst [vmem:[#allocation15_spill] sm:$0xff] %v8848_v61  ;;  %2986 = vmatmul.bf16.vlgmr.msrb.gmra.mxu2 %v1734_v28  ;;  %3000 = vmatmul.bf16.vlgmr.msrb.gmra.mxu3 %v1735_v54  ;;  %v3080_v28 = vunpack.c.l.b16 %v3072_v10  ;;  %v3081_v54 = vunpack.c.h.b16 %v3072_v10 }
 0x13d   : > { %9500 = vst [vmem:[#allocation16_spill] sm:$0xff] %v8852_v2 }
 0x14c   : > { %v7092_v49 = vpop.permute.xlu0 %7091 }
 0x14d   : > { %v7093_v35 = vunpack.i.l.bf16 %v7092_v49  ;;  %v7094_v5 = vunpack.i.h.bf16 %v7092_v49  ;;  %v3088_v49 = vpack.c.b16 %v3080_v28, %v3080_v28 }
 0x14f   : > { %v2012_v33 = vmul.f32 %v7093_v35, %v2011_v24  ;;  %v2013_v56 = vmul.f32 %v7094_v5, %v2011_v24 }
 0x151   : > { %v2791_v7 = vpop.f32.mrf.mxu0 }
 0x152   : > { %v2792_v0 = vadd.f32 %v2791_v7, %v2012_v33  ;;  %v3082_v7 = vunpack.c.l.b16 %v3073_v31  ;;  %v3102_v33 = vsel %vm3100_vm8, %v3088_v49, 0 }
 0x153   : > { %v2805_v36 = vpop.f32.mrf.mxu1  ;;  %3132 = vmatpush.bf16.msra.mxu3 %v3102_v33 }
 0x154   : > { %v2806_v14 = vadd.f32 %v2805_v36, %v2792_v0  ;;  %v3084_v36 = vunpack.c.l.b16 %v3074_v52  ;;  %v3090_v24 = vpack.c.b16 %v3082_v7, %v3082_v7 }
 0x156   : > { %v3092_v35 = vpack.c.b16 %v3084_v36, %v3084_v36  ;;  %v3108_v0 = vsel %vm3100_vm8, %v3090_v24, 0 }
 0x157   : > { %3160 = vmatpush.bf16.msra.mxu2 %v3108_v0 }
 0x159   : > { %v2793_v44 = vpop.f32.mrf.mxu0 }
 0x15a   : > { %v2794_v22 = vadd.f32 %v2793_v44, %v2013_v56 }
 0x15b   : > { %v2807_v58 = vpop.f32.mrf.mxu1 }
 0x15c   : > { %v2808_v57 = vadd.f32 %v2807_v58, %v2794_v22 }
 0x15f   : > { %v2833_v51 = vpop.f32.mrf.mxu3 }
 0x161   : > { %v2819_v47 = vpop.f32.mrf.mxu2 }
 0x162   : > { %v2820_v26 = vadd.f32 %v2819_v47, %v2806_v14  ;;  %v3089_v47 = vpack.c.b16 %v3081_v54, %v3081_v54 }
 0x164   : > { %v2834_v41 = vadd.f32 %v2833_v51, %v2820_v26  ;;  %v3083_v26 = vunpack.c.h.b16 %v3073_v31 }
 0x167   : > { %v2835_v15 = vpop.f32.mrf.mxu3 }
 0x169   : > { %v2821_v9 = vpop.f32.mrf.mxu2 }
 0x16a   : > { %v2822_v27 = vadd.f32 %v2821_v9, %v2808_v57 }
 0x16c   : > { %v2836_v39 = vadd.f32 %v2835_v15, %v2822_v27  ;;  %v3114_v15 = vsel %vm3100_vm8, %v3092_v35, 0 }
 0x16d   : > { %3188 = vmatpush.bf16.msra.mxu0 %v3114_v15 }
 0x171   : > { %v2847_v37 = vpop.f32.mrf.mxu0 }
 0x172   : > { %v2848_v48 = vadd.f32 %v2847_v37, %v2834_v41  ;;  %v3105_v37 = vsel %vm3100_vm8, %v3089_v47, 0 }
 0x173   : > { %v2861_v16 = vpop.f32.mrf.mxu1  ;;  %3146 = vmatpush.bf16.msra.mxu1 %v3105_v37 }
 0x174   : > { %v2862_v34 = vadd.f32 %v2861_v16, %v2848_v48 }
 0x179   : > { %v2849_v40 = vpop.f32.mrf.mxu0 }
 0x17a   : > { %v2850_v11 = vadd.f32 %v2849_v40, %v2836_v39  ;;  %v3085_v40 = vunpack.c.h.b16 %v3074_v52  ;;  %v3043_v52 = vperm.slane %v8857_v4, 2 }
 0x17b   : > { %v2863_v18 = vpop.f32.mrf.mxu1 }
 0x17c   : > { %v2864_v6 = vadd.f32 %v2863_v18, %v2850_v11  ;;  %v3091_v18 = vpack.c.b16 %v3083_v26, %v3083_v26  ;;  %v3093_v48 = vpack.c.b16 %v3085_v40, %v3085_v40 }
 0x17e   : > { %v3117_v39 = vsel %vm3100_vm8, %v3093_v48, 0 }
 0x17f   : > { %3202 = vmatpush.bf16.msrb.mxu1 %v3117_v39  ;;  %v6913_v39 = vld [vmem:[#allocation6 + $0xf4] sm:$0xf0] }
 0x181   : > { %v2875_v45 = vpop.f32.mrf.mxu2 }
 0x182   : > { %v2876_v43 = vadd.f32 %v2875_v45, %v2862_v34  ;;  %v3075_v45 = vld [vmem:[%s9472_s7 + $0x18] sm:$0xff] }
 0x183   : > { %v2889_v30 = vpop.f32.mrf.mxu3  ;;  %v3086_v41 = vunpack.c.l.b16 %v3075_v45 }
 0x184   : > { %v2890_v20 = vadd.f32 %v2889_v30, %v2876_v43 }
 0x189   : > { %v2877_v32 = vpop.f32.mrf.mxu2 }
 0x18a   : > { %v2878_v44 = vadd.f32 %v2877_v32, %v2864_v6  ;;  %v3094_v32 = vpack.c.b16 %v3086_v41, %v3086_v41  ;;  %v3022_v6 = vperm.slane %v8857_v4, 1 }
 0x18b   : > { %v2891_v60 = vpop.f32.mrf.mxu3 }
 0x18c   : > { %v2892_v9 = vadd.f32 %v2891_v60, %v2878_v44  ;;  %v3111_v60 = vsel %vm3100_vm8, %v3091_v18, 0 }
 0x18d   : > { %3174 = vmatpush.bf16.msrb.mxu3 %v3111_v60  ;;  %v6138_v60 = vld [vmem:[#allocation6 + $0xf0] sm:$0xf] }
 0x18f   : > { %v7097_v11 = vpop.permute.xlu0 %7096 }
 0x190   : > { %v7099_v49 = vunpack.i.h.bf16 %v7097_v11 }
 0x197   : > { %v2903_v19 = vpop.f32.mrf.mxu0  ;;  %v7103_v57 = vpop.permute.xlu1 %7102 }
 0x198   : > { %v2904_v23 = vadd.f32 %v2903_v19, %v2890_v20  ;;  %v7104_v28 = vunpack.i.l.bf16 %v7103_v57  ;;  %v7105_v0 = vunpack.i.h.bf16 %v7103_v57 }
 0x199   : > { %v2917_v38 = vpop.f32.mrf.mxu1 }
 0x19a   : > { %v2918_v51 = vadd.f32 %v2917_v38, %v2904_v23  ;;  %v3120_v38 = vsel %vm3100_vm8, %v3094_v32, 0  ;;  %v7098_v23 = vunpack.i.l.bf16 %v7097_v11  ;;  %v3044_v47 = vmul.f32 %v7104_v28, %v3043_v52  ;;  %v6074_v11 = vld [vmem:[#allocation6 + $0x70] sm:$0xf]  ;;  %v6909_v28 = vld [vmem:[#allocation6 + $0xd4] sm:$0xf0] }
 0x19b   : > { %3216 = vmatpush.bf16.msrb.mxu2 %v3120_v38  ;;  %v3045_v40 = vmul.f32 %v7105_v0, %v3043_v52  ;;  %v6911_v38 = vld [vmem:[#allocation6 + $0xe4] sm:$0xf0] }
 0x19c   : > { %v3023_v44 = vmul.f32 %v7098_v23, %v3022_v6  ;;  %v6895_v52 = vld [vmem:[#allocation6 + $0x64] sm:$0xf0] }
 0x19f   : > { %v2905_v42 = vpop.f32.mrf.mxu0  ;;  %v7108_v36 = vpop.permute.xlu1 %7107 }
 0x1a0   : > { %v2906_v16 = vadd.f32 %v2905_v42, %v2892_v9  ;;  %v7109_v33 = vunpack.i.l.bf16 %v7108_v36 }
 0x1a1   : > { %v2919_v58 = vpop.f32.mrf.mxu1 }
 0x1a2   : > { %v2920_v19 = vadd.f32 %v2919_v58, %v2906_v16  ;;  %v3064_v58 = vperm.slane %v8857_v4, 3  ;;  %v7110_v16 = vunpack.i.h.bf16 %v7108_v36  ;;  %v6927_v36 = vld [vmem:[#allocation6 + $0x164] sm:$0xf0] }
 0x1a3   : > { %v2945_v46 = vpop.f32.mrf.mxu3 }
 0x1a4   : > { %v3066_v41 = vmul.f32 %v7110_v16, %v3064_v58  ;;  %v6050_v16 = vld [vmem:[#allocation6 + $0x40] sm:$0xf] }
 0x1a8   : > { %v2931_v63 = vpop.f32.mrf.mxu2 }
 0x1a9   : > { %v2932_v5 = vadd.f32 %v2931_v63, %v2918_v51 }
 0x1ab   : > { %v2946_v22 = vadd.f32 %v2945_v46, %v2932_v5  ;;  %v2947_v30 = vpop.f32.mrf.mxu3  ;;  %v3024_v5 = vmul.f32 %v7099_v49, %v3022_v6  ;;  %v6929_v6 = vld [vmem:[#allocation6 + $0x174] sm:$0xf0]  ;;  %v6058_v49 = vld [vmem:[#allocation6 + $0x50] sm:$0xf] }
 0x1b0   : > { %v2933_v56 = vpop.f32.mrf.mxu2 }
 0x1b1   : > { %v2934_v43 = vadd.f32 %v2933_v56, %v2920_v19  ;;  %v3065_v56 = vmul.f32 %v7109_v33, %v3064_v58  ;;  %v6114_v58 = vld [vmem:[#allocation6 + $0xc0] sm:$0xf]  ;;  %v6907_v33 = vld [vmem:[#allocation6 + $0xc4] sm:$0xf0] }
 0x1b2   : > { %v2959_v14 = vpop.f32.mrf.mxu0  ;;  %v2973_v34 = vpop.f32.mrf.mxu1 }
 0x1b3   : > { %v2960_v27 = vadd.f32 %v2959_v14, %v2946_v22  ;;  %v2948_v46 = vadd.f32 %v2947_v30, %v2934_v43  ;;  %v3087_v30 = vunpack.c.h.b16 %v3075_v45  ;;  %v6130_v43 = vld [vmem:[#allocation6 + $0xe0] sm:$0xf]  ;;  %v6139_v45 = vor.u32 %v6913_v39, %v6138_v60  ;;  %v6266_v60 = vld [vmem:[#allocation6 + $0x1f0] sm:$0xf]  ;;  %v6945_v39 = vld [vmem:[#allocation6 + $0x1f4] sm:$0xf0] }
 0x1b4   : > { %v6131_v23 = vor.u32 %v6911_v38, %v6130_v43  ;;  %v6267_v43 = vor.u32 %v6945_v39, %v6266_v60  ;;  %v6901_v38 = vld [vmem:[#allocation6 + $0x94] sm:$0xf0]  ;;  %v6378_v60 = vld [vmem:[#allocation6 + $0x2d0] sm:$0xf] }
 0x1b5   : > { %v2974_v20 = vadd.f32 %v2973_v34, %v2960_v27  ;;  %v3095_v27 = vpack.c.b16 %v3087_v30, %v3087_v30  ;;  %v6973_v39 = vld [vmem:[#allocation6 + $0x2d4] sm:$0xf0] }
 0x1b7   : > { %v3123_v57 = vsel %vm3100_vm8, %v3095_v27, 0  ;;  %v6889_v27 = vld [vmem:[#allocation6 + $0x34] sm:$0xf0] }
 0x1ba   : > { %v2961_v42 = vpop.f32.mrf.mxu0  ;;  %v2975_v24 = vpop.f32.mrf.mxu1 }
 0x1bb   : > { %v2962_v54 = vadd.f32 %v2961_v42, %v2948_v46 }
 0x1bd   : > { %v2976_v35 = vadd.f32 %v2975_v24, %v2962_v54  ;;  %v6186_v24 = vld [vmem:[#allocation6 + $0x150] sm:$0xf] }
 0x1bf   : > { %v2987_v63 = vpop.f32.mrf.mxu2  ;;  %v3001_v31 = vpop.f32.mrf.mxu3 }
 0x1c0   : > { %v2988_v10 = vadd.f32 %v2987_v63, %v2974_v20  ;;  %v6897_v20 = vld [vmem:[#allocation6 + $0x74] sm:$0xf0]  ;;  %v6202_v63 = vld [vmem:[#allocation6 + $0x170] sm:$0xf] }
 0x1c1   : > { %v6075_v42 = vor.u32 %v6897_v20, %v6074_v11  ;;  %v6203_v46 = vor.u32 %v6929_v6, %v6202_v63  ;;  %v6034_v20 = vld [vmem:[#allocation6 + $0x20] sm:$0xf] }
 0x1c2   : > { %v3002_v7 = vadd.f32 %v3001_v31, %v2988_v10  ;;  %v6122_v10 = vld [vmem:[#allocation6 + $0xd0] sm:$0xf]  ;;  %v6066_v31 = vld [vmem:[#allocation6 + $0x60] sm:$0xf] }
 0x1c3   : > { %4355 = vmatpush.bf16.msrb.mxu0 %v6075_v42  ;;  %v6067_v54 = vor.u32 %v6895_v52, %v6066_v31  ;;  %v6887_v42 = vld [vmem:[#allocation6 + $0x24] sm:$0xf0]  ;;  %v6162_v63 = vld [vmem:[#allocation6 + $0x120] sm:$0xf] }
 0x1c4   : > { %v3025_v51 = vadd.f32 %v3023_v44, %v3002_v7  ;;  %v6194_v7 = vld [vmem:[#allocation6 + $0x160] sm:$0xf]  ;;  %v6035_v6 = vor.u32 %v6887_v42, %v6034_v20  ;;  %v6959_v42 = vld [vmem:[#allocation6 + $0x264] sm:$0xf0] }
 0x1c5   : > { %v6195_v44 = vor.u32 %v6927_v36, %v6194_v7  ;;  %v6394_v36 = vld [vmem:[#allocation6 + $0x2f0] sm:$0xf]  ;;  %v6322_v20 = vld [vmem:[#allocation6 + $0x260] sm:$0xf] }
 0x1c6   : > { %v3046_v14 = vadd.f32 %v3044_v47, %v3025_v51  ;;  %v6893_v47 = vld [vmem:[#allocation6 + $0x54] sm:$0xf0]  ;;  %v6123_v51 = vor.u32 %v6909_v28, %v6122_v10  ;;  %v6943_v10 = vld [vmem:[#allocation6 + $0x1e4] sm:$0xf0]  ;;  %v6082_v28 = vld [vmem:[#allocation6 + $0x80] sm:$0xf] }
 0x1c7   : > { %v2989_v37 = vpop.f32.mrf.mxu2  ;;  %v3003_v15 = vpop.f32.mrf.mxu3  ;;  %4356 = vmatpush.bf16.msrb.mxu0 %v6067_v54  ;;  %v6899_v54 = vld [vmem:[#allocation6 + $0x84] sm:$0xf0] }
 0x1c8   : > { %v2990_v9 = vadd.f32 %v2989_v37, %v2976_v35  ;;  %v3067_v18 = vadd.f32 %v3065_v56, %v3046_v14  ;;  %v6925_v35 = vld [vmem:[#allocation6 + $0x154] sm:$0xf0]  ;;  %v6059_v37 = vor.u32 %v6893_v47, %v6058_v49  ;;  %v6891_v56 = vld [vmem:[#allocation6 + $0x44] sm:$0xf0]  ;;  %v6083_v7 = vor.u32 %v6899_v54, %v6082_v28  ;;  %v6026_v47 = vld [vmem:[#allocation6 + $0x10] sm:$0xf] }
 0x1c9   : > { %v6187_v0 = vor.u32 %v6925_v35, %v6186_v24  ;;  %v6885_v24 = vld [vmem:[#allocation6 + $0x14] sm:$0xf0]  ;;  %v6154_v35 = vld [vmem:[#allocation6 + $0x110] sm:$0xf]  ;;  %v6226_v28 = vld [vmem:[#allocation6 + $0x1a0] sm:$0xf] }
 0x1ca   : > { %v3004_v26 = vadd.f32 %v3003_v15, %v2990_v9  ;;  %v3069_v32 = vmax.f32 %v3067_v18, 0.0  ;;  %v6115_v9 = vor.u32 %v6907_v33, %v6114_v58  ;;  %v6905_v15 = vld [vmem:[#allocation6 + $0xb4] sm:$0xf0]  ;;  %v6903_v18 = vld [vmem:[#allocation6 + $0xa4] sm:$0xf0] }
 0x1cb   : > { %4357 = vmatpush.bf16.msrb.mxu0 %v6059_v37  ;;  %v6917_v58 = vld [vmem:[#allocation6 + $0x114] sm:$0xf0]  ;;  %v6250_v33 = vld [vmem:[#allocation6 + $0x1d0] sm:$0xf]  ;;  %v6935_v54 = vld [vmem:[#allocation6 + $0x1a4] sm:$0xf0] }
 0x1cc   : > { %v3026_v22 = vadd.f32 %v3024_v5, %v3004_v26  ;;  %v6106_v5 = vld [vmem:[#allocation6 + $0xb0] sm:$0xf]  ;;  %v6178_v26 = vld [vmem:[#allocation6 + $0x140] sm:$0xf]  ;;  %v6941_v37 = vld [vmem:[#allocation6 + $0x1d4] sm:$0xf0] }
 0x1cd   : > { %v6107_v14 = vor.u32 %v6905_v15, %v6106_v5  ;;  %v6386_v5 = vld [vmem:[#allocation6 + $0x2e0] sm:$0xf]  ;;  %v6975_v15 = vld [vmem:[#allocation6 + $0x2e4] sm:$0xf0] }
 0x1ce   : > { %v3047_v48 = vadd.f32 %v3045_v40, %v3026_v22  ;;  %v6051_v40 = vor.u32 %v6891_v56, %v6050_v16  ;;  %v6923_v22 = vld [vmem:[#allocation6 + $0x144] sm:$0xf0]  ;;  %v6018_v16 = vld [vmem:[#allocation6] sm:$0xf] }
 0x1cf   : > { %v6179_v30 = vor.u32 %v6923_v22, %v6178_v26  ;;  %v6883_v56 = vld [vmem:[#allocation6 + $0x4] sm:$0xf0]  ;;  %v6146_v26 = vld [vmem:[#allocation6 + $0x100] sm:$0xf] }
 0x1d0   : > { %v3068_v19 = vadd.f32 %v3066_v41, %v3047_v48  ;;  %v6098_v41 = vld [vmem:[#allocation6 + $0xa0] sm:$0xf]  ;;  %4358 = vmatpush.bf16.msrb.mxu0 %v6051_v40  ;;  %v6019_v40 = vor.u32 %v6883_v56, %v6018_v16  ;;  %v6915_v22 = vld [vmem:[#allocation6 + $0x104] sm:$0xf0] }
 0x1d1   : > { %v6099_v48 = vor.u32 %v6903_v18, %v6098_v41  ;;  %v6939_v41 = vld [vmem:[#allocation6 + $0x1c4] sm:$0xf0]  ;;  %v6147_v18 = vor.u32 %v6915_v22, %v6146_v26  ;;  %v6434_v16 = vld [vmem:[#allocation6 + $0x340] sm:$0xf] }
 0x1d2   : > { %v3070_v4 = vmax.f32 %v3068_v19, 0.0  ;;  %v6042_v19 = vld [vmem:[#allocation6 + $0x30] sm:$0xf]  ;;  %v6987_v22 = vld [vmem:[#allocation6 + $0x344] sm:$0xf0] }
 0x1d4   : > { %v3071_v34 = vpack.c.bf16 %v3070_v4, %v3069_v32  ;;  %v6170_v32 = vld [vmem:[#allocation6 + $0x130] sm:$0xf]  ;;  %v6043_v4 = vor.u32 %v6889_v27, %v6042_v19  ;;  %v6961_v27 = vld [vmem:[#allocation6 + $0x274] sm:$0xf0] }
 0x1d5   : > { %v6330_v19 = vld [vmem:[#allocation6 + $0x270] sm:$0xf] }
 0x1d6   : > { %5992 = vmatmul.msk.bf16.vlgmr.msra.gmra.mxu3 %vm3096_vm9, %v3071_v34  ;;  %5993 = vmatmul.msk.bf16.vlgmr.msra.gmra.mxu1 %vm3096_vm9, %v3071_v34 }
 0x1d7   : > { %5994 = vmatmul.msk.bf16.vlgmr.msra.gmra.mxu2 %vm3096_vm9, %v3071_v34  ;;  %5996 = vmatmul.msk.bf16.vlgmr.msra.gmra.mxu0 %vm3096_vm9, %v3071_v34 }
 0x1d8   : > { %3230 = vmatpush.bf16.msra.mxu3 %v3123_v57  ;;  %4369 = vmatpush.bf16.msra.mxu1 %v6139_v45  ;;  %v6921_v57 = vld [vmem:[#allocation6 + $0x134] sm:$0xf0]  ;;  %v6090_v45 = vld [vmem:[#allocation6 + $0x90] sm:$0xf] }
 0x1d9   : > { %4383 = vmatpush.bf16.msra.mxu2 %v6203_v46  ;;  %4359 = vmatpush.bf16.msrb.mxu0 %v6043_v4  ;;  %v6091_v11 = vor.u32 %v6901_v38, %v6090_v45  ;;  %v6258_v46 = vld [vmem:[#allocation6 + $0x1e0] sm:$0xf]  ;;  %v6331_v4 = vor.u32 %v6961_v27, %v6330_v19  ;;  %v6234_v45 = vld [vmem:[#allocation6 + $0x1b0] sm:$0xf]  ;;  %v6937_v38 = vld [vmem:[#allocation6 + $0x1b4] sm:$0xf0] }
 0x1da   : > { %v6259_v52 = vor.u32 %v6943_v10, %v6258_v46  ;;  %v6370_v10 = vld [vmem:[#allocation6 + $0x2c0] sm:$0xf] }
 0x1db   : > { %v6210_v27 = vld [vmem:[#allocation6 + $0x180] sm:$0xf] }
 0x1dc   : > { %4370 = vmatpush.bf16.msra.mxu1 %v6131_v23  ;;  %v6919_v23 = vld [vmem:[#allocation6 + $0x124] sm:$0xf0] }
 0x1dd   : > { %4384 = vmatpush.bf16.msra.mxu2 %v6195_v44  ;;  %v6163_v31 = vor.u32 %v6919_v23, %v6162_v63  ;;  %4360 = vmatpush.bf16.msrb.mxu0 %v6035_v6  ;;  %v6977_v44 = vld [vmem:[#allocation6 + $0x2f4] sm:$0xf0]  ;;  %v6450_v63 = vld [vmem:[#allocation6 + $0x360] sm:$0xf]  ;;  %v6323_v6 = vor.u32 %v6959_v42, %v6322_v20  ;;  %v6991_v23 = vld [vmem:[#allocation6 + $0x364] sm:$0xf0] }
 0x1de   : > { %v6395_v49 = vor.u32 %v6977_v44, %v6394_v36  ;;  %v6451_v46 = vor.u32 %v6991_v23, %v6450_v63  ;;  %v6314_v36 = vld [vmem:[#allocation6 + $0x250] sm:$0xf]  ;;  %v6957_v44 = vld [vmem:[#allocation6 + $0x254] sm:$0xf0] }
 0x1df   : > { %v6346_v63 = vld [vmem:[#allocation6 + $0x290] sm:$0xf] }
 0x1e0   : > { %4371 = vmatpush.bf16.msra.mxu1 %v6123_v51  ;;  %v6027_v51 = vor.u32 %v6885_v24, %v6026_v47  ;;  %v6315_v47 = vor.u32 %v6957_v44, %v6314_v36  ;;  %v6989_v24 = vld [vmem:[#allocation6 + $0x354] sm:$0xf0] }
 0x1e1   : > { %4385 = vmatpush.bf16.msra.mxu2 %v6187_v0  ;;  %v6155_v0 = vor.u32 %v6917_v58, %v6154_v35  ;;  %v6969_v58 = vld [vmem:[#allocation6 + $0x2b4] sm:$0xf0] }
 0x1e2   : > { %4361 = vmatpush.bf16.msrb.mxu0 %v6027_v51  ;;  %v6362_v51 = vld [vmem:[#allocation6 + $0x2b0] sm:$0xf] }
 0x1e4   : > { %4372 = vmatpush.bf16.msra.mxu1 %v6115_v9  ;;  %v6251_v9 = vor.u32 %v6941_v37, %v6250_v33  ;;  %v6363_v33 = vor.u32 %v6969_v58, %v6362_v51  ;;  %v6218_v37 = vld [vmem:[#allocation6 + $0x190] sm:$0xf] }
 0x1e5   : > { %4386 = vmatpush.bf16.msra.mxu2 %v6179_v30  ;;  %v6242_v30 = vld [vmem:[#allocation6 + $0x1c0] sm:$0xf] }
 0x1e6   : > { %5995 = vmatmul.msk.bf16.vlgmr.msrb.gmra.mxu3 %vm3096_vm9, %v3071_v34  ;;  %5997 = vmatmul.msk.bf16.vlgmr.msrb.gmra.mxu1 %vm3096_vm9, %v3071_v34 }
 0x1e7   : > { %5998 = vmatmul.msk.bf16.vlgmr.msrb.gmra.mxu2 %vm3096_vm9, %v3071_v34  ;;  %4397 = vmatpush.bf16.msrb.mxu3 %v6267_v43  ;;  %v6379_v43 = vor.u32 %v6973_v39, %v6378_v60  ;;  %v6953_v60 = vld [vmem:[#allocation6 + $0x234] sm:$0xf0]  ;;  %v6426_v39 = vld [vmem:[#allocation6 + $0x330] sm:$0xf] }
 0x1e8   : > { %4373 = vmatpush.bf16.msra.mxu1 %v6107_v14  ;;  %v6387_v14 = vor.u32 %v6975_v15, %v6386_v5  ;;  %4362 = vmatpush.bf16.msrb.mxu0 %v6019_v40  ;;  %v6306_v15 = vld [vmem:[#allocation6 + $0x240] sm:$0xf] }
 0x1eb   : > { %4398 = vmatpush.bf16.msrb.mxu3 %v6259_v52 }
 0x1ec   : > { %4374 = vmatpush.bf16.msra.mxu1 %v6099_v48  ;;  %v6243_v48 = vor.u32 %v6939_v41, %v6242_v30  ;;  %4411 = vmatpush.bf16.msra.mxu0 %v6331_v4  ;;  %v6435_v41 = vor.u32 %v6987_v22, %v6434_v16 }
 0x1ef   : > { %4399 = vmatpush.bf16.msrb.mxu3 %v6251_v9 }
 0x1f0   : > { %4375 = vmatpush.bf16.msra.mxu1 %v6091_v11  ;;  %v6235_v11 = vor.u32 %v6937_v38, %v6234_v45  ;;  %4412 = vmatpush.bf16.msra.mxu0 %v6323_v6  ;;  %v6522_v45 = vld [vmem:[#allocation6 + $0x3f0] sm:$0xf]  ;;  %v7009_v38 = vld [vmem:[#allocation6 + $0x3f4] sm:$0xf0] }
 0x1f1   : > { %v6523_v42 = vor.u32 %v7009_v38, %v6522_v45  ;;  %v6965_v6 = vld [vmem:[#allocation6 + $0x294] sm:$0xf0] }
 0x1f3   : > { %4400 = vmatpush.bf16.msrb.mxu3 %v6243_v48  ;;  %v6967_v48 = vld [vmem:[#allocation6 + $0x2a4] sm:$0xf0] }
 0x1f4   : > { %4376 = vmatpush.bf16.msra.mxu1 %v6083_v7  ;;  %v6227_v7 = vor.u32 %v6935_v54, %v6226_v28  ;;  %4413 = vmatpush.bf16.msra.mxu0 %v6315_v47  ;;  %v6290_v28 = vld [vmem:[#allocation6 + $0x220] sm:$0xf]  ;;  %v6951_v54 = vld [vmem:[#allocation6 + $0x224] sm:$0xf0] }
 0x1f5   : > { %v6418_v47 = vld [vmem:[#allocation6 + $0x320] sm:$0xf] }
 0x1f6   : > { %5999 = vmatmul.msk.bf16.vlgmr.msra.gmra.mxu3 %vm3096_vm9, %v3071_v34  ;;  %v6171_v34 = vor.u32 %v6921_v57, %v6170_v32  ;;  %v6458_v32 = vld [vmem:[#allocation6 + $0x370] sm:$0xf]  ;;  %v6993_v57 = vld [vmem:[#allocation6 + $0x374] sm:$0xf0] }
 0x1f7   : > { %4401 = vmatpush.bf16.msrb.mxu3 %v6235_v11 }
 0x1f8   : > { %4387 = vmatpush.bf16.msra.mxu2 %v6171_v34  ;;  %4425 = vmatpush.bf16.msrb.mxu1 %v6395_v49  ;;  %v6459_v34 = vor.u32 %v6993_v57, %v6458_v32  ;;  %v6442_v49 = vld [vmem:[#allocation6 + $0x350] sm:$0xf]  ;;  %v6931_v32 = vld [vmem:[#allocation6 + $0x184] sm:$0xf0] }
 0x1f9   : > { %v6443_v35 = vor.u32 %v6989_v24, %v6442_v49  ;;  %v6211_v4 = vor.u32 %v6931_v32, %v6210_v27  ;;  %v6298_v57 = vld [vmem:[#allocation6 + $0x230] sm:$0xf]  ;;  %v6291_v49 = vor.u32 %v6951_v54, %v6290_v28  ;;  %v6983_v24 = vld [vmem:[#allocation6 + $0x324] sm:$0xf0]  ;;  %v8916_v28 = vld [vmem:[#allocation6 + $0xf4] sm:$0xf] }
 0x1fa   : > { %v8918_v54 = vld [vmem:[#allocation6 + $0xf8] sm:$0xf0] }
 0x1fb   : > { %4402 = vmatpush.bf16.msrb.mxu3 %v6227_v7 }
 0x1fc   : > { %4388 = vmatpush.bf16.msra.mxu2 %v6163_v31  ;;  %4426 = vmatpush.bf16.msrb.mxu1 %v6387_v14  ;;  %v6971_v31 = vld [vmem:[#allocation6 + $0x2c4] sm:$0xf0] }
 0x1fd   : > { %v6371_v52 = vor.u32 %v6971_v31, %v6370_v10  ;;  %v6955_v14 = vld [vmem:[#allocation6 + $0x244] sm:$0xf0]  ;;  %v6347_v10 = vor.u32 %v6965_v6, %v6346_v63 }
 0x1fe   : > { %v6307_v40 = vor.u32 %v6955_v14, %v6306_v15  ;;  %v6963_v14 = vld [vmem:[#allocation6 + $0x284] sm:$0xf0] }
 0x200   : > { %4389 = vmatpush.bf16.msra.mxu2 %v6155_v0  ;;  %4427 = vmatpush.bf16.msrb.mxu1 %v6379_v43  ;;  %v6933_v0 = vld [vmem:[#allocation6 + $0x194] sm:$0xf0] }
 0x201   : > { %v6219_v5 = vor.u32 %v6933_v0, %v6218_v37  ;;  %4414 = vmatpush.bf16.msra.mxu0 %v6307_v40  ;;  %v6985_v43 = vld [vmem:[#allocation6 + $0x334] sm:$0xf0]  ;;  %v6514_v37 = vld [vmem:[#allocation6 + $0x3e0] sm:$0xf]  ;;  %v7007_v0 = vld [vmem:[#allocation6 + $0x3e4] sm:$0xf0] }
 0x202   : > { %v6427_v20 = vor.u32 %v6985_v43, %v6426_v39  ;;  %v6515_v15 = vor.u32 %v7007_v0, %v6514_v37  ;;  %v6949_v40 = vld [vmem:[#allocation6 + $0x214] sm:$0xf0] }
 0x203   : > { %4403 = vmatpush.bf16.msrb.mxu3 %v6219_v5 }
 0x204   : > { %4390 = vmatpush.bf16.msra.mxu2 %v6147_v18  ;;  %4428 = vmatpush.bf16.msrb.mxu1 %v6371_v52  ;;  %v6354_v18 = vld [vmem:[#allocation6 + $0x2a0] sm:$0xf] }
 0x205   : > { %v6355_v19 = vor.u32 %v6967_v48, %v6354_v18  ;;  %v6410_v48 = vld [vmem:[#allocation6 + $0x310] sm:$0xf] }
 0x207   : > { %4404 = vmatpush.bf16.msrb.mxu3 %v6211_v4 }
 0x208   : > { %4439 = vmatpush.bf16.msrb.mxu2 %v6459_v34  ;;  %4429 = vmatpush.bf16.msrb.mxu1 %v6363_v33  ;;  %v6299_v34 = vor.u32 %v6953_v60, %v6298_v57  ;;  %v6419_v33 = vor.u32 %v6983_v24, %v6418_v47 }
 0x20a   : > { %4415 = vmatpush.bf16.msra.mxu0 %v6299_v34 }
 0x20b   : > { %4453 = vmatpush.bf16.msra.mxu3 %v6523_v42 }
 0x20c   : > { %4440 = vmatpush.bf16.msrb.mxu2 %v6451_v46  ;;  %4430 = vmatpush.bf16.msrb.mxu1 %v6355_v19  ;;  %v6981_v19 = vld [vmem:[#allocation6 + $0x314] sm:$0xf0] }
 0x20d   : > { %v6411_v57 = vor.u32 %v6981_v19, %v6410_v48 }
 0x20e   : > { %4416 = vmatpush.bf16.msra.mxu0 %v6291_v49 }
 0x20f   : > { %4454 = vmatpush.bf16.msra.mxu3 %v6515_v15 }
 0x210   : > { %4441 = vmatpush.bf16.msrb.mxu2 %v6443_v35  ;;  %4431 = vmatpush.bf16.msrb.mxu1 %v6347_v10 }
 0x214   : > { %4442 = vmatpush.bf16.msrb.mxu2 %v6435_v41 }
 0x218   : > { %4443 = vmatpush.bf16.msrb.mxu2 %v6427_v20 }
 0x21c   : > { %4444 = vmatpush.bf16.msrb.mxu2 %v6419_v33 }
 0x220   : > { %4445 = vmatpush.bf16.msrb.mxu2 %v6411_v57 }
 0x253   : > { %v3148_v9 = vpop.f32.mrf.mxu1 }
 0x254   : > { %v6001_v56 = vmul.f32 -1.442695, %v3148_v9  ;;  %v3190_v26 = vpop.f32.mrf.mxu0  ;;  %v6338_v9 = vld [vmem:[#allocation6 + $0x280] sm:$0xf] }
 0x255   : > { %v6004_v30 = vmul.f32 -1.442695, %v3190_v26  ;;  %v6339_v16 = vor.u32 %v6963_v14, %v6338_v9 }
 0x256   : > { %7113 = vpow2.f32 %v6001_v56  ;;  %v6282_v56 = vld [vmem:[#allocation6 + $0x210] sm:$0xf] }
 0x257   : > { %7115 = vpow2.f32 %v6004_v30  ;;  %4432 = vmatpush.bf16.msrb.mxu1 %v6339_v16  ;;  %v6283_v18 = vor.u32 %v6949_v40, %v6282_v56 }
 0x259   : > { %v3134_v11 = vpop.f32.mrf.mxu3  ;;  %4417 = vmatpush.bf16.msra.mxu0 %v6283_v18 }
 0x25a   : > { %v6000_v23 = vmul.f32 -1.442695, %v3134_v11  ;;  %v3162_v46 = vpop.f32.mrf.mxu2 }
 0x25b   : > { %v6002_v31 = vmul.f32 -1.442695, %v3162_v46  ;;  %v3150_v52 = vpop.f32.mrf.mxu1 }
 0x25c   : > { %v7114_v7 = vpop.eup %7113  ;;  %7117 = vpow2.f32 %v6000_v23  ;;  %v6009_v36 = vmul.f32 -1.442695, %v3150_v52  ;;  %v3192_v44 = vpop.f32.mrf.mxu0 }
 0x25d   : > { %v7116_v35 = vpop.eup %7115  ;;  %v8891_v51 = vadd.f32 1.0, %v7114_v7  ;;  %7119 = vpow2.f32 %v6002_v31  ;;  %v6012_v58 = vmul.f32 -1.442695, %v3192_v44 }
 0x25e   : > { %7121 = vpow2.f32 %v6009_v36  ;;  %v8894_v5 = vadd.f32 1.0, %v7116_v35 }
 0x25f   : > { %7123 = vrcp.f32 %v8891_v51  ;;  %v3327_v23 = vand.u32 2147483648, %v8891_v51  ;;  %v3325_v52 = vand.u32 2147483647, %v8891_v51  ;;  %vm3321_vm10 = vweird.f32 %v8891_v51 }
 0x260   : > { %7125 = vpow2.f32 %v6012_v58 }
 0x261   : > { %v3136_v26 = vpop.f32.mrf.mxu3  ;;  %7127 = vrcp.f32 %v8894_v5  ;;  %v3328_v9 = vor.u32 1.1754944e-38, %v3327_v23  ;;  %vm8946_vm12 = vcmp.eq.f32.partialorder %v3325_v52, 8.507059e+37  ;;  %v7005_v23 = vld [vmem:[#allocation6 + $0x3d4] sm:$0xf0] }
 0x262   : > { %v7118_v22 = vpop.eup %7117  ;;  %v6008_v30 = vmul.f32 -1.442695, %v3136_v26  ;;  %v3164_v41 = vpop.f32.mrf.mxu2 }
 0x263   : > { %v7120_v27 = vpop.eup %7119  ;;  %v8897_v32 = vadd.f32 1.0, %v7118_v22  ;;  %v3204_v4 = vpop.f32.mrf.mxu1  ;;  %v6010_v34 = vmul.f32 -1.442695, %v3164_v41 }
 0x264   : > { %v7122_v60 = vpop.eup %7121  ;;  %v8899_v39 = vadd.f32 1.0, %v7120_v27  ;;  %7129 = vpow2.f32 %v6008_v30  ;;  %v6005_v38 = vmul.f32 -1.442695, %v3204_v4 }
 0x265   : > { %v8901_v43 = vpop.eup %7123  ;;  %7131 = vrcp.f32 %v8897_v32  ;;  %v8904_v45 = vadd.f32 1.0, %v7122_v60  ;;  %v6506_v60 = vld [vmem:[#allocation6 + $0x3d0] sm:$0xf]  ;;  %vm3306_vm2 = vweird.f32 %v8897_v32 }
 0x266   : > { %v3317_v11 = vmul.f32 %v8901_v43, %v8891_v51  ;;  %7133 = vrcp.f32 %v8899_v39  ;;  %v7126_v20 = vpop.eup %7125  ;;  %vm3322_vm11 = vweird.f32 %v8901_v43  ;;  %v6507_v51 = vor.u32 %v7005_v23, %v6506_v60  ;;  %v6274_v23 = vld [vmem:[#allocation6 + $0x200] sm:$0xf] }
 0x267   : > { %7135 = vrcp.f32 %v8904_v45  ;;  %v8910_v63 = vadd.f32 1.0, %v7126_v20  ;;  %v8912_v6 = vpop.eup %7127  ;;  %v3447_v26 = vand.u32 2147483648, %v8904_v45  ;;  %vm3441_vm13 = vweird.f32 %v8904_v45  ;;  %vm8970_vm14 = vmor %vm3321_vm10, %vm3322_vm11 }
 0x268   : > { %v3318_v42 = vsub.f32 1.0, %v3317_v11  ;;  %7137 = vpow2.f32 %v6010_v34  ;;  %v3362_v16 = vmul.f32 %v8912_v6, %v8894_v5  ;;  %4455 = vmatpush.bf16.msra.mxu3 %v6507_v51  ;;  %v6498_v51 = vld [vmem:[#allocation6 + $0x3c0] sm:$0xf]  ;;  %vm3336_vm5 = vweird.f32 %v8899_v39 }
 0x269   : > { %7139 = vpow2.f32 %v6005_v38  ;;  %v3176_v46 = vpop.f32.mrf.mxu3 }
 0x26a   : > { %v7130_v10 = vpop.eup %7129  ;;  %v3218_v31 = vpop.f32.mrf.mxu2  ;;  %v6003_v44 = vmul.f32 -1.442695, %v3176_v46  ;;  %v3319_v35 = vmul.f32 %v8901_v43, %v3318_v42  ;;  %7141 = vrcp.f32 %v8910_v63  ;;  %v3363_v38 = vsub.f32 1.0, %v3362_v16 }
 0x26b   : > { %v8920_v7 = vpop.eup %7131  ;;  %v8923_v36 = vadd.f32 1.0, %v7130_v10  ;;  %v6006_v49 = vmul.f32 -1.442695, %v3218_v31  ;;  %v3206_v47 = vpop.f32.mrf.mxu1  ;;  %v3445_v42 = vand.u32 2147483647, %v8904_v45 }
 0x26c   : > { %v8925_v24 = vpop.eup %7133  ;;  %v6013_v33 = vmul.f32 -1.442695, %v3206_v47  ;;  %v3302_v22 = vmul.f32 %v8920_v7, %v8897_v32  ;;  %v3320_v19 = vadd.f32 %v8901_v43, %v3319_v35  ;;  %vm3307_vm4 = vweird.f32 %v8920_v7 }
 0x26d   : > { %v8930_v37 = vpop.eup %7135  ;;  %7143 = vrcp.f32 %v8923_v36  ;;  %v3332_v27 = vmul.f32 %v8925_v24, %v8899_v39  ;;  %vm3446_vm1 = vcmp.eq.f32.partialorder %v3445_v42, 8.507059e+37  ;;  %vm3426_vm3 = vweird.f32 %v8923_v36  ;;  %vm9071_vm6 = vmor %vm3306_vm2, %vm3307_vm4 }
 0x26e   : > { %v7138_v14 = vpop.eup %7137  ;;  %v3437_v56 = vmul.f32 %v8930_v37, %v8904_v45  ;;  %7145 = vpow2.f32 %v6003_v44  ;;  %v3303_v35 = vsub.f32 1.0, %v3302_v22  ;;  %vm3442_vm15 = vweird.f32 %v8930_v37  ;;  %v7001_v45 = vld [vmem:[#allocation6 + $0x3b4] sm:$0xf0] }
 0x26f   : > { %v7140_v40 = vpop.eup %7139  ;;  %v8943_v30 = vadd.f32 1.0, %v7138_v14  ;;  %7147 = vpow2.f32 %v6006_v49  ;;  %v3448_v49 = vor.u32 1.1754944e-38, %v3447_v26  ;;  %vm8990_vm0 = vmor %vm3441_vm13, %vm3442_vm15 }
 0x270   : > { %v3438_v18 = vsub.f32 1.0, %v3437_v56  ;;  %v8950_v48 = vadd.f32 1.0, %v7140_v40  ;;  %7149 = vpow2.f32 %v6013_v33  ;;  %v8958_v34 = vpop.eup %7141  ;;  %v3324_v33 = vsel %vm8970_vm14, %v8901_v43, %v3320_v19 }
 0x271   : > { %7151 = vrcp.f32 %v8943_v30  ;;  %v3178_v57 = vpop.f32.mrf.mxu3  ;;  %v3333_v56 = vsub.f32 1.0, %v3332_v27  ;;  %v3482_v27 = vmul.f32 %v8958_v34, %v8910_v63  ;;  %vm3456_vm8 = vweird.f32 %v8943_v30 }
 0x272   : > { %v3439_v11 = vmul.f32 %v8930_v37, %v3438_v18  ;;  %7153 = vrcp.f32 %v8950_v48  ;;  %v3220_v20 = vpop.f32.mrf.mxu2  ;;  %v6011_v31 = vmul.f32 -1.442695, %v3178_v57  ;;  %v8982_v57 = vmul.f32 %v8912_v6, %v3363_v38 }
 0x273   : > { %v8963_v46 = vpop.eup %7143  ;;  %v6014_v52 = vmul.f32 -1.442695, %v3220_v20  ;;  %v3329_v20 = vsel %vm8946_vm12, %v3328_v9, %v3324_v33  ;;  %v9012_v44 = vmul.f32 %v8925_v24, %v3333_v56  ;;  %v7003_v33 = vld [vmem:[#allocation6 + $0x3c4] sm:$0xf0]  ;;  %vm3337_vm12 = vweird.f32 %v8925_v24 }
 0x274   : > { %v7146_v47 = vpop.eup %7145  ;;  %v3440_v14 = vadd.f32 %v8930_v37, %v3439_v11  ;;  %7155 = vpow2.f32 %v6011_v31  ;;  %v3422_v26 = vmul.f32 %v8963_v46, %v8923_v36  ;;  %v6947_v31 = vld [vmem:[#allocation6 + $0x204] sm:$0xf0]  ;;  %v3558_v43 = vmul.f32 %v8740_v12, %v3329_v20  ;;  %v6910_v12 = vld [vmem:[#allocation6 + $0xe4] sm:$0xf]  ;;  %v6132_v20 = vld [vmem:[#allocation6 + $0xe8] sm:$0xf0] }
 0x275   : > { %v7148_v16 = vpop.eup %7147  ;;  %v8979_v40 = vadd.f32 1.0, %v7146_v47  ;;  %7157 = vpow2.f32 %v6014_v52  ;;  %v3304_v52 = vmul.f32 %v8920_v7, %v3303_v35  ;;  %v6275_v58 = vor.u32 %v6947_v31, %v6274_v23  ;;  %vm9123_vm13 = vmor %vm3336_vm5, %vm3337_vm12 }
 0x276   : > { %v7150_v18 = vpop.eup %7149  ;;  %v8986_v22 = vadd.f32 1.0, %v7148_v16  ;;  %v3444_v38 = vsel %vm8990_vm0, %v8930_v37, %v3440_v14  ;;  %v6402_v14 = vld [vmem:[#allocation6 + $0x300] sm:$0xf]  ;;  %v6979_v16 = vld [vmem:[#allocation6 + $0x304] sm:$0xf0]  ;;  %v3423_v9 = vsub.f32 1.0, %v3422_v26  ;;  %vm3427_vm7 = vweird.f32 %v8963_v46 }
 0x277   : > { %v8994_v19 = vpop.eup %7151  ;;  %7159 = vrcp.f32 %v8979_v40  ;;  %v8999_v60 = vadd.f32 1.0, %v7150_v18  ;;  %v3449_v35 = vsel %vm3446_vm1, %v3448_v49, %v3444_v38  ;;  %v3483_v18 = vsub.f32 1.0, %v3482_v27  ;;  %4418 = vmatpush.bf16.msra.mxu0 %v6275_v58  ;;  %vm9093_vm9 = vmor %vm3426_vm3, %vm3427_vm7 }
 0x278   : > { %v9004_v11 = vpop.eup %7153  ;;  %7161 = vrcp.f32 %v8986_v22  ;;  %v3452_v37 = vmul.f32 %v8994_v19, %v8943_v30  ;;  %v3566_v10 = vmul.f32 %v8784_v29, %v3449_v35  ;;  %v6403_v26 = vor.u32 %v6979_v16, %v6402_v14  ;;  %v6490_v35 = vld [vmem:[#allocation6 + $0x3b0] sm:$0xf] }
 0x279   : > { %7163 = vrcp.f32 %v8999_v60  ;;  %v3232_v47 = vpop.f32.mrf.mxu3  ;;  %v3377_v41 = vmul.f32 %v9004_v11, %v8950_v48  ;;  %v6499_v29 = vor.u32 %v7003_v33, %v6498_v51  ;;  %v3424_v31 = vmul.f32 %v8963_v46, %v3423_v9 }
 0x27a   : > { %v6007_v42 = vmul.f32 -1.442695, %v3232_v47  ;;  %v7156_v56 = vpop.eup %7155  ;;  %v3453_v49 = vsub.f32 1.0, %v3452_v37  ;;  %v9030_v27 = vpack.c.bf16 %v3566_v10, %v3558_v43  ;;  %4446 = vmatpush.bf16.msrb.mxu2 %v6403_v26  ;;  %v9508_v16 = vor.u32 %v8916_v28, %v8918_v54 }
 0x27b   : > { %v7158_v4 = vpop.eup %7157  ;;  %v9024_v0 = vadd.f32 1.0, %v7156_v56  ;;  %v3378_v47 = vsub.f32 1.0, %v3377_v41  ;;  %4456 = vmatpush.bf16.msra.mxu3 %v6499_v29  ;;  %v6135_v51 = vor.u32 %v6910_v12, %v6132_v20  ;;  %v3305_v9 = vadd.f32 %v8920_v7, %v3304_v52 }
 0x27c   : > { %7165 = vpow2.f32 %v6007_v42  ;;  %v9028_v38 = vadd.f32 1.0, %v7158_v4  ;;  %9507 = vst [vmem:[#allocation17_spill] sm:$0xff] %v9030_v27  ;;  %v9040_v4 = vmul.f32 %v8958_v34, %v3483_v18  ;;  %4377 = vmatmul.bf16.vlgmr.msra.gmra.mxu1 %v9030_v27  ;;  %v3454_v41 = vmul.f32 %v8994_v19, %v3453_v49 }
 0x27d   : > { %v9026_v15 = vpop.eup %7159  ;;  %7167 = vrcp.f32 %v9024_v0  ;;  %4481 = vmatpush.bf16.msra.mxu1 %v9508_v16  ;;  %v9061_v28 = vmul.f32 %v9004_v11, %v3378_v47  ;;  %v3310_v52 = vand.u32 2147483647, %v8897_v32  ;;  %v3425_v26 = vadd.f32 %v8963_v46, %v3424_v31 }
 0x27e   : > { %v9032_v23 = vpop.eup %7161  ;;  %v3347_v10 = vmul.f32 %v9026_v15, %v8979_v40  ;;  %7169 = vrcp.f32 %v9028_v38  ;;  %v3309_v31 = vsel %vm9071_vm6, %v8920_v7, %v3305_v9  ;;  %v9512_v33 = vand.u32 2147483648, %v8897_v32 }
 0x27f   : > { %v9037_v14 = vpop.eup %7163  ;;  %v3392_v58 = vmul.f32 %v9032_v23, %v8986_v22  ;;  %vm3311_vm10 = vcmp.eq.f32.partialorder %v3310_v52, 8.507059e+37  ;;  %v3335_v52 = vadd.f32 %v8925_v24, %v9012_v44  ;;  %v3455_v44 = vadd.f32 %v8994_v19, %v3454_v41 }
 0x280   : > { %v3497_v37 = vmul.f32 %v9037_v14, %v8999_v60  ;;  %v3348_v12 = vsub.f32 1.0, %v3347_v10  ;;  %v3430_v10 = vand.u32 2147483647, %v8923_v36  ;;  %vm3381_vm14 = vweird.f32 %v8950_v48 }
 0x281   : > { %v3234_v18 = vpop.f32.mrf.mxu3  ;;  %v3393_v20 = vsub.f32 1.0, %v3392_v58  ;;  %4482 = vmatpush.bf16.msra.mxu1 %v6135_v51  ;;  %vm3457_vm15 = vweird.f32 %v8994_v19  ;;  %vm3501_vm0 = vweird.f32 %v8999_v60  ;;  %v9523_v27 = vand.u32 2147483648, %v8943_v30 }
 0x282   : > { %v7166_v43 = vpop.eup %7165  ;;  %v6015_v54 = vmul.f32 -1.442695, %v3234_v18  ;;  %v3498_v16 = vsub.f32 1.0, %v3497_v37  ;;  %v3313_v37 = vor.u32 1.1754944e-38, %v9512_v33  ;;  %v9104_v49 = vmul.f32 %v9026_v15, %v3348_v12  ;;  %vm9158_vm2 = vmor %vm3456_vm8, %vm3457_vm15 }
 0x283   : > { %v9065_v29 = vadd.f32 1.0, %v7166_v43  ;;  %v9076_v47 = vpop.eup %7167  ;;  %v9107_v32 = vmul.f32 %v9032_v23, %v3393_v20  ;;  %v9515_v43 = vand.u32 2147483648, %v8923_v36  ;;  %vm3431_vm11 = vcmp.eq.f32.partialorder %v3430_v10, 8.507059e+37  ;;  %v6896_v10 = vld [vmem:[#allocation6 + $0x74] sm:$0xf] }
 0x284   : > { %7171 = vpow2.f32 %v6015_v54  ;;  %v9083_v58 = vpop.eup %7169  ;;  %v3467_v18 = vmul.f32 %v9076_v47, %v9024_v0  ;;  %v3429_v54 = vsel %vm9093_vm9, %v8963_v46, %v3425_v26  ;;  %v3314_v33 = vsel %vm3311_vm10, %v3313_v37, %v3309_v31 }
 0x285   : > { %9511 = vst [vmem:[#allocation18_spill] sm:$0xff] %v9083_v58  ;;  %7173 = vrcp.f32 %v9065_v29  ;;  %v3512_v7 = vmul.f32 %v9083_v58, %v9028_v38  ;;  %v3433_v42 = vor.u32 1.1754944e-38, %v9515_v43  ;;  %v9112_v56 = vmul.f32 %v9037_v14, %v3498_v16  ;;  %v9145_v16 = vld [vmem:[#allocation6 + $0x64] sm:$0xf] }
 0x286   : > { %v3468_v46 = vsub.f32 1.0, %v3467_v18  ;;  %v3417_v26 = vand.u32 2147483648, %v9065_v29  ;;  %v3340_v20 = vand.u32 2147483647, %v8899_v39  ;;  %v3557_v36 = vmul.f32 %v8732_v59, %v3314_v33  ;;  %v6076_v18 = vld [vmem:[#allocation6 + $0x78] sm:$0xf0] }
 0x287   : > { %v3434_v12 = vsel %vm3431_vm11, %v3433_v42, %v3429_v54  ;;  %v3513_v31 = vsub.f32 1.0, %v3512_v7  ;;  %v3339_v59 = vsel %vm9123_vm13, %v8925_v24, %v3335_v52  ;;  %v6908_v7 = vld [vmem:[#allocation6 + $0xd4] sm:$0xf]  ;;  %v6124_v54 = vld [vmem:[#allocation6 + $0xd8] sm:$0xf0]  ;;  %v3463_v2 = vor.u32 1.1754944e-38, %v9523_v27 }
 0x288   : > { %v3565_v43 = vmul.f32 %v8774_v17, %v3434_v12  ;;  %v3460_v17 = vand.u32 2147483647, %v8943_v30  ;;  %v9149_v24 = vmul.f32 %v9076_v47, %v3468_v46  ;;  %v9151_v52 = vor.u32 1.1754944e-38, %v3417_v26  ;;  %v9166_v46 = vld [vmem:[#allocation6 + $0x164] sm:$0xf] }
 0x289   : > { %vm3341_vm1 = vcmp.eq.f32.partialorder %v3340_v20, 8.507059e+37  ;;  %v3459_v20 = vsel %vm9158_vm2, %v8994_v19, %v3455_v44  ;;  %v9177_v61 = vmul.f32 %v9083_v58, %v3513_v31  ;;  %v6127_v19 = vor.u32 %v6908_v7, %v6124_v54  ;;  %v6482_v44 = vld [vmem:[#allocation6 + $0x3a0] sm:$0xf]  ;;  %v6999_v30 = vld [vmem:[#allocation6 + $0x3a4] sm:$0xf0] }
 0x28a   : > { %v7172_v51 = vpop.eup %7171  ;;  %v9141_v12 = vpack.c.bf16 %v3565_v43, %v3557_v36  ;;  %9520 = vst [vmem:[#allocation20_spill] sm:$0xff] %v9151_v52  ;;  %v9162_v36 = vld [vmem:[#allocation6 + $0x174] sm:$0xf]  ;;  %v9164_v43 = vld [vmem:[#allocation6 + $0x178] sm:$0xf0]  ;;  %vm3461_vm3 = vcmp.eq.f32.partialorder %v3460_v17, 8.507059e+37  ;;  %v6491_v31 = vor.u32 %v7001_v45, %v6490_v35  ;;  %vm3351_vm4 = vweird.f32 %v8979_v40 }
 0x28b   : > { %v9128_v37 = vpop.eup %7173  ;;  %v9131_v42 = vadd.f32 1.0, %v7172_v51  ;;  %v9519_v51 = vand.u32 2147483648, %v8899_v39  ;;  %v6906_v52 = vld [vmem:[#allocation6 + $0xc4] sm:$0xf]  ;;  %v3464_v39 = vsel %vm3461_vm3, %v3463_v2, %v3459_v20  ;;  %v6060_v17 = vld [vmem:[#allocation6 + $0x58] sm:$0xf0]  ;;  %v6207_v2 = vor.u32 %v9162_v36, %v9164_v43  ;;  %4483 = vmatpush.bf16.msra.mxu1 %v6127_v19 }
 0x28c   : > { %v3407_v41 = vmul.f32 %v9128_v37, %v9065_v29  ;;  %9518 = vst [vmem:[#allocation19_spill] sm:$0xff] %v9141_v12  ;;  %4363 = vmatmul.bf16.vlgmr.msrb.gmra.mxu0 %v9141_v12  ;;  %v3567_v12 = vmul.f32 %v8797_v53, %v3464_v39  ;;  %v6904_v53 = vld [vmem:[#allocation6 + $0xb4] sm:$0xf]  ;;  %vm3471_vm5 = vweird.f32 %v9024_v0  ;;  %4457 = vmatpush.bf16.msra.mxu3 %v6491_v31  ;;  %vm3382_vm6 = vweird.f32 %v9004_v11  ;;  %v6052_v20 = vld [vmem:[#allocation6 + $0x48] sm:$0xf0] }
 0x28d   : > { %v3343_v9 = vor.u32 1.1754944e-38, %v9519_v51  ;;  %7175 = vrcp.f32 %v9131_v42  ;;  %v6068_v51 = vld [vmem:[#allocation6 + $0x68] sm:$0xf0]  ;;  %v6483_v35 = vor.u32 %v6999_v30, %v6482_v44  ;;  %v9198_v54 = vld [vmem:[#allocation6 + $0x154] sm:$0xf]  ;;  %v6063_v43 = vor.u32 %v6892_v62, %v6060_v17  ;;  %vm9209_vm7 = vmor %vm3381_vm14, %vm3382_vm6 }
 0x28e   : > { %v3408_v26 = vsub.f32 1.0, %v3407_v41  ;;  %v6079_v41 = vor.u32 %v6896_v10, %v6076_v18  ;;  %v6071_v58 = vor.u32 %v9145_v16, %v6068_v51  ;;  %v6119_v18 = vor.u32 %v6906_v52, %v6116_v3  ;;  %v6474_v3 = vld [vmem:[#allocation6 + $0x390] sm:$0xf]  ;;  %v6997_v52 = vld [vmem:[#allocation6 + $0x394] sm:$0xf0] }
 0x28f   : > { %v3344_v33 = vsel %vm3341_vm1, %v3343_v9, %v3339_v59  ;;  %v3537_v59 = vand.u32 2147483648, %v9131_v42  ;;  %v3380_v16 = vadd.f32 %v9004_v11, %v9061_v28  ;;  %v3385_v51 = vand.u32 2147483647, %v8950_v48  ;;  %v9227_v39 = vld [vmem:[#allocation6 + $0x148] sm:$0xf0] }
 0x290   : > { %v3409_v9 = vmul.f32 %v9128_v37, %v3408_v26  ;;  %v3559_v27 = vmul.f32 %v8763_v13, %v3344_v33  ;;  %4467 = vmatpush.bf16.msrb.mxu0 %v6079_v41  ;;  %v6199_v13 = vor.u32 %v9166_v46, %v9174_v1  ;;  %v9200_v33 = vld [vmem:[#allocation6 + $0x158] sm:$0xf0]  ;;  %v9526_v46 = vand.u32 2147483648, %v8950_v48  ;;  %v6890_v26 = vld [vmem:[#allocation6 + $0x44] sm:$0xf]  ;;  %4484 = vmatpush.bf16.msra.mxu1 %v6119_v18 }
 0x291   : > { %v6108_v1 = vld [vmem:[#allocation6 + $0xb8] sm:$0xf0]  ;;  %v9216_v41 = vld [vmem:[#allocation6 + $0x144] sm:$0xf]  ;;  %vm3366_vm8 = vweird.f32 %v8894_v5  ;;  %v3384_v62 = vsel %vm9209_vm7, %v9004_v11, %v3380_v16  ;;  %vm3502_vm9 = vweird.f32 %v9037_v14  ;;  %v3505_v48 = vand.u32 2147483647, %v8999_v60  ;;  %4458 = vmatpush.bf16.msra.mxu3 %v6483_v35 }
 0x292   : > { %v9187_v10 = vadd.f32 %v9128_v37, %v3409_v9  ;;  %v9196_v45 = vpack.c.bf16 %v3567_v12, %v3559_v27  ;;  %v3388_v28 = vor.u32 1.1754944e-38, %v9526_v46  ;;  %v3500_v9 = vadd.f32 %v9037_v14, %v9112_v56  ;;  %v6902_v19 = vld [vmem:[#allocation6 + $0xa4] sm:$0xf]  ;;  %vm3503_vm11 = vmor %vm3501_vm0, %vm3502_vm9  ;;  %v6100_v27 = vld [vmem:[#allocation6 + $0xa8] sm:$0xf0] }
 0x293   : > { %v9193_v7 = vpop.eup %7175  ;;  %vm3386_vm10 = vcmp.eq.f32.partialorder %v3385_v51, 8.507059e+37  ;;  %v6111_v30 = vor.u32 %v6904_v53, %v6108_v1  ;;  %vm3486_vm12 = vweird.f32 %v8910_v63  ;;  %vm3506_vm13 = vcmp.eq.f32.partialorder %v3505_v48, 8.507059e+37  ;;  %v6466_v16 = vld [vmem:[#allocation6 + $0x380] sm:$0xf] }
 0x294   : > { %v3527_v36 = vmul.f32 %v9193_v7, %v9131_v42  ;;  %4391 = vmatmul.bf16.vlgmr.msra.gmra.mxu2 %v9196_v45  ;;  %4468 = vmatpush.bf16.msrb.mxu0 %v6071_v58  ;;  %v9527_v58 = vand.u32 2147483648, %v8999_v60  ;;  %v3389_v56 = vsel %vm3386_vm10, %v3388_v28, %v3384_v62  ;;  %v3504_v31 = vsel %vm3503_vm11, %v9037_v14, %v3500_v9 }
 0x295   : > { %4495 = vmatpush.bf16.msra.mxu2 %v6207_v2  ;;  %v6475_v17 = vor.u32 %v6997_v52, %v6474_v3  ;;  %v6995_v2 = vld [vmem:[#allocation6 + $0x384] sm:$0xf0]  ;;  %v3562_v53 = vmul.f32 %v8828_v21, %v3389_v56  ;;  %vm3396_vm14 = vweird.f32 %v8986_v22  ;;  %v6055_v1 = vor.u32 %v6890_v26, %v6052_v20  ;;  %4485 = vmatpush.bf16.msra.mxu1 %v6111_v30  ;;  %v6268_v56 = vld [vmem:[#allocation6 + $0x1f8] sm:$0xf0] }
 0x296   : > { %v3528_v44 = vsub.f32 1.0, %v3527_v36  ;;  %v3508_v11 = vor.u32 1.1754944e-38, %v9527_v58  ;;  %v6191_v36 = vor.u32 %v9198_v54, %v9200_v33  ;;  %v6183_v14 = vor.u32 %v9216_v41, %v9227_v39  ;;  %v6920_v58 = vld [vmem:[#allocation6 + $0x134] sm:$0xf] }
 0x297   : > { %v6103_v3 = vor.u32 %v6902_v19, %v6100_v27  ;;  %v6467_v52 = vor.u32 %v6995_v2, %v6466_v16  ;;  %v3350_v12 = vadd.f32 %v9026_v15, %v9104_v49  ;;  %vm3352_vm15 = vweird.f32 %v9026_v15  ;;  %4459 = vmatpush.bf16.msra.mxu3 %v6475_v17  ;;  %v6092_v17 = vld [vmem:[#allocation6 + $0x98] sm:$0xf0] }
 0x298   : > { %v9236_v18 = vmul.f32 %v9193_v7, %v3528_v44  ;;  %v3509_v60 = vsel %vm3506_vm13, %v3508_v11, %v3504_v31  ;;  %4469 = vmatpush.bf16.msrb.mxu0 %v6063_v43  ;;  %v3355_v21 = vand.u32 2147483647, %v8979_v40  ;;  %vm3412_vm0 = vweird.f32 %v9128_v37  ;;  %vm3353_vm1 = vmor %vm3351_vm4, %vm3352_vm15  ;;  %v6044_v44 = vld [vmem:[#allocation6 + $0x38] sm:$0xf0]  ;;  %v6900_v31 = vld [vmem:[#allocation6 + $0x94] sm:$0xf] }
 0x299   : > { %v3570_v35 = vmul.f32 %v8844_v50, %v3509_v60  ;;  %4496 = vmatpush.bf16.msra.mxu2 %v6199_v13  ;;  %v9528_v50 = vand.u32 2147483648, %v8979_v40  ;;  %v3470_v33 = vadd.f32 %v9076_v47, %v9149_v24  ;;  %vm3472_vm2 = vweird.f32 %v9076_v47  ;;  %4486 = vmatpush.bf16.msra.mxu1 %v6103_v3  ;;  %v6172_v11 = vld [vmem:[#allocation6 + $0x138] sm:$0xf0]  ;;  %v9539_v60 = vld [vmem:[#allocation18_spill] sm:$0xff] }
 0x29a   : > { %vm3516_vm3 = vweird.f32 %v9028_v38  ;;  %v3354_v49 = vsel %vm3353_vm1, %v9026_v15, %v3350_v12  ;;  %vm3356_vm6 = vcmp.eq.f32.partialorder %v3355_v21, 8.507059e+37  ;;  %vm9263_vm7 = vmor %vm3471_vm5, %vm3472_vm2  ;;  %v3475_v51 = vand.u32 2147483647, %v9024_v0  ;;  %v9543_v12 = vld [vmem:[#allocation14_spill] sm:$0xff] }
 0x29b   : > { %v9250_v54 = vpack.c.bf16 %v3570_v35, %v3562_v53  ;;  %v3358_v13 = vor.u32 1.1754944e-38, %v9528_v50  ;;  %v9531_v40 = vand.u32 2147483648, %v9024_v0  ;;  %vm3411_vm4 = vweird.f32 %v9065_v29  ;;  %4460 = vmatpush.bf16.msra.mxu3 %v6467_v52  ;;  %v6886_v35 = vld [vmem:[#allocation6 + $0x24] sm:$0xf] }
 0x29c   : > { %4470 = vmatpush.bf16.msrb.mxu0 %v6055_v1  ;;  %v3474_v15 = vsel %vm9263_vm7, %v9076_v47, %v3470_v33  ;;  %v3365_v28 = vadd.f32 %v8912_v6, %v8982_v57  ;;  %vm3367_vm5 = vweird.f32 %v8912_v6  ;;  %vm3476_vm9 = vcmp.eq.f32.partialorder %v3475_v51, 8.507059e+37  ;;  %v6036_v1 = vld [vmem:[#allocation6 + $0x28] sm:$0xf0]  ;;  %v6990_v50 = vld [vmem:[#allocation6 + $0x364] sm:$0xf] }
 0x29d   : > { %v3478_v46 = vor.u32 1.1754944e-38, %v9531_v40  ;;  %4433 = vmatmul.bf16.vlgmr.msrb.gmra.mxu1 %v9250_v54  ;;  %v3359_v24 = vsel %vm3356_vm6, %v3358_v13, %v3354_v49  ;;  %4497 = vmatpush.bf16.msra.mxu2 %v6191_v36  ;;  %vm3368_vm10 = vmor %vm3366_vm8, %vm3367_vm5  ;;  %v3370_v26 = vand.u32 2147483647, %v8894_v5  ;;  %v9532_v20 = vand.u32 2147483648, %v8894_v5  ;;  %v6942_v40 = vld [vmem:[#allocation6 + $0x1e4] sm:$0xf] }
 0x29e   : > { %v3560_v0 = vmul.f32 %v8770_v55, %v3359_v24  ;;  %v3369_v62 = vsel %vm3368_vm10, %v8912_v6, %v3365_v28  ;;  %v3485_v57 = vadd.f32 %v8958_v34, %v9040_v4  ;;  %vm3487_vm11 = vweird.f32 %v8958_v34  ;;  %v6888_v6 = vld [vmem:[#allocation6 + $0x34] sm:$0xf]  ;;  %v9551_v55 = vld [vmem:[#allocation15_spill] sm:$0xff] }
 0x29f   : > { %v3373_v41 = vor.u32 1.1754944e-38, %v9532_v20  ;;  %v3479_v47 = vsel %vm3476_vm9, %v3478_v46, %v3474_v15  ;;  %vm3371_vm13 = vcmp.eq.f32.partialorder %v3370_v26, 8.507059e+37  ;;  %vm9291_vm8 = vmor %vm3486_vm12, %vm3487_vm11  ;;  %v3490_v5 = vand.u32 2147483647, %v8910_v63  ;;  %v6260_v46 = vld [vmem:[#allocation6 + $0x1e8] sm:$0xf0] }
 0x2a0   : > { %v3568_v9 = vmul.f32 %v8806_v25, %v3479_v47  ;;  %v9535_v48 = vand.u32 2147483648, %v8910_v63  ;;  %v3489_v4 = vsel %vm9291_vm8, %v8958_v34, %v3485_v57  ;;  %v3395_v25 = vadd.f32 %v9032_v23, %v9107_v32  ;;  %v6944_v32 = vld [vmem:[#allocation6 + $0x1f4] sm:$0xf]  ;;  %vm9345_vm9 = vmor %vm3411_vm4, %vm3412_vm0  ;;  %v6396_v47 = vld [vmem:[#allocation6 + $0x2f8] sm:$0xf0] }
 0x2a1   : > { %v3374_v19 = vsel %vm3371_vm13, %v3373_v41, %v3369_v62  ;;  %vm3397_vm15 = vweird.f32 %v9032_v23  ;;  %4498 = vmatpush.bf16.msra.mxu2 %v6183_v14  ;;  %vm3491_vm12 = vcmp.eq.f32.partialorder %v3490_v5, 8.507059e+37  ;;  %v3400_v34 = vand.u32 2147483647, %v8986_v22  ;;  %v6918_v14 = vld [vmem:[#allocation6 + $0x124] sm:$0xf] }
 0x2a2   : > { %v3493_v39 = vor.u32 1.1754944e-38, %v9535_v48  ;;  %v9304_v30 = vpack.c.bf16 %v3568_v9, %v3560_v0  ;;  %v3561_v63 = vmul.f32 %v8823_v8, %v3374_v19  ;;  %vm9309_vm1 = vmor %vm3396_vm14, %vm3397_vm15  ;;  %v9538_v36 = vand.u32 2147483648, %v8986_v22  ;;  %v6084_v0 = vld [vmem:[#allocation6 + $0x88] sm:$0xf0]  ;;  %v6976_v41 = vld [vmem:[#allocation6 + $0x2f4] sm:$0xf] }
 0x2a3   : > { %v3399_v2 = vsel %vm9309_vm1, %v9032_v23, %v3395_v25  ;;  %v3515_v53 = vadd.f32 %v9539_v60, %v9177_v61  ;;  %v9540_v3 = vand.u32 2147483647, %v9065_v29  ;;  %vm3401_vm2 = vcmp.eq.f32.partialorder %v3400_v34, 8.507059e+37  ;;  %v6164_v23 = vld [vmem:[#allocation6 + $0x128] sm:$0xf0]  ;;  %v9550_v57 = vld [vmem:[#allocation12_spill] sm:$0xff] }
 0x2a4   : > { %v3494_v16 = vsel %vm3491_vm12, %v3493_v39, %v3489_v4  ;;  %v3403_v8 = vor.u32 1.1754944e-38, %v9538_v36  ;;  %4405 = vmatmul.bf16.vlgmr.msrb.gmra.mxu3 %v9304_v30  ;;  %vm3517_vm6 = vweird.f32 %v9539_v60  ;;  %v3520_v22 = vand.u32 2147483647, %v9028_v38  ;;  %v6884_v62 = vld [vmem:[#allocation6 + $0x14] sm:$0xf] }
 0x2a5   : > { %vm9323_vm14 = vcmp.eq.f32.partialorder %v9540_v3, 8.507059e+37  ;;  %v3569_v21 = vmul.f32 %v9543_v12, %v3494_v16  ;;  %v9544_v61 = vand.u32 2147483647, %v9131_v42  ;;  %vm3518_vm5 = vmor %vm3516_vm3, %vm3517_vm6  ;;  %v9547_v33 = vand.u32 2147483648, %v9028_v38  ;;  %v6898_v38 = vld [vmem:[#allocation6 + $0x84] sm:$0xf] }
 0x2a6   : > { %v3404_v13 = vsel %vm3401_vm2, %v3403_v8, %v3399_v2  ;;  %v6047_v43 = vor.u32 %v6888_v6, %v6044_v44  ;;  %v6175_v51 = vor.u32 %v6920_v58, %v6172_v11  ;;  %vm3532_vm10 = vweird.f32 %v9193_v7  ;;  %v6028_v6 = vld [vmem:[#allocation6 + $0x18] sm:$0xf0]  ;;  %v6916_v19 = vld [vmem:[#allocation6 + $0x114] sm:$0xf]  ;;  %v6388_v16 = vld [vmem:[#allocation6 + $0x2e8] sm:$0xf0] }
 0x2a7   : > { %vm9333_vm7 = vcmp.eq.f32.partialorder %v9544_v61, 8.507059e+37  ;;  %v3523_v49 = vor.u32 1.1754944e-38, %v9547_v33  ;;  %v9350_v15 = vpack.c.bf16 %v3569_v21, %v3561_v63  ;;  %v3519_v28 = vsel %vm3518_vm5, %v9539_v60, %v3515_v53  ;;  %v6156_v4 = vld [vmem:[#allocation6 + $0x118] sm:$0xf0]  ;;  %v6882_v2 = vld [vmem:[#allocation6 + $0x4] sm:$0xf] }
 0x2a8   : > { %vm3521_vm3 = vcmp.eq.f32.partialorder %v3520_v22, 8.507059e+37  ;;  %vm3531_vm11 = vweird.f32 %v9131_v42  ;;  %4471 = vmatpush.bf16.msrb.mxu0 %v6047_v43  ;;  %4499 = vmatpush.bf16.msra.mxu2 %v6175_v51  ;;  %v6271_v20 = vor.u32 %v6944_v32, %v6268_v56  ;;  %v6095_v29 = vor.u32 %v6900_v31, %v6092_v17  ;;  %v6940_v32 = vld [vmem:[#allocation6 + $0x1d4] sm:$0xf]  ;;  %v6974_v56 = vld [vmem:[#allocation6 + $0x2e4] sm:$0xf]  ;;  %v9555_v43 = vld [vmem:[#allocation13_spill] sm:$0xff] }
 0x2a9   : > { %v3524_v26 = vsel %vm3521_vm3, %v3523_v49, %v3519_v28  ;;  %4419 = vmatmul.bf16.vlgmr.msra.gmra.mxu0 %v9350_v15  ;;  %v3563_v9 = vmul.f32 %v9550_v57, %v3404_v13  ;;  %v6039_v48 = vor.u32 %v6886_v35, %v6036_v1  ;;  %v6167_v39 = vor.u32 %v6918_v14, %v6164_v23  ;;  %vm9363_vm0 = vmor %vm3531_vm11, %vm3532_vm10  ;;  %v6020_v36 = vld [vmem:[#allocation6 + $0x8] sm:$0xf0]  ;;  %v6914_v42 = vld [vmem:[#allocation6 + $0x104] sm:$0xf] }
 0x2aa   : > { %v3571_v5 = vmul.f32 %v9551_v55, %v3524_v26  ;;  %v3530_v25 = vadd.f32 %v9193_v7, %v9236_v18  ;;  %v3538_v58 = vor.u32 1.1754944e-38, %v3537_v59  ;;  %4509 = vmatpush.bf16.msrb.mxu3 %v6271_v20  ;;  %4487 = vmatpush.bf16.msra.mxu1 %v6095_v29  ;;  %v6263_v11 = vor.u32 %v6942_v40, %v6260_v46  ;;  %v6252_v18 = vld [vmem:[#allocation6 + $0x1d8] sm:$0xf0]  ;;  %v6148_v59 = vld [vmem:[#allocation6 + $0x108] sm:$0xf0]  ;;  %v9554_v3 = vld [vmem:[#allocation20_spill] sm:$0xff] }
 0x2ab   : > { %v6087_v63 = vor.u32 %v6898_v38, %v6084_v0  ;;  %v6399_v34 = vor.u32 %v6976_v41, %v6396_v47  ;;  %v6031_v31 = vor.u32 %v6884_v62, %v6028_v6  ;;  %v6159_v17 = vor.u32 %v6916_v19, %v6156_v4  ;;  %v6960_v8 = vld [vmem:[#allocation6 + $0x274] sm:$0xf]  ;;  %v6332_v35 = vld [vmem:[#allocation6 + $0x278] sm:$0xf0]  ;;  %v6938_v61 = vld [vmem:[#allocation6 + $0x1c4] sm:$0xf] }
 0x2ac   : > { %v9369_v27 = vpack.c.bf16 %v3571_v5, %v3563_v9  ;;  %4472 = vmatpush.bf16.msrb.mxu0 %v6039_v48  ;;  %4500 = vmatpush.bf16.msra.mxu2 %v6167_v39  ;;  %v3414_v60 = vsel %vm9345_vm9, %v9128_v37, %v9187_v10  ;;  %v6255_v53 = vor.u32 %v6940_v32, %v6252_v18  ;;  %v6992_v1 = vld [vmem:[#allocation6 + $0x374] sm:$0xf]  ;;  %v6460_v14 = vld [vmem:[#allocation6 + $0x378] sm:$0xf0]  ;;  %v6244_v13 = vld [vmem:[#allocation6 + $0x1c8] sm:$0xf0] }
 0x2ad   : > { %v3419_v12 = vsel %vm9323_vm14, %v9554_v3, %v3414_v60  ;;  %v3534_v21 = vsel %vm9363_vm0, %v9193_v7, %v3530_v25  ;;  %v6391_v22 = vor.u32 %v6974_v56, %v6388_v16  ;;  %v6023_v23 = vor.u32 %v6882_v2, %v6020_v36  ;;  %v6972_v33 = vld [vmem:[#allocation6 + $0x2d4] sm:$0xf]  ;;  %v6380_v49 = vld [vmem:[#allocation6 + $0x2d8] sm:$0xf0]  ;;  %v9556_v51 = vld [vmem:[#allocation16_spill] sm:$0xff] }
 0x2ae   : > { %4447 = vmatmul.bf16.vlgmr.msrb.gmra.mxu2 %v9369_v27  ;;  %4510 = vmatpush.bf16.msrb.mxu3 %v6263_v11  ;;  %v3539_v37 = vsel %vm9333_vm7, %v3538_v58, %v3534_v21  ;;  %v6151_v10 = vor.u32 %v6914_v42, %v6148_v59  ;;  %v3564_v52 = vmul.f32 %v9555_v43, %v3419_v12  ;;  %v9557_v46 = vld [vmem:[#allocation17_spill] sm:$0xff]  ;;  %v6936_v0 = vld [vmem:[#allocation6 + $0x1b4] sm:$0xf]  ;;  %v6236_v29 = vld [vmem:[#allocation6 + $0x1b8] sm:$0xf0] }
 0x2af   : > { %4488 = vmatpush.bf16.msra.mxu1 %v6087_v63  ;;  %v3572_v40 = vmul.f32 %v9556_v51, %v3539_v37  ;;  %v6335_v7 = vor.u32 %v6960_v8, %v6332_v35  ;;  %v6463_v24 = vor.u32 %v6992_v1, %v6460_v14  ;;  %v6247_v28 = vor.u32 %v6938_v61, %v6244_v13  ;;  %v6452_v26 = vld [vmem:[#allocation6 + $0x368] sm:$0xf0]  ;;  %v6958_v41 = vld [vmem:[#allocation6 + $0x264] sm:$0xf]  ;;  %v6956_v19 = vld [vmem:[#allocation6 + $0x254] sm:$0xf] }
 0x2b0   : > { %4473 = vmatpush.bf16.msrb.mxu0 %v6031_v31  ;;  %4501 = vmatpush.bf16.msra.mxu2 %v6159_v17  ;;  %v6383_v20 = vor.u32 %v6972_v33, %v6380_v49  ;;  %v6324_v47 = vld [vmem:[#allocation6 + $0x268] sm:$0xf0]  ;;  %v6970_v62 = vld [vmem:[#allocation6 + $0x2c4] sm:$0xf]  ;;  %v6455_v9 = vor.u32 %v6990_v50, %v6452_v26  ;;  %v6239_v55 = vor.u32 %v6936_v0, %v6236_v29  ;;  %v6316_v4 = vld [vmem:[#allocation6 + $0x258] sm:$0xf0] }
 0x2b1   : > { %v9387_v38 = vpack.c.bf16 %v3572_v40, %v3564_v52  ;;  %v6372_v57 = vld [vmem:[#allocation6 + $0x2c8] sm:$0xf0]  ;;  %v6327_v5 = vor.u32 %v6958_v41, %v6324_v47  ;;  %v6934_v48 = vld [vmem:[#allocation6 + $0x1a4] sm:$0xf]  ;;  %v6988_v25 = vld [vmem:[#allocation6 + $0x354] sm:$0xf]  ;;  %v6319_v32 = vor.u32 %v6956_v19, %v6316_v4 }
 0x2b2   : > { %4489 = vmatmul.bf16.vlgmr.msra.gmra.mxu1 %v9557_v46  ;;  %4511 = vmatpush.bf16.msrb.mxu3 %v6255_v53  ;;  %v6228_v39 = vld [vmem:[#allocation6 + $0x1a8] sm:$0xf0]  ;;  %v6375_v6 = vor.u32 %v6970_v62, %v6372_v57  ;;  %v6444_v44 = vld [vmem:[#allocation6 + $0x358] sm:$0xf0]  ;;  %v6968_v58 = vld [vmem:[#allocation6 + $0x2b4] sm:$0xf] }
 0x2b3   : > { %4537 = vmatpush.bf16.msrb.mxu1 %v6399_v34  ;;  %v6364_v11 = vld [vmem:[#allocation6 + $0x2b8] sm:$0xf0]  ;;  %v6231_v34 = vor.u32 %v6934_v48, %v6228_v39  ;;  %v6932_v18 = vld [vmem:[#allocation6 + $0x194] sm:$0xf]  ;;  %v6447_v31 = vor.u32 %v6988_v25, %v6444_v44  ;;  %v6954_v16 = vld [vmem:[#allocation6 + $0x244] sm:$0xf] }
 0x2b4   : > { %4474 = vmatpush.bf16.msrb.mxu0 %v6023_v23  ;;  %4502 = vmatpush.bf16.msra.mxu2 %v6151_v10  ;;  %v9558_v63 = vld [vmem:[#allocation19_spill] sm:$0xff]  ;;  %v6367_v17 = vor.u32 %v6968_v58, %v6364_v11  ;;  %v6308_v2 = vld [vmem:[#allocation6 + $0x248] sm:$0xf0]  ;;  %v6986_v36 = vld [vmem:[#allocation6 + $0x344] sm:$0xf] }
 0x2b5   : > { %4461 = vmatmul.bf16.vlgmr.msra.gmra.mxu3 %v9387_v38  ;;  %v6220_v56 = vld [vmem:[#allocation6 + $0x198] sm:$0xf0]  ;;  %v6436_v42 = vld [vmem:[#allocation6 + $0x348] sm:$0xf0]  ;;  %v6966_v59 = vld [vmem:[#allocation6 + $0x2a4] sm:$0xf]  ;;  %v6311_v53 = vor.u32 %v6954_v16, %v6308_v2 }
 0x2b6   : > { %4512 = vmatpush.bf16.msrb.mxu3 %v6247_v28  ;;  %v6356_v8 = vld [vmem:[#allocation6 + $0x2a8] sm:$0xf0]  ;;  %v6223_v60 = vor.u32 %v6932_v18, %v6220_v56  ;;  %v6930_v35 = vld [vmem:[#allocation6 + $0x184] sm:$0xf]  ;;  %v6439_v14 = vor.u32 %v6986_v36, %v6436_v42  ;;  %v6952_v12 = vld [vmem:[#allocation6 + $0x234] sm:$0xf] }
 0x2b7   : > { %4538 = vmatpush.bf16.msrb.mxu1 %v6391_v22  ;;  %v6212_v1 = vld [vmem:[#allocation6 + $0x188] sm:$0xf0]  ;;  %v6359_v3 = vor.u32 %v6966_v59, %v6356_v8  ;;  %v6300_v21 = vld [vmem:[#allocation6 + $0x238] sm:$0xf0]  ;;  %v6984_v22 = vld [vmem:[#allocation6 + $0x334] sm:$0xf] }
 0x2b8   : > { %4523 = vmatpush.bf16.msra.mxu0 %v6335_v7  ;;  %4551 = vmatpush.bf16.msrb.mxu2 %v6463_v24  ;;  %v6428_v23 = vld [vmem:[#allocation6 + $0x338] sm:$0xf0]  ;;  %v7008_v61 = vld [vmem:[#allocation6 + $0x3f4] sm:$0xf]  ;;  %v6303_v33 = vor.u32 %v6952_v12, %v6300_v21  ;;  %v6950_v52 = vld [vmem:[#allocation6 + $0x224] sm:$0xf] }
 0x2b9   : > { %4475 = vmatmul.bf16.vlgmr.msrb.gmra.mxu0 %v9558_v63  ;;  %v6524_v13 = vld [vmem:[#allocation6 + $0x3f8] sm:$0xf0]  ;;  %v6964_v37 = vld [vmem:[#allocation6 + $0x294] sm:$0xf]  ;;  %v6431_v49 = vor.u32 %v6984_v22, %v6428_v23  ;;  %v6292_v51 = vld [vmem:[#allocation6 + $0x228] sm:$0xf0] }
 0x2ba   : > { %4513 = vmatpush.bf16.msrb.mxu3 %v6239_v55  ;;  %v6348_v10 = vld [vmem:[#allocation6 + $0x298] sm:$0xf0]  ;;  %v6527_v43 = vor.u32 %v7008_v61, %v6524_v13  ;;  %v6982_v40 = vld [vmem:[#allocation6 + $0x324] sm:$0xf]  ;;  %v6420_v7 = vld [vmem:[#allocation6 + $0x328] sm:$0xf0]  ;;  %v6295_v26 = vor.u32 %v6950_v52, %v6292_v51 }
 0x2bb   : > { %4539 = vmatpush.bf16.msrb.mxu1 %v6383_v20  ;;  %v6351_v46 = vor.u32 %v6964_v37, %v6348_v10  ;;  %v7006_v24 = vld [vmem:[#allocation6 + $0x3e4] sm:$0xf]  ;;  %v6516_v28 = vld [vmem:[#allocation6 + $0x3e8] sm:$0xf0]  ;;  %v6423_v20 = vor.u32 %v6982_v40, %v6420_v7  ;;  %v6948_v41 = vld [vmem:[#allocation6 + $0x214] sm:$0xf] }
 0x2bc   : > { %4552 = vmatpush.bf16.msrb.mxu2 %v6455_v9  ;;  %4524 = vmatpush.bf16.msra.mxu0 %v6327_v5  ;;  %v6962_v0 = vld [vmem:[#allocation6 + $0x284] sm:$0xf]  ;;  %v6340_v50 = vld [vmem:[#allocation6 + $0x288] sm:$0xf0]  ;;  %v6519_v29 = vor.u32 %v7006_v24, %v6516_v28  ;;  %v6284_v47 = vld [vmem:[#allocation6 + $0x218] sm:$0xf0] }
 0x2bd   : > { %v6980_v62 = vld [vmem:[#allocation6 + $0x314] sm:$0xf]  ;;  %v6343_v57 = vor.u32 %v6962_v0, %v6340_v50  ;;  %v6412_v9 = vld [vmem:[#allocation6 + $0x318] sm:$0xf0]  ;;  %v6287_v48 = vor.u32 %v6948_v41, %v6284_v47  ;;  %v6946_v19 = vld [vmem:[#allocation6 + $0x204] sm:$0xf] }
 0x2be   : > { %4503 = vmatmul.bf16.vlgmr.msra.gmra.mxu2 %v9196_v45  ;;  %4514 = vmatpush.bf16.msrb.mxu3 %v6231_v34  ;;  %v6215_v45 = vor.u32 %v6930_v35, %v6212_v1  ;;  %v7004_v55 = vld [vmem:[#allocation6 + $0x3d4] sm:$0xf]  ;;  %v6508_v5 = vld [vmem:[#allocation6 + $0x3d8] sm:$0xf0]  ;;  %v6415_v39 = vor.u32 %v6980_v62, %v6412_v9  ;;  %v6276_v4 = vld [vmem:[#allocation6 + $0x208] sm:$0xf0] }
 0x2bf   : > { %4540 = vmatpush.bf16.msrb.mxu1 %v6375_v6  ;;  %v6511_v6 = vor.u32 %v7004_v55, %v6508_v5  ;;  %v6978_v25 = vld [vmem:[#allocation6 + $0x304] sm:$0xf]  ;;  %v6404_v44 = vld [vmem:[#allocation6 + $0x308] sm:$0xf0]  ;;  %v6279_v63 = vor.u32 %v6946_v19, %v6276_v4  ;;  %v6492_v18 = vld [vmem:[#allocation6 + $0x3b8] sm:$0xf0] }
 0x2c0   : > { %4525 = vmatpush.bf16.msra.mxu0 %v6319_v32  ;;  %4553 = vmatpush.bf16.msrb.mxu2 %v6447_v31  ;;  %v7002_v58 = vld [vmem:[#allocation6 + $0x3c4] sm:$0xf]  ;;  %v6500_v11 = vld [vmem:[#allocation6 + $0x3c8] sm:$0xf0]  ;;  %v6407_v34 = vor.u32 %v6978_v25, %v6404_v44  ;;  %v6996_v2 = vld [vmem:[#allocation6 + $0x394] sm:$0xf] }
 0x2c1   : > { %v6503_v32 = vor.u32 %v7002_v58, %v6500_v11  ;;  %v6998_v31 = vld [vmem:[#allocation6 + $0x3a4] sm:$0xf]  ;;  %v6476_v36 = vld [vmem:[#allocation6 + $0x398] sm:$0xf0]  ;;  %v9418_v12 = vld [vmem:[%s9474_s9] sm:$0x3] }
 0x2c2   : > { %4515 = vmatpush.bf16.msrb.mxu3 %v6223_v60  ;;  %v6479_v42 = vor.u32 %v6996_v2, %v6476_v36  ;;  %v6994_v59 = vld [vmem:[#allocation6 + $0x384] sm:$0xf]  ;;  %v7017_v60 = vld [vmem:[%s9475_s10 + $0x38] sm:$0xff]  ;;  %v3711_v22 = vperm.slane %v9418_v12, 0  ;;  %v7011_v13 = vld [vmem:[%s9475_s10 + $0x8] sm:$0xff]  ;;  %v3712_v2 = vperm.slane %v9418_v12, 1 }
 0x2c3   : > { %4541 = vmatpush.bf16.msrb.mxu1 %v6367_v17  ;;  %v6484_v17 = vld [vmem:[#allocation6 + $0x3a8] sm:$0xf0]  ;;  %v7013_v1 = vld [vmem:[%s9475_s10 + $0x18] sm:$0xff]  ;;  %v7010_v10 = vld [vmem:[%s9475_s10] sm:$0xff] }
 0x2c4   : > { %4526 = vmatpush.bf16.msra.mxu0 %v6311_v53  ;;  %4554 = vmatpush.bf16.msrb.mxu2 %v6439_v14  ;;  %v6487_v16 = vor.u32 %v6998_v31, %v6484_v17  ;;  %v7025_v41 = vld [vmem:[%s9475_s10 + $0x78] sm:$0xff]  ;;  %v7023_v19 = vld [vmem:[%s9475_s10 + $0x68] sm:$0xff]  ;;  %v7022_v25 = vld [vmem:[%s9475_s10 + $0x60] sm:$0xff] }
 0x2c5   : > { %v7019_v31 = vld [vmem:[%s9475_s10 + $0x48] sm:$0xff] }
 0x2c6   : > { %4516 = vmatpush.bf16.msrb.mxu3 %v6215_v45 }
 0x2c7   : > { %4542 = vmatpush.bf16.msrb.mxu1 %v6359_v3  ;;  %v7012_v3 = vld [vmem:[%s9475_s10 + $0x10] sm:$0xff] }
 0x2c8   : > { %4527 = vmatpush.bf16.msra.mxu0 %v6303_v33  ;;  %4555 = vmatpush.bf16.msrb.mxu2 %v6431_v49 }
 0x2c9   : > { %4517 = vmatmul.bf16.vlgmr.msrb.gmra.mxu3 %v9304_v30  ;;  %v7000_v30 = vld [vmem:[#allocation6 + $0x3b4] sm:$0xf] }
 0x2ca   : > { %4565 = vmatpush.bf16.msra.mxu3 %v6527_v43  ;;  %v6495_v56 = vor.u32 %v7000_v30, %v6492_v18 }
 0x2cb   : > { %4543 = vmatpush.bf16.msrb.mxu1 %v6351_v46 }
 0x2cc   : > { %4528 = vmatpush.bf16.msra.mxu0 %v6295_v26  ;;  %4556 = vmatpush.bf16.msrb.mxu2 %v6423_v20 }
 0x2ce   : > { %4566 = vmatpush.bf16.msra.mxu3 %v6519_v29 }
 0x2cf   : > { %4544 = vmatpush.bf16.msrb.mxu1 %v6343_v57  ;;  %v7024_v57 = vld [vmem:[%s9475_s10 + $0x70] sm:$0xff] }
 0x2d0   : > { %4529 = vmatpush.bf16.msra.mxu0 %v6287_v48  ;;  %4557 = vmatpush.bf16.msrb.mxu2 %v6415_v39 }
 0x2d2   : > { %4567 = vmatpush.bf16.msra.mxu3 %v6511_v6  ;;  %4545 = vmatmul.bf16.vlgmr.msrb.gmra.mxu1 %v9250_v54  ;;  %v6468_v54 = vld [vmem:[#allocation6 + $0x388] sm:$0xf0] }
 0x2d3   : > { %v6471_v8 = vor.u32 %v6994_v59, %v6468_v54  ;;  %4731 = vmatpush.bf16.msra.mxu1 %v7025_v41 }
 0x2d4   : > { %4530 = vmatpush.bf16.msra.mxu0 %v6279_v63  ;;  %4558 = vmatpush.bf16.msrb.mxu2 %v6407_v34  ;;  %v7021_v34 = vld [vmem:[%s9475_s10 + $0x58] sm:$0xff] }
 0x2d6   : > { %4568 = vmatpush.bf16.msra.mxu3 %v6503_v32  ;;  %v7020_v32 = vld [vmem:[%s9475_s10 + $0x50] sm:$0xff] }
 0x2d7   : > { %4531 = vmatmul.bf16.vlgmr.msra.gmra.mxu0 %v9350_v15  ;;  %4559 = vmatmul.bf16.vlgmr.msrb.gmra.mxu2 %v9369_v27  ;;  %v7016_v15 = vld [vmem:[%s9475_s10 + $0x30] sm:$0xff]  ;;  %v7015_v27 = vld [vmem:[%s9475_s10 + $0x28] sm:$0xff] }
 0x2d8   : > { %4717 = vmatpush.bf16.msrb.mxu0 %v7017_v60  ;;  %4732 = vmatpush.bf16.msra.mxu1 %v7024_v57 }
 0x2da   : > { %4569 = vmatpush.bf16.msra.mxu3 %v6495_v56 }
 0x2dc   : > { %4718 = vmatpush.bf16.msrb.mxu0 %v7016_v15  ;;  %4733 = vmatpush.bf16.msra.mxu1 %v7023_v19 }
 0x2de   : > { %4570 = vmatpush.bf16.msra.mxu3 %v6487_v16  ;;  %v7018_v16 = vld [vmem:[%s9475_s10 + $0x40] sm:$0xff] }
 0x2e0   : > { %4719 = vmatpush.bf16.msrb.mxu0 %v7015_v27  ;;  %4734 = vmatpush.bf16.msra.mxu1 %v7022_v25  ;;  %v7112_v25 = vld [vmem:[%s9478_s13] ss:$0 sm:$0xff] }
 0x2e2   : > { %4571 = vmatpush.bf16.msra.mxu3 %v6479_v42 }
 0x2e4   : > { %4735 = vmatpush.bf16.msra.mxu1 %v7021_v34 }
 0x2e6   : > { %4572 = vmatpush.bf16.msra.mxu3 %v6471_v8 }
 0x2e8   : > { %4736 = vmatpush.bf16.msra.mxu1 %v7020_v32 }
 0x2e9   : > { %4573 = vmatmul.bf16.vlgmr.msra.gmra.mxu3 %v9387_v38  ;;  %v7014_v38 = vld [vmem:[%s9475_s10 + $0x20] sm:$0xff] }
 0x2ea   : > { %4720 = vmatpush.bf16.msrb.mxu0 %v7014_v38 }
 0x2ec   : > { %4737 = vmatpush.bf16.msra.mxu1 %v7019_v31 }
 0x2ee   : > { %4721 = vmatpush.bf16.msrb.mxu0 %v7013_v1 }
 0x2f0   : > { %4738 = vmatpush.bf16.msra.mxu1 %v7018_v16 }
 0x2f2   : > { %4722 = vmatpush.bf16.msrb.mxu0 %v7012_v3 }
 0x2f6   : > { %4723 = vmatpush.bf16.msrb.mxu0 %v7011_v13 }
 0x2f9   : > { %v4378_v35 = vpop.f32.mrf.mxu1 }
 0x2fa   : > { %4724 = vmatpush.bf16.msrb.mxu0 %v7010_v10 }
 0x301   : > { %v4380_v23 = vpop.f32.mrf.mxu1 }
 0x309   : > { %v4364_v53 = vpop.f32.mrf.mxu0 }
 0x30a   : > { %v4365_v37 = vadd.f32 %v4364_v53, %v3711_v22 }
 0x30c   : > { %v4379_v43 = vadd.f32 %v4378_v35, %v4365_v37 }
 0x311   : > { %v4366_v21 = vpop.f32.mrf.mxu0 }
 0x312   : > { %v4367_v33 = vadd.f32 %v4366_v21, %v3711_v22 }
 0x314   : > { %v4381_v40 = vadd.f32 %v4380_v23, %v4367_v33 }
 0x317   : > { %v4392_v14 = vpop.f32.mrf.mxu2 }
 0x318   : > { %v4393_v51 = vadd.f32 %v4392_v14, %v4379_v43 }
 0x31a   : > { %v4434_v46 = vpop.f32.mrf.mxu1 }
 0x31f   : > { %v4394_v45 = vpop.f32.mrf.mxu2 }
 0x320   : > { %v4395_v7 = vadd.f32 %v4394_v45, %v4381_v40 }
 0x322   : > { %v4436_v62 = vpop.f32.mrf.mxu1 }
 0x326   : > { %v4420_v49 = vpop.f32.mrf.mxu0 }
 0x327   : > { %v4406_v61 = vpop.f32.mrf.mxu3 }
 0x328   : > { %v4407_v24 = vadd.f32 %v4406_v61, %v4393_v51 }
 0x32a   : > { %v4421_v50 = vadd.f32 %v4420_v49, %v4407_v24  ;;  %v7032_v24 = vld [vmem:[#allocation7 + $0x30] sm:$0xff] }
 0x32c   : > { %v4435_v47 = vadd.f32 %v4434_v46, %v4421_v50  ;;  %v7029_v50 = vld [vmem:[#allocation7 + $0x18] sm:$0xff] }
 0x32e   : > { %v4422_v26 = vpop.f32.mrf.mxu0 }
 0x32f   : > { %v4408_v52 = vpop.f32.mrf.mxu3  ;;  %v4490_v30 = vpop.f32.mrf.mxu1 }
 0x330   : > { %v4409_v28 = vadd.f32 %v4408_v52, %v4395_v7  ;;  %v7033_v7 = vld [vmem:[#allocation7 + $0x38] sm:$0xff] }
 0x331   : > { %v4448_v0 = vpop.f32.mrf.mxu2  ;;  %4816 = vmatpush.bf16.msra.mxu2 %v7033_v7 }
 0x332   : > { %v4423_v20 = vadd.f32 %v4422_v26, %v4409_v28  ;;  %v4449_v55 = vadd.f32 %v4448_v0, %v4435_v47  ;;  %v7031_v28 = vld [vmem:[#allocation7 + $0x28] sm:$0xff]  ;;  %v7030_v0 = vld [vmem:[#allocation7 + $0x20] sm:$0xff]  ;;  %v7028_v26 = vld [vmem:[#allocation7 + $0x10] sm:$0xff] }
 0x334   : > { %v4437_v9 = vadd.f32 %v4436_v62, %v4423_v20  ;;  %v7027_v20 = vld [vmem:[#allocation7 + $0x8] sm:$0xff]  ;;  %v7111_v62 = vld [vmem:[%s9476_s11] ss:$0 sm:$0xff] }
 0x335   : > { %4817 = vmatpush.bf16.msra.mxu2 %v7032_v24 }
 0x336   : > { %v4476_v63 = vpop.f32.mrf.mxu0 }
 0x337   : > { %v4492_v36 = vpop.f32.mrf.mxu1  ;;  %v4477_v54 = vadd.f32 %v4476_v63, %v3712_v2 }
 0x338   : > { %v4462_v29 = vpop.f32.mrf.mxu3 }
 0x339   : > { %v4450_v5 = vpop.f32.mrf.mxu2  ;;  %v4463_v39 = vadd.f32 %v4462_v29, %v4449_v55  ;;  %v4491_v15 = vadd.f32 %v4490_v30, %v4477_v54  ;;  %4818 = vmatpush.bf16.msra.mxu2 %v7031_v28  ;;  %v7026_v29 = vld [vmem:[#allocation7] sm:$0xff] }
 0x33a   : > { %v4451_v48 = vadd.f32 %v4450_v5, %v4437_v9 }
 0x33b   : > { %v4579_v44 = vmax.f32 %v4463_v39, 0.0 }
 0x33d   : > { %4819 = vmatpush.bf16.msra.mxu2 %v7030_v0 }
 0x33e   : > { %v4478_v56 = vpop.f32.mrf.mxu0 }
 0x33f   : > { %v4479_v8 = vadd.f32 %v4478_v56, %v3712_v2 }
 0x340   : > { %v4464_v6 = vpop.f32.mrf.mxu3 }
 0x341   : > { %v4465_v4 = vadd.f32 %v4464_v6, %v4451_v48  ;;  %v4504_v18 = vpop.f32.mrf.mxu2  ;;  %v4493_v35 = vadd.f32 %v4492_v36, %v4479_v8  ;;  %4820 = vmatpush.bf16.msra.mxu2 %v7029_v50 }
 0x342   : > { %v4505_v38 = vadd.f32 %v4504_v18, %v4491_v15 }
 0x343   : > { %v4581_v58 = vmax.f32 %v4465_v4, 0.0 }
 0x345   : > { %v4583_v11 = vpack.c.bf16 %v4581_v58, %v4579_v44  ;;  %4821 = vmatpush.bf16.msra.mxu2 %v7028_v26 }
 0x347   : > { %4725 = vmatmul.bf16.vlgmr.msrb.gmra.mxu0 %v4583_v11 }
 0x349   : > { %v4506_v42 = vpop.f32.mrf.mxu2  ;;  %4822 = vmatpush.bf16.msra.mxu2 %v7027_v20 }
 0x34a   : > { %v4507_v1 = vadd.f32 %v4506_v42, %v4493_v35 }
 0x34c   : > { %v4518_v17 = vpop.f32.mrf.mxu3 }
 0x34d   : > { %v4519_v14 = vadd.f32 %v4518_v17, %v4505_v38  ;;  %4823 = vmatpush.bf16.msra.mxu2 %v7026_v29 }
 0x34f   : > { %v4546_v27 = vpop.f32.mrf.mxu1 }
 0x354   : > { %v4532_v59 = vpop.f32.mrf.mxu0  ;;  %v4520_v60 = vpop.f32.mrf.mxu3 }
 0x355   : > { %v4533_v21 = vadd.f32 %v4532_v59, %v4519_v14  ;;  %v4521_v22 = vadd.f32 %v4520_v60, %v4507_v1 }
 0x357   : > { %v4547_v12 = vadd.f32 %v4546_v27, %v4533_v21  ;;  %v4548_v13 = vpop.f32.mrf.mxu1 }
 0x35a   : > { %v4560_v53 = vpop.f32.mrf.mxu2 }
 0x35b   : > { %v4561_v10 = vadd.f32 %v4560_v53, %v4547_v12 }
 0x35c   : > { %v4534_v3 = vpop.f32.mrf.mxu0 }
 0x35d   : > { %v4535_v61 = vadd.f32 %v4534_v3, %v4521_v22 }
 0x35f   : > { %v4549_v45 = vadd.f32 %v4548_v13, %v4535_v61 }
 0x362   : > { %v4562_v37 = vpop.f32.mrf.mxu2 }
 0x363   : > { %v4563_v33 = vadd.f32 %v4562_v37, %v4549_v45 }
 0x36c   : > { %v4574_v23 = vpop.f32.mrf.mxu3 }
 0x36d   : > { %v4575_v49 = vadd.f32 %v4574_v23, %v4561_v10 }
 0x36f   : > { %v4580_v51 = vmax.f32 %v4575_v49, 0.0 }
 0x374   : > { %v4576_v43 = vpop.f32.mrf.mxu3 }
 0x375   : > { %v4577_v52 = vadd.f32 %v4576_v43, %v4563_v33 }
 0x377   : > { %v4582_v40 = vmax.f32 %v4577_v52, 0.0 }
 0x379   : > { %v4584_v46 = vpack.c.bf16 %v4582_v40, %v4580_v51 }
 0x37b   : > { %4739 = vmatmul.bf16.vlgmr.msra.gmra.mxu1 %v4584_v46 }
 0x3c4   : > { %v4726_v41 = vpop.f32.mrf.mxu0 }
 0x3c5   : > { %v4727_v9 = vadd.f32 %v7111_v62, %v4726_v41 }
 0x3cc   : > { %v4728_v57 = vpop.f32.mrf.mxu0 }
 0x3cd   : > { %v4729_v55 = vadd.f32 %v7111_v62, %v4728_v57 }
 0x3f8   : > { %v4740_v47 = vpop.f32.mrf.mxu1 }
 0x3f9   : > { %v4741_v5 = vadd.f32 %v4740_v47, %v4727_v9 }
 0x3fb   : > { %v4745_v6 = vmax.f32 %v4741_v5, 0.0 }
 0x400   : > { %v4742_v48 = vpop.f32.mrf.mxu1 }
 0x401   : > { %v4743_v39 = vadd.f32 %v4742_v48, %v4729_v55 }
 0x403   : > { %v4746_v19 = vmax.f32 %v4743_v39, 0.0 }
 0x405   : > { %v4747_v4 = vpack.c.bf16 %v4746_v19, %v4745_v6 }
 0x407   : > { %4824 = vmatmul.bf16.vlgmr.msra.gmra.mxu2 %v4747_v4 }
 0x48a   : > { %v4825_v44 = vpop.f32.mrf.mxu2 }
 0x48b   : > { %v4826_v58 = vadd.f32 %v7112_v25, %v4825_v44 }
 0x48d   : > { %4830 = vst [vmem:[%s554_s22] sm:$0xff] %v4826_v58 }
 0x492   : > { %v4827_v11 = vpop.f32.mrf.mxu2 }
 0x493   : > { %v4828_v63 = vadd.f32 %v7112_v25, %v4827_v11 }
 0x495   : > { %4831 = vst [vmem:[%s554_s22 + $0x8] sm:$0xff] %v4828_v63 }
 0x496 PF: > { %s27_s29 = sadd.s32 1, %s7315_s29  }
 0x497   : > { %p24_p7 = scmp.ge.s32.totalorder %s27_s29, 4  }
 0x499   :  { %26 = sbr.rel (!%p24_p7) target bundleno = 8 (0x8), region = 126 }
 0x49e   :  { %4854 = vsyncpa [#allocation3], 1 }
 0x49f   :  { %4856 = vsyncpa [#allocation3 + $0x1], 1 }
 0x4a0   :  { %4857 = vsyncpa [#allocation5], 1 }
 0x4a1   :  { %4858 = vsyncpa [#allocation8], 1 }

</bundles_post_ra>
